<compile_context>
chip_gen: v6e
topology: v6e:2x2x1
jax: 0.10.0
libtpu: 0.0.40
codegen_flags: <defaults>
</compile_context>

<pallas_src>
import jax
import jax.numpy as jnp
from jax.experimental import pallas as pl
from jax.experimental.pallas import tpu as pltpu

CP = 128        # padded channel width (lanes)
_XROWS = 80     # per-phase input canvas rows  (10 x 8), valid data <= 8 x 8
_Y1ROWS = 64    # layer-1 canvas rows          ( 8 x 8), valid 7 x 7
_Y2ROWS = 40    # layer-2 canvas rows          ( 5 x 8), valid 5 x 5


def _compiler_params():
    cls = getattr(pltpu, "CompilerParams", None) or getattr(pltpu, "TPUCompilerParams")
    return cls(dimension_semantics=("parallel",))


# ---------------------------------------------------------------------------
# Fused Pallas kernel: conv1+relu -> conv2+relu -> conv3+relu, per batch item.
# ---------------------------------------------------------------------------
def _conv3_kernel(xph_ref, w1_ref, w2_ref, w3_ref, b1_ref, b2_ref, b3_ref,
                  o_ref, y1_ref, y2_ref):
    f32 = jnp.float32

    # Layer 1: each tap reads one of the 4 even/odd phase planes of x[::2, ::2]
    # at a constant row shift (canvas width 8).  Output = y1 at even positions
    # (a 7x7 grid), which is all layer 2 ever needs.
    acc1 = jnp.zeros((_Y1ROWS, CP), f32)
    for kh in range(3):
        for kw in range(3):
            t = kh * 3 + kw
            phase = (kh & 1) * 2 + (kw & 1)
            shift = 8 * (kh >> 1) + (kw >> 1)
            xs = xph_ref[0, phase, shift:shift + _Y1ROWS, :]        # (64, 128)
            acc1 += jnp.dot(xs, w1_ref[t], preferred_element_type=f32)
    y1_ref[...] = jnp.maximum(acc1 + b1_ref[...], 0.0)

    # Layer 2: stride-1 3x3 conv over the 7x7 (width-8 canvas) layer-1 output.
    acc2 = jnp.zeros((_Y2ROWS, CP), f32)
    for kh in range(3):
        for kw in range(3):
            t = kh * 3 + kw
            shift = 8 * kh + kw
            acc2 += jnp.dot(y1_ref[shift:shift + _Y2ROWS, :], w2_ref[t],
                            preferred_element_type=f32)
    y2_ref[...] = jnp.maximum(acc2 + b2_ref[...], 0.0)

    # Layer 3: single spatial output; reads y2 at even canvas rows (2kh, 2kw).
    acc3 = jnp.zeros((1, CP), f32)
    for kh in range(3):
        for kw in range(3):
            t = kh * 3 + kw
            r = 16 * kh + 2 * kw
            acc3 += jnp.dot(y2_ref[r:r + 1, :], w3_ref[t],
                            preferred_element_type=f32)
    o_ref[...] = jnp.maximum(acc3 + b3_ref[...], 0.0).reshape(1, 1, CP)


# ---------------------------------------------------------------------------
# Wrapper-side (cheap) data preparation.
# ---------------------------------------------------------------------------
def _pad_weight(w):
    # (Cout, Cin, 3, 3) OIHW -> (9, CP, CP); tap t = kh*3 + kw.  Zero padding
    # guarantees padded channels/lanes contribute exact zeros.
    cout, cin = int(w.shape[0]), int(w.shape[1])
    wt = jnp.transpose(w, (2, 3, 1, 0)).reshape(9, cin, cout).astype(jnp.float32)
    return jnp.pad(wt, ((0, 0), (0, CP - cin), (0, CP - cout)))


def _pad_bias(b):
    return jnp.pad(b.astype(jnp.float32), (0, CP - int(b.shape[0]))).reshape(1, CP)


def _phase_planes(x_nchw):
    # (B, C, 29, 29) -> (B, 4, 80, CP).  Phase (ph, pw) holds
    # x[:, :, 2*ph::4, 2*pw::4] (channels last) on a zero-padded (10, 8)
    # canvas, flattened row-major.  This is the only data reorganisation done
    # in XLA; it touches ~10 KB of input.
    B, C, H, W = x_nchw.shape
    x = jnp.transpose(x_nchw, (0, 2, 3, 1)).astype(jnp.float32)     # NHWC
    planes = jnp.zeros((B, 4, 10, 8, C), jnp.float32)
    for ph in range(2):
        for pw in range(2):
            p = x[:, 2 * ph::4, 2 * pw::4, :]
            planes = planes.at[:, 2 * ph + pw, :p.shape[1], :p.shape[2], :].set(p)
    planes = jnp.pad(planes, ((0, 0),) * 4 + ((0, CP - C),))
    return planes.reshape(B, 4, _XROWS, CP)


# ---------------------------------------------------------------------------
# Forward pass (Conv3.forward)
# ---------------------------------------------------------------------------
@jax.jit
def conv3_forward(params, x_nchw):
    if x_nchw.shape[2] != 29 or x_nchw.shape[3] != 29:
        raise ValueError("Fused kernel is specialised to 29x29 inputs "
                         "(spatial chain 29 -> 13 -> 5 -> 1).")
    B = x_nchw.shape[0]
    xph = _phase_planes(x_nchw)

    (w1, b1) = params["layer1"]
    (w2, b2) = params["layer2"]
    (w3, b3) = params["layer3"]
    args = (xph, _pad_weight(w1), _pad_weight(w2), _pad_weight(w3),
            _pad_bias(b1), _pad_bias(b2), _pad_bias(b3))

    out = pl.pallas_call(
        _conv3_kernel,
        out_shape=jax.ShapeDtypeStruct((B, 1, CP), jnp.float32),
        grid=(B,),
        in_specs=[
            pl.BlockSpec((1, 4, _XROWS, CP), lambda b: (b, 0, 0, 0)),
            pl.BlockSpec((9, CP, CP), lambda b: (0, 0, 0)),
            pl.BlockSpec((9, CP, CP), lambda b: (0, 0, 0)),
            pl.BlockSpec((9, CP, CP), lambda b: (0, 0, 0)),
            pl.BlockSpec((1, CP), lambda b: (0, 0)),
            pl.BlockSpec((1, CP), lambda b: (0, 0)),
            pl.BlockSpec((1, CP), lambda b: (0, 0)),
        ],
        out_specs=pl.BlockSpec((1, 1, CP), lambda b: (b, 0, 0)),
        scratch_shapes=[
            pltpu.VMEM((_Y1ROWS, CP), jnp.float32),   # layer-1 activations
            pltpu.VMEM((_Y2ROWS, CP), jnp.float32),   # layer-2 activations
        ],
        compiler_params=_compiler_params(),
    )(*args)

    # Spatial output is 1x1, so this is exactly PyTorch's out.view(B, -1).
    return out[:, 0, :36]


# ---------------------------------------------------------------------------
# Parameters (deterministic, Conv2d-style uniform init)
# ---------------------------------------------------------------------------
def init_params(key):
    def conv_init(k, cout, cin, ksz):
        k1, k2 = jax.random.split(k)
        fan_in = cin * ksz * ksz
        bound = 1.0 / (fan_in ** 0.5)
        w = jax.random.uniform(k1, (cout, cin, ksz, ksz), jnp.float32, -bound, bound)
        b = jax.random.uniform(k2, (cout,), jnp.float32, -bound, bound)
        return w, b

    k1, k2, k3 = jax.random.split(key, 3)
    return {
        "layer1": conv_init(k1, 36, 3, 3),
        "layer2": conv_init(k2, 36, 36, 3),
        "layer3": conv_init(k3, 36, 36, 3),
    }


# Pure-JAX reference (lax conv), used only for a correctness assertion.
def _ref_forward(params, x_nchw):
    out = x_nchw
    for name in ("layer1", "layer2", "layer3"):
        w, b = params[name]
        out = jax.lax.conv_general_dilated(
            out, w, window_strides=(2, 2), padding="VALID",
            rhs_dilation=(2, 2),
            dimension_numbers=("NCHW", "OIHW", "NCHW"))
        out = jax.nn.relu(out + b[None, :, None, None])
    return out.reshape(out.shape[0], -1)


if __name__ == "__main__":
    key = jax.random.PRNGKey(0)
    kx, kp = jax.random.split(key)
    # H=W=29 with kernel 3, stride 2, dilation 2 -> 13 -> 5 -> 1 spatial.
    x = jax.random.normal(kx, (2, 3, 29, 29), jnp.float32)
    params = init_params(kp)

    out = conv3_forward(params, x)
    jax.block_until_ready(out)

    assert out.shape == (2, 36), out.shape
    ref = _ref_forward(params, x)
    assert jnp.allclose(out, ref, atol=1e-4, rtol=1e-4), \
        float(jnp.max(jnp.abs(out - ref)))
    print("KERNEL_OK")
</pallas_src>

<mosaic_0001>
module attributes {stable_mosaic.version = 11 : i64} {
  func.func @_conv3_kernel(%arg0: i32, %arg1: memref<1x4x80x128xf32, #tpu.memory_space<vmem>>, %arg2: memref<9x128x128xf32, #tpu.memory_space<vmem>>, %arg3: memref<9x128x128xf32, #tpu.memory_space<vmem>>, %arg4: memref<9x128x128xf32, #tpu.memory_space<vmem>>, %arg5: memref<1x128xf32, #tpu.memory_space<vmem>>, %arg6: memref<1x128xf32, #tpu.memory_space<vmem>>, %arg7: memref<1x128xf32, #tpu.memory_space<vmem>>, %arg8: memref<1x1x128xf32, #tpu.memory_space<vmem>>, %arg9: memref<64x128xf32, #tpu.memory_space<vmem>>, %arg10: memref<40x128xf32, #tpu.memory_space<vmem>>) attributes {dimension_semantics = [#tpu.dimension_semantics<parallel>], iteration_bounds = array<i64: 2>, scalar_prefetch = 0 : i64, scratch_operands = 2 : i64, tpu.core_type = #tpu.core_type<tc>, window_params = [{transform_indices = @transform_0, window_bounds = array<i64: 1, 4, 80, 128>}, {pipeline_mode = #tpu.pipeline_mode<synchronous>, transform_indices = @transform_1, window_bounds = array<i64: 9, 128, 128>}, {pipeline_mode = #tpu.pipeline_mode<synchronous>, transform_indices = @transform_2, window_bounds = array<i64: 9, 128, 128>}, {pipeline_mode = #tpu.pipeline_mode<synchronous>, transform_indices = @transform_3, window_bounds = array<i64: 9, 128, 128>}, {pipeline_mode = #tpu.pipeline_mode<synchronous>, transform_indices = @transform_4, window_bounds = array<i64: 1, 128>}, {pipeline_mode = #tpu.pipeline_mode<synchronous>, transform_indices = @transform_5, window_bounds = array<i64: 1, 128>}, {pipeline_mode = #tpu.pipeline_mode<synchronous>, transform_indices = @transform_6, window_bounds = array<i64: 1, 128>}, {transform_indices = @transform_7, window_bounds = array<i64: 1, 1, 128>}]} {
    %cst = arith.constant 0.000000e+00 : f32
    %0 = vector.broadcast %cst : f32 to vector<64x128xf32>
    %c0 = arith.constant 0 : index
    %c0_0 = arith.constant 0 : index
    %c0_1 = arith.constant 0 : index
    %c0_2 = arith.constant 0 : index
    %1 = vector.load %arg1[%c0, %c0_0, %c0_1, %c0_2] : memref<1x4x80x128xf32, #tpu.memory_space<vmem>>, vector<1x1x64x128xf32>
    %2 = vector.shape_cast %1 : vector<1x1x64x128xf32> to vector<64x128xf32>
    %c0_3 = arith.constant 0 : index
    %c0_4 = arith.constant 0 : index
    %c0_5 = arith.constant 0 : index
    %3 = vector.load %arg2[%c0_3, %c0_4, %c0_5] : memref<9x128x128xf32, #tpu.memory_space<vmem>>, vector<1x128x128xf32>
    %4 = vector.shape_cast %3 : vector<1x128x128xf32> to vector<128x128xf32>
    %cst_6 = arith.constant dense<0.000000e+00> : vector<64x128xf32>
    %5 = tpu.matmul %2, %4, %cst_6 {dimension_numbers = #tpu.dot_dimension_numbers<[1], [0], [0], [1], [0, 0, 1, 1], [], []>} : vector<64x128xf32>, vector<128x128xf32>, vector<64x128xf32> -> vector<64x128xf32>
    %6 = arith.addf %0, %5 : vector<64x128xf32>
    %c0_7 = arith.constant 0 : index
    %c1 = arith.constant 1 : index
    %c0_8 = arith.constant 0 : index
    %c0_9 = arith.constant 0 : index
    %7 = vector.load %arg1[%c0_7, %c1, %c0_8, %c0_9] : memref<1x4x80x128xf32, #tpu.memory_space<vmem>>, vector<1x1x64x128xf32>
    %8 = vector.shape_cast %7 : vector<1x1x64x128xf32> to vector<64x128xf32>
    %c1_10 = arith.constant 1 : index
    %c0_11 = arith.constant 0 : index
    %c0_12 = arith.constant 0 : index
    %9 = vector.load %arg2[%c1_10, %c0_11, %c0_12] : memref<9x128x128xf32, #tpu.memory_space<vmem>>, vector<1x128x128xf32>
    %10 = vector.shape_cast %9 : vector<1x128x128xf32> to vector<128x128xf32>
    %cst_13 = arith.constant dense<0.000000e+00> : vector<64x128xf32>
    %11 = tpu.matmul %8, %10, %cst_13 {dimension_numbers = #tpu.dot_dimension_numbers<[1], [0], [0], [1], [0, 0, 1, 1], [], []>} : vector<64x128xf32>, vector<128x128xf32>, vector<64x128xf32> -> vector<64x128xf32>
    %12 = arith.addf %6, %11 : vector<64x128xf32>
    %c0_14 = arith.constant 0 : index
    %c0_15 = arith.constant 0 : index
    %c1_16 = arith.constant 1 : index
    %c0_17 = arith.constant 0 : index
    %13 = vector.load %arg1[%c0_14, %c0_15, %c1_16, %c0_17] : memref<1x4x80x128xf32, #tpu.memory_space<vmem>>, vector<1x1x64x128xf32>
    %14 = vector.shape_cast %13 : vector<1x1x64x128xf32> to vector<64x128xf32>
    %c2 = arith.constant 2 : index
    %c0_18 = arith.constant 0 : index
    %c0_19 = arith.constant 0 : index
    %15 = vector.load %arg2[%c2, %c0_18, %c0_19] : memref<9x128x128xf32, #tpu.memory_space<vmem>>, vector<1x128x128xf32>
    %16 = vector.shape_cast %15 : vector<1x128x128xf32> to vector<128x128xf32>
    %cst_20 = arith.constant dense<0.000000e+00> : vector<64x128xf32>
    %17 = tpu.matmul %14, %16, %cst_20 {dimension_numbers = #tpu.dot_dimension_numbers<[1], [0], [0], [1], [0, 0, 1, 1], [], []>} : vector<64x128xf32>, vector<128x128xf32>, vector<64x128xf32> -> vector<64x128xf32>
    %18 = arith.addf %12, %17 : vector<64x128xf32>
    %c0_21 = arith.constant 0 : index
    %c2_22 = arith.constant 2 : index
    %c0_23 = arith.constant 0 : index
    %c0_24 = arith.constant 0 : index
    %19 = vector.load %arg1[%c0_21, %c2_22, %c0_23, %c0_24] : memref<1x4x80x128xf32, #tpu.memory_space<vmem>>, vector<1x1x64x128xf32>
    %20 = vector.shape_cast %19 : vector<1x1x64x128xf32> to vector<64x128xf32>
    %c3 = arith.constant 3 : index
    %c0_25 = arith.constant 0 : index
    %c0_26 = arith.constant 0 : index
    %21 = vector.load %arg2[%c3, %c0_25, %c0_26] : memref<9x128x128xf32, #tpu.memory_space<vmem>>, vector<1x128x128xf32>
    %22 = vector.shape_cast %21 : vector<1x128x128xf32> to vector<128x128xf32>
    %cst_27 = arith.constant dense<0.000000e+00> : vector<64x128xf32>
    %23 = tpu.matmul %20, %22, %cst_27 {dimension_numbers = #tpu.dot_dimension_numbers<[1], [0], [0], [1], [0, 0, 1, 1], [], []>} : vector<64x128xf32>, vector<128x128xf32>, vector<64x128xf32> -> vector<64x128xf32>
    %24 = arith.addf %18, %23 : vector<64x128xf32>
    %c0_28 = arith.constant 0 : index
    %c3_29 = arith.constant 3 : index
    %c0_30 = arith.constant 0 : index
    %c0_31 = arith.constant 0 : index
    %25 = vector.load %arg1[%c0_28, %c3_29, %c0_30, %c0_31] : memref<1x4x80x128xf32, #tpu.memory_space<vmem>>, vector<1x1x64x128xf32>
    %26 = vector.shape_cast %25 : vector<1x1x64x128xf32> to vector<64x128xf32>
    %c4 = arith.constant 4 : index
    %c0_32 = arith.constant 0 : index
    %c0_33 = arith.constant 0 : index
    %27 = vector.load %arg2[%c4, %c0_32, %c0_33] : memref<9x128x128xf32, #tpu.memory_space<vmem>>, vector<1x128x128xf32>
    %28 = vector.shape_cast %27 : vector<1x128x128xf32> to vector<128x128xf32>
    %cst_34 = arith.constant dense<0.000000e+00> : vector<64x128xf32>
    %29 = tpu.matmul %26, %28, %cst_34 {dimension_numbers = #tpu.dot_dimension_numbers<[1], [0], [0], [1], [0, 0, 1, 1], [], []>} : vector<64x128xf32>, vector<128x128xf32>, vector<64x128xf32> -> vector<64x128xf32>
    %30 = arith.addf %24, %29 : vector<64x128xf32>
    %c0_35 = arith.constant 0 : index
    %c2_36 = arith.constant 2 : index
    %c1_37 = arith.constant 1 : index
    %c0_38 = arith.constant 0 : index
    %31 = vector.load %arg1[%c0_35, %c2_36, %c1_37, %c0_38] : memref<1x4x80x128xf32, #tpu.memory_space<vmem>>, vector<1x1x64x128xf32>
    %32 = vector.shape_cast %31 : vector<1x1x64x128xf32> to vector<64x128xf32>
    %c5 = arith.constant 5 : index
    %c0_39 = arith.constant 0 : index
    %c0_40 = arith.constant 0 : index
    %33 = vector.load %arg2[%c5, %c0_39, %c0_40] : memref<9x128x128xf32, #tpu.memory_space<vmem>>, vector<1x128x128xf32>
    %34 = vector.shape_cast %33 : vector<1x128x128xf32> to vector<128x128xf32>
    %cst_41 = arith.constant dense<0.000000e+00> : vector<64x128xf32>
    %35 = tpu.matmul %32, %34, %cst_41 {dimension_numbers = #tpu.dot_dimension_numbers<[1], [0], [0], [1], [0, 0, 1, 1], [], []>} : vector<64x128xf32>, vector<128x128xf32>, vector<64x128xf32> -> vector<64x128xf32>
    %36 = arith.addf %30, %35 : vector<64x128xf32>
    %c0_42 = arith.constant 0 : index
    %c0_43 = arith.constant 0 : index
    %c8 = arith.constant 8 : index
    %c0_44 = arith.constant 0 : index
    %37 = vector.load %arg1[%c0_42, %c0_43, %c8, %c0_44] : memref<1x4x80x128xf32, #tpu.memory_space<vmem>>, vector<1x1x64x128xf32>
    %38 = vector.shape_cast %37 : vector<1x1x64x128xf32> to vector<64x128xf32>
    %c6 = arith.constant 6 : index
    %c0_45 = arith.constant 0 : index
    %c0_46 = arith.constant 0 : index
    %39 = vector.load %arg2[%c6, %c0_45, %c0_46] : memref<9x128x128xf32, #tpu.memory_space<vmem>>, vector<1x128x128xf32>
    %40 = vector.shape_cast %39 : vector<1x128x128xf32> to vector<128x128xf32>
    %cst_47 = arith.constant dense<0.000000e+00> : vector<64x128xf32>
    %41 = tpu.matmul %38, %40, %cst_47 {dimension_numbers = #tpu.dot_dimension_numbers<[1], [0], [0], [1], [0, 0, 1, 1], [], []>} : vector<64x128xf32>, vector<128x128xf32>, vector<64x128xf32> -> vector<64x128xf32>
    %42 = arith.addf %36, %41 : vector<64x128xf32>
    %c0_48 = arith.constant 0 : index
    %c1_49 = arith.constant 1 : index
    %c8_50 = arith.constant 8 : index
    %c0_51 = arith.constant 0 : index
    %43 = vector.load %arg1[%c0_48, %c1_49, %c8_50, %c0_51] : memref<1x4x80x128xf32, #tpu.memory_space<vmem>>, vector<1x1x64x128xf32>
    %44 = vector.shape_cast %43 : vector<1x1x64x128xf32> to vector<64x128xf32>
    %c7 = arith.constant 7 : index
    %c0_52 = arith.constant 0 : index
    %c0_53 = arith.constant 0 : index
    %45 = vector.load %arg2[%c7, %c0_52, %c0_53] : memref<9x128x128xf32, #tpu.memory_space<vmem>>, vector<1x128x128xf32>
    %46 = vector.shape_cast %45 : vector<1x128x128xf32> to vector<128x128xf32>
    %cst_54 = arith.constant dense<0.000000e+00> : vector<64x128xf32>
    %47 = tpu.matmul %44, %46, %cst_54 {dimension_numbers = #tpu.dot_dimension_numbers<[1], [0], [0], [1], [0, 0, 1, 1], [], []>} : vector<64x128xf32>, vector<128x128xf32>, vector<64x128xf32> -> vector<64x128xf32>
    %48 = arith.addf %42, %47 : vector<64x128xf32>
    %c0_55 = arith.constant 0 : index
    %c0_56 = arith.constant 0 : index
    %c9 = arith.constant 9 : index
    %c0_57 = arith.constant 0 : index
    %49 = vector.load %arg1[%c0_55, %c0_56, %c9, %c0_57] : memref<1x4x80x128xf32, #tpu.memory_space<vmem>>, vector<1x1x64x128xf32>
    %50 = vector.shape_cast %49 : vector<1x1x64x128xf32> to vector<64x128xf32>
    %c8_58 = arith.constant 8 : index
    %c0_59 = arith.constant 0 : index
    %c0_60 = arith.constant 0 : index
    %51 = vector.load %arg2[%c8_58, %c0_59, %c0_60] : memref<9x128x128xf32, #tpu.memory_space<vmem>>, vector<1x128x128xf32>
    %52 = vector.shape_cast %51 : vector<1x128x128xf32> to vector<128x128xf32>
    %cst_61 = arith.constant dense<0.000000e+00> : vector<64x128xf32>
    %53 = tpu.matmul %50, %52, %cst_61 {dimension_numbers = #tpu.dot_dimension_numbers<[1], [0], [0], [1], [0, 0, 1, 1], [], []>} : vector<64x128xf32>, vector<128x128xf32>, vector<64x128xf32> -> vector<64x128xf32>
    %54 = arith.addf %48, %53 : vector<64x128xf32>
    %c0_62 = arith.constant 0 : index
    %c0_63 = arith.constant 0 : index
    %55 = vector.load %arg5[%c0_62, %c0_63] : memref<1x128xf32, #tpu.memory_space<vmem>>, vector<1x128xf32>
    %56 = vector.broadcast %55 : vector<1x128xf32> to vector<64x128xf32>
    %57 = arith.addf %54, %56 : vector<64x128xf32>
    %cst_64 = arith.constant 0.000000e+00 : f32
    %58 = vector.broadcast %cst_64 : f32 to vector<64x128xf32>
    %59 = arith.maximumf %57, %58 : vector<64x128xf32>
    %c0_65 = arith.constant 0 : index
    %c0_66 = arith.constant 0 : index
    %60 = vector.load %arg9[%c0_65, %c0_66] : memref<64x128xf32, #tpu.memory_space<vmem>>, vector<64x128xf32>
    tpu.vector_store %arg9[%c0_65, %c0_66], %59 {strides = array<i32>} : memref<64x128xf32, #tpu.memory_space<vmem>>, vector<64x128xf32>,
    %cst_67 = arith.constant 0.000000e+00 : f32
    %61 = vector.broadcast %cst_67 : f32 to vector<40x128xf32>
    %c0_68 = arith.constant 0 : index
    %c0_69 = arith.constant 0 : index
    %62 = vector.load %arg9[%c0_68, %c0_69] : memref<64x128xf32, #tpu.memory_space<vmem>>, vector<40x128xf32>
    %c0_70 = arith.constant 0 : index
    %c0_71 = arith.constant 0 : index
    %c0_72 = arith.constant 0 : index
    %63 = vector.load %arg3[%c0_70, %c0_71, %c0_72] : memref<9x128x128xf32, #tpu.memory_space<vmem>>, vector<1x128x128xf32>
    %64 = vector.shape_cast %63 : vector<1x128x128xf32> to vector<128x128xf32>
    %cst_73 = arith.constant dense<0.000000e+00> : vector<40x128xf32>
    %65 = tpu.matmul %62, %64, %cst_73 {dimension_numbers = #tpu.dot_dimension_numbers<[1], [0], [0], [1], [0, 0, 1, 1], [], []>} : vector<40x128xf32>, vector<128x128xf32>, vector<40x128xf32> -> vector<40x128xf32>
    %66 = arith.addf %61, %65 : vector<40x128xf32>
    %c1_74 = arith.constant 1 : index
    %c0_75 = arith.constant 0 : index
    %67 = vector.load %arg9[%c1_74, %c0_75] : memref<64x128xf32, #tpu.memory_space<vmem>>, vector<40x128xf32>
    %c1_76 = arith.constant 1 : index
    %c0_77 = arith.constant 0 : index
    %c0_78 = arith.constant 0 : index
    %68 = vector.load %arg3[%c1_76, %c0_77, %c0_78] : memref<9x128x128xf32, #tpu.memory_space<vmem>>, vector<1x128x128xf32>
    %69 = vector.shape_cast %68 : vector<1x128x128xf32> to vector<128x128xf32>
    %cst_79 = arith.constant dense<0.000000e+00> : vector<40x128xf32>
    %70 = tpu.matmul %67, %69, %cst_79 {dimension_numbers = #tpu.dot_dimension_numbers<[1], [0], [0], [1], [0, 0, 1, 1], [], []>} : vector<40x128xf32>, vector<128x128xf32>, vector<40x128xf32> -> vector<40x128xf32>
    %71 = arith.addf %66, %70 : vector<40x128xf32>
    %c2_80 = arith.constant 2 : index
    %c0_81 = arith.constant 0 : index
    %72 = vector.load %arg9[%c2_80, %c0_81] : memref<64x128xf32, #tpu.memory_space<vmem>>, vector<40x128xf32>
    %c2_82 = arith.constant 2 : index
    %c0_83 = arith.constant 0 : index
    %c0_84 = arith.constant 0 : index
    %73 = vector.load %arg3[%c2_82, %c0_83, %c0_84] : memref<9x128x128xf32, #tpu.memory_space<vmem>>, vector<1x128x128xf32>
    %74 = vector.shape_cast %73 : vector<1x128x128xf32> to vector<128x128xf32>
    %cst_85 = arith.constant dense<0.000000e+00> : vector<40x128xf32>
    %75 = tpu.matmul %72, %74, %cst_85 {dimension_numbers = #tpu.dot_dimension_numbers<[1], [0], [0], [1], [0, 0, 1, 1], [], []>} : vector<40x128xf32>, vector<128x128xf32>, vector<40x128xf32> -> vector<40x128xf32>
    %76 = arith.addf %71, %75 : vector<40x128xf32>
    %c8_86 = arith.constant 8 : index
    %c0_87 = arith.constant 0 : index
    %77 = vector.load %arg9[%c8_86, %c0_87] : memref<64x128xf32, #tpu.memory_space<vmem>>, vector<40x128xf32>
    %c3_88 = arith.constant 3 : index
    %c0_89 = arith.constant 0 : index
    %c0_90 = arith.constant 0 : index
    %78 = vector.load %arg3[%c3_88, %c0_89, %c0_90] : memref<9x128x128xf32, #tpu.memory_space<vmem>>, vector<1x128x128xf32>
    %79 = vector.shape_cast %78 : vector<1x128x128xf32> to vector<128x128xf32>
    %cst_91 = arith.constant dense<0.000000e+00> : vector<40x128xf32>
    %80 = tpu.matmul %77, %79, %cst_91 {dimension_numbers = #tpu.dot_dimension_numbers<[1], [0], [0], [1], [0, 0, 1, 1], [], []>} : vector<40x128xf32>, vector<128x128xf32>, vector<40x128xf32> -> vector<40x128xf32>
    %81 = arith.addf %76, %80 : vector<40x128xf32>
    %c9_92 = arith.constant 9 : index
    %c0_93 = arith.constant 0 : index
    %82 = vector.load %arg9[%c9_92, %c0_93] : memref<64x128xf32, #tpu.memory_space<vmem>>, vector<40x128xf32>
    %c4_94 = arith.constant 4 : index
    %c0_95 = arith.constant 0 : index
    %c0_96 = arith.constant 0 : index
    %83 = vector.load %arg3[%c4_94, %c0_95, %c0_96] : memref<9x128x128xf32, #tpu.memory_space<vmem>>, vector<1x128x128xf32>
    %84 = vector.shape_cast %83 : vector<1x128x128xf32> to vector<128x128xf32>
    %cst_97 = arith.constant dense<0.000000e+00> : vector<40x128xf32>
    %85 = tpu.matmul %82, %84, %cst_97 {dimension_numbers = #tpu.dot_dimension_numbers<[1], [0], [0], [1], [0, 0, 1, 1], [], []>} : vector<40x128xf32>, vector<128x128xf32>, vector<40x128xf32> -> vector<40x128xf32>
    %86 = arith.addf %81, %85 : vector<40x128xf32>
    %c10 = arith.constant 10 : index
    %c0_98 = arith.constant 0 : index
    %87 = vector.load %arg9[%c10, %c0_98] : memref<64x128xf32, #tpu.memory_space<vmem>>, vector<40x128xf32>
    %c5_99 = arith.constant 5 : index
    %c0_100 = arith.constant 0 : index
    %c0_101 = arith.constant 0 : index
    %88 = vector.load %arg3[%c5_99, %c0_100, %c0_101] : memref<9x128x128xf32, #tpu.memory_space<vmem>>, vector<1x128x128xf32>
    %89 = vector.shape_cast %88 : vector<1x128x128xf32> to vector<128x128xf32>
    %cst_102 = arith.constant dense<0.000000e+00> : vector<40x128xf32>
    %90 = tpu.matmul %87, %89, %cst_102 {dimension_numbers = #tpu.dot_dimension_numbers<[1], [0], [0], [1], [0, 0, 1, 1], [], []>} : vector<40x128xf32>, vector<128x128xf32>, vector<40x128xf32> -> vector<40x128xf32>
    %91 = arith.addf %86, %90 : vector<40x128xf32>
    %c16 = arith.constant 16 : index
    %c0_103 = arith.constant 0 : index
    %92 = vector.load %arg9[%c16, %c0_103] : memref<64x128xf32, #tpu.memory_space<vmem>>, vector<40x128xf32>
    %c6_104 = arith.constant 6 : index
    %c0_105 = arith.constant 0 : index
    %c0_106 = arith.constant 0 : index
    %93 = vector.load %arg3[%c6_104, %c0_105, %c0_106] : memref<9x128x128xf32, #tpu.memory_space<vmem>>, vector<1x128x128xf32>
    %94 = vector.shape_cast %93 : vector<1x128x128xf32> to vector<128x128xf32>
    %cst_107 = arith.constant dense<0.000000e+00> : vector<40x128xf32>
    %95 = tpu.matmul %92, %94, %cst_107 {dimension_numbers = #tpu.dot_dimension_numbers<[1], [0], [0], [1], [0, 0, 1, 1], [], []>} : vector<40x128xf32>, vector<128x128xf32>, vector<40x128xf32> -> vector<40x128xf32>
    %96 = arith.addf %91, %95 : vector<40x128xf32>
    %c17 = arith.constant 17 : index
    %c0_108 = arith.constant 0 : index
    %97 = vector.load %arg9[%c17, %c0_108] : memref<64x128xf32, #tpu.memory_space<vmem>>, vector<40x128xf32>
    %c7_109 = arith.constant 7 : index
    %c0_110 = arith.constant 0 : index
    %c0_111 = arith.constant 0 : index
    %98 = vector.load %arg3[%c7_109, %c0_110, %c0_111] : memref<9x128x128xf32, #tpu.memory_space<vmem>>, vector<1x128x128xf32>
    %99 = vector.shape_cast %98 : vector<1x128x128xf32> to vector<128x128xf32>
    %cst_112 = arith.constant dense<0.000000e+00> : vector<40x128xf32>
    %100 = tpu.matmul %97, %99, %cst_112 {dimension_numbers = #tpu.dot_dimension_numbers<[1], [0], [0], [1], [0, 0, 1, 1], [], []>} : vector<40x128xf32>, vector<128x128xf32>, vector<40x128xf32> -> vector<40x128xf32>
    %101 = arith.addf %96, %100 : vector<40x128xf32>
    %c18 = arith.constant 18 : index
    %c0_113 = arith.constant 0 : index
    %102 = vector.load %arg9[%c18, %c0_113] : memref<64x128xf32, #tpu.memory_space<vmem>>, vector<40x128xf32>
    %c8_114 = arith.constant 8 : index
    %c0_115 = arith.constant 0 : index
    %c0_116 = arith.constant 0 : index
    %103 = vector.load %arg3[%c8_114, %c0_115, %c0_116] : memref<9x128x128xf32, #tpu.memory_space<vmem>>, vector<1x128x128xf32>
    %104 = vector.shape_cast %103 : vector<1x128x128xf32> to vector<128x128xf32>
    %cst_117 = arith.constant dense<0.000000e+00> : vector<40x128xf32>
    %105 = tpu.matmul %102, %104, %cst_117 {dimension_numbers = #tpu.dot_dimension_numbers<[1], [0], [0], [1], [0, 0, 1, 1], [], []>} : vector<40x128xf32>, vector<128x128xf32>, vector<40x128xf32> -> vector<40x128xf32>
    %106 = arith.addf %101, %105 : vector<40x128xf32>
    %c0_118 = arith.constant 0 : index
    %c0_119 = arith.constant 0 : index
    %107 = vector.load %arg6[%c0_118, %c0_119] : memref<1x128xf32, #tpu.memory_space<vmem>>, vector<1x128xf32>
    %108 = vector.broadcast %107 : vector<1x128xf32> to vector<40x128xf32>
    %109 = arith.addf %106, %108 : vector<40x128xf32>
    %cst_120 = arith.constant 0.000000e+00 : f32
    %110 = vector.broadcast %cst_120 : f32 to vector<40x128xf32>
    %111 = arith.maximumf %109, %110 : vector<40x128xf32>
    %c0_121 = arith.constant 0 : index
    %c0_122 = arith.constant 0 : index
    %112 = vector.load %arg10[%c0_121, %c0_122] : memref<40x128xf32, #tpu.memory_space<vmem>>, vector<40x128xf32>
    tpu.vector_store %arg10[%c0_121, %c0_122], %111 {strides = array<i32>} : memref<40x128xf32, #tpu.memory_space<vmem>>, vector<40x128xf32>,
    %cst_123 = arith.constant 0.000000e+00 : f32
    %113 = vector.broadcast %cst_123 : f32 to vector<1x128xf32>
    %c0_124 = arith.constant 0 : index
    %c0_125 = arith.constant 0 : index
    %114 = vector.load %arg10[%c0_124, %c0_125] : memref<40x128xf32, #tpu.memory_space<vmem>>, vector<1x128xf32>
    %c0_126 = arith.constant 0 : index
    %c0_127 = arith.constant 0 : index
    %c0_128 = arith.constant 0 : index
    %115 = vector.load %arg4[%c0_126, %c0_127, %c0_128] : memref<9x128x128xf32, #tpu.memory_space<vmem>>, vector<1x128x128xf32>
    %116 = vector.shape_cast %115 : vector<1x128x128xf32> to vector<128x128xf32>
    %cst_129 = arith.constant dense<0.000000e+00> : vector<1x128xf32>
    %117 = tpu.matmul %114, %116, %cst_129 {dimension_numbers = #tpu.dot_dimension_numbers<[1], [0], [0], [1], [0, 0, 1, 1], [], []>} : vector<1x128xf32>, vector<128x128xf32>, vector<1x128xf32> -> vector<1x128xf32>
    %118 = arith.addf %113, %117 : vector<1x128xf32>
    %c2_130 = arith.constant 2 : index
    %c0_131 = arith.constant 0 : index
    %119 = vector.load %arg10[%c2_130, %c0_131] : memref<40x128xf32, #tpu.memory_space<vmem>>, vector<1x128xf32>
    %c1_132 = arith.constant 1 : index
    %c0_133 = arith.constant 0 : index
    %c0_134 = arith.constant 0 : index
    %120 = vector.load %arg4[%c1_132, %c0_133, %c0_134] : memref<9x128x128xf32, #tpu.memory_space<vmem>>, vector<1x128x128xf32>
    %121 = vector.shape_cast %120 : vector<1x128x128xf32> to vector<128x128xf32>
    %cst_135 = arith.constant dense<0.000000e+00> : vector<1x128xf32>
    %122 = tpu.matmul %119, %121, %cst_135 {dimension_numbers = #tpu.dot_dimension_numbers<[1], [0], [0], [1], [0, 0, 1, 1], [], []>} : vector<1x128xf32>, vector<128x128xf32>, vector<1x128xf32> -> vector<1x128xf32>
    %123 = arith.addf %118, %122 : vector<1x128xf32>
    %c4_136 = arith.constant 4 : index
    %c0_137 = arith.constant 0 : index
    %124 = vector.load %arg10[%c4_136, %c0_137] : memref<40x128xf32, #tpu.memory_space<vmem>>, vector<1x128xf32>
    %c2_138 = arith.constant 2 : index
    %c0_139 = arith.constant 0 : index
    %c0_140 = arith.constant 0 : index
    %125 = vector.load %arg4[%c2_138, %c0_139, %c0_140] : memref<9x128x128xf32, #tpu.memory_space<vmem>>, vector<1x128x128xf32>
    %126 = vector.shape_cast %125 : vector<1x128x128xf32> to vector<128x128xf32>
    %cst_141 = arith.constant dense<0.000000e+00> : vector<1x128xf32>
    %127 = tpu.matmul %124, %126, %cst_141 {dimension_numbers = #tpu.dot_dimension_numbers<[1], [0], [0], [1], [0, 0, 1, 1], [], []>} : vector<1x128xf32>, vector<128x128xf32>, vector<1x128xf32> -> vector<1x128xf32>
    %128 = arith.addf %123, %127 : vector<1x128xf32>
    %c16_142 = arith.constant 16 : index
    %c0_143 = arith.constant 0 : index
    %129 = vector.load %arg10[%c16_142, %c0_143] : memref<40x128xf32, #tpu.memory_space<vmem>>, vector<1x128xf32>
    %c3_144 = arith.constant 3 : index
    %c0_145 = arith.constant 0 : index
    %c0_146 = arith.constant 0 : index
    %130 = vector.load %arg4[%c3_144, %c0_145, %c0_146] : memref<9x128x128xf32, #tpu.memory_space<vmem>>, vector<1x128x128xf32>
    %131 = vector.shape_cast %130 : vector<1x128x128xf32> to vector<128x128xf32>
    %cst_147 = arith.constant dense<0.000000e+00> : vector<1x128xf32>
    %132 = tpu.matmul %129, %131, %cst_147 {dimension_numbers = #tpu.dot_dimension_numbers<[1], [0], [0], [1], [0, 0, 1, 1], [], []>} : vector<1x128xf32>, vector<128x128xf32>, vector<1x128xf32> -> vector<1x128xf32>
    %133 = arith.addf %128, %132 : vector<1x128xf32>
    %c18_148 = arith.constant 18 : index
    %c0_149 = arith.constant 0 : index
    %134 = vector.load %arg10[%c18_148, %c0_149] : memref<40x128xf32, #tpu.memory_space<vmem>>, vector<1x128xf32>
    %c4_150 = arith.constant 4 : index
    %c0_151 = arith.constant 0 : index
    %c0_152 = arith.constant 0 : index
    %135 = vector.load %arg4[%c4_150, %c0_151, %c0_152] : memref<9x128x128xf32, #tpu.memory_space<vmem>>, vector<1x128x128xf32>
    %136 = vector.shape_cast %135 : vector<1x128x128xf32> to vector<128x128xf32>
    %cst_153 = arith.constant dense<0.000000e+00> : vector<1x128xf32>
    %137 = tpu.matmul %134, %136, %cst_153 {dimension_numbers = #tpu.dot_dimension_numbers<[1], [0], [0], [1], [0, 0, 1, 1], [], []>} : vector<1x128xf32>, vector<128x128xf32>, vector<1x128xf32> -> vector<1x128xf32>
    %138 = arith.addf %133, %137 : vector<1x128xf32>
    %c20 = arith.constant 20 : index
    %c0_154 = arith.constant 0 : index
    %139 = vector.load %arg10[%c20, %c0_154] : memref<40x128xf32, #tpu.memory_space<vmem>>, vector<1x128xf32>
    %c5_155 = arith.constant 5 : index
    %c0_156 = arith.constant 0 : index
    %c0_157 = arith.constant 0 : index
    %140 = vector.load %arg4[%c5_155, %c0_156, %c0_157] : memref<9x128x128xf32, #tpu.memory_space<vmem>>, vector<1x128x128xf32>
    %141 = vector.shape_cast %140 : vector<1x128x128xf32> to vector<128x128xf32>
    %cst_158 = arith.constant dense<0.000000e+00> : vector<1x128xf32>
    %142 = tpu.matmul %139, %141, %cst_158 {dimension_numbers = #tpu.dot_dimension_numbers<[1], [0], [0], [1], [0, 0, 1, 1], [], []>} : vector<1x128xf32>, vector<128x128xf32>, vector<1x128xf32> -> vector<1x128xf32>
    %143 = arith.addf %138, %142 : vector<1x128xf32>
    %c32 = arith.constant 32 : index
    %c0_159 = arith.constant 0 : index
    %144 = vector.load %arg10[%c32, %c0_159] : memref<40x128xf32, #tpu.memory_space<vmem>>, vector<1x128xf32>
    %c6_160 = arith.constant 6 : index
    %c0_161 = arith.constant 0 : index
    %c0_162 = arith.constant 0 : index
    %145 = vector.load %arg4[%c6_160, %c0_161, %c0_162] : memref<9x128x128xf32, #tpu.memory_space<vmem>>, vector<1x128x128xf32>
    %146 = vector.shape_cast %145 : vector<1x128x128xf32> to vector<128x128xf32>
    %cst_163 = arith.constant dense<0.000000e+00> : vector<1x128xf32>
    %147 = tpu.matmul %144, %146, %cst_163 {dimension_numbers = #tpu.dot_dimension_numbers<[1], [0], [0], [1], [0, 0, 1, 1], [], []>} : vector<1x128xf32>, vector<128x128xf32>, vector<1x128xf32> -> vector<1x128xf32>
    %148 = arith.addf %143, %147 : vector<1x128xf32>
    %c34 = arith.constant 34 : index
    %c0_164 = arith.constant 0 : index
    %149 = vector.load %arg10[%c34, %c0_164] : memref<40x128xf32, #tpu.memory_space<vmem>>, vector<1x128xf32>
    %c7_165 = arith.constant 7 : index
    %c0_166 = arith.constant 0 : index
    %c0_167 = arith.constant 0 : index
    %150 = vector.load %arg4[%c7_165, %c0_166, %c0_167] : memref<9x128x128xf32, #tpu.memory_space<vmem>>, vector<1x128x128xf32>
    %151 = vector.shape_cast %150 : vector<1x128x128xf32> to vector<128x128xf32>
    %cst_168 = arith.constant dense<0.000000e+00> : vector<1x128xf32>
    %152 = tpu.matmul %149, %151, %cst_168 {dimension_numbers = #tpu.dot_dimension_numbers<[1], [0], [0], [1], [0, 0, 1, 1], [], []>} : vector<1x128xf32>, vector<128x128xf32>, vector<1x128xf32> -> vector<1x128xf32>
    %153 = arith.addf %148, %152 : vector<1x128xf32>
    %c36 = arith.constant 36 : index
    %c0_169 = arith.constant 0 : index
    %154 = vector.load %arg10[%c36, %c0_169] : memref<40x128xf32, #tpu.memory_space<vmem>>, vector<1x128xf32>
    %c8_170 = arith.constant 8 : index
    %c0_171 = arith.constant 0 : index
    %c0_172 = arith.constant 0 : index
    %155 = vector.load %arg4[%c8_170, %c0_171, %c0_172] : memref<9x128x128xf32, #tpu.memory_space<vmem>>, vector<1x128x128xf32>
    %156 = vector.shape_cast %155 : vector<1x128x128xf32> to vector<128x128xf32>
    %cst_173 = arith.constant dense<0.000000e+00> : vector<1x128xf32>
    %157 = tpu.matmul %154, %156, %cst_173 {dimension_numbers = #tpu.dot_dimension_numbers<[1], [0], [0], [1], [0, 0, 1, 1], [], []>} : vector<1x128xf32>, vector<128x128xf32>, vector<1x128xf32> -> vector<1x128xf32>
    %158 = arith.addf %153, %157 : vector<1x128xf32>
    %c0_174 = arith.constant 0 : index
    %c0_175 = arith.constant 0 : index
    %159 = vector.load %arg7[%c0_174, %c0_175] : memref<1x128xf32, #tpu.memory_space<vmem>>, vector<1x128xf32>
    %160 = arith.addf %158, %159 : vector<1x128xf32>
    %cst_176 = arith.constant 0.000000e+00 : f32
    %161 = vector.broadcast %cst_176 : f32 to vector<1x128xf32>
    %162 = arith.maximumf %160, %161 : vector<1x128xf32>
    %163 = vector.shape_cast %162 : vector<1x128xf32> to vector<1x1x128xf32>
    %c0_177 = arith.constant 0 : index
    %c0_178 = arith.constant 0 : index
    %c0_179 = arith.constant 0 : index
    %164 = vector.load %arg8[%c0_177, %c0_178, %c0_179] : memref<1x1x128xf32, #tpu.memory_space<vmem>>, vector<1x1x128xf32>
    tpu.vector_store %arg8[%c0_177, %c0_178, %c0_179], %163 {strides = array<i32>} : memref<1x1x128xf32, #tpu.memory_space<vmem>>, vector<1x1x128xf32>,
    return
  }
  func.func @transform_0(%arg0: i32) -> (i32, i32, i32, i32) {
    %c0_i32 = arith.constant 0 : i32
    %c0_i32_0 = arith.constant 0 : i32
    %c0_i32_1 = arith.constant 0 : i32
    %c0_i32_2 = arith.constant 0 : i32
    return %arg0, %c0_i32, %c0_i32_0, %c0_i32_1 : i32, i32, i32, i32
  }
  func.func @transform_1(%arg0: i32) -> (i32, i32, i32) {
    %c0_i32 = arith.constant 0 : i32
    %c0_i32_0 = arith.constant 0 : i32
    %c0_i32_1 = arith.constant 0 : i32
    %c0_i32_2 = arith.constant 0 : i32
    return %c0_i32, %c0_i32_0, %c0_i32_1 : i32, i32, i32
  }
  func.func @transform_2(%arg0: i32) -> (i32, i32, i32) {
    %c0_i32 = arith.constant 0 : i32
    %c0_i32_0 = arith.constant 0 : i32
    %c0_i32_1 = arith.constant 0 : i32
    %c0_i32_2 = arith.constant 0 : i32
    return %c0_i32, %c0_i32_0, %c0_i32_1 : i32, i32, i32
  }
  func.func @transform_3(%arg0: i32) -> (i32, i32, i32) {
    %c0_i32 = arith.constant 0 : i32
    %c0_i32_0 = arith.constant 0 : i32
    %c0_i32_1 = arith.constant 0 : i32
    %c0_i32_2 = arith.constant 0 : i32
    return %c0_i32, %c0_i32_0, %c0_i32_1 : i32, i32, i32
  }
  func.func @transform_4(%arg0: i32) -> (i32, i32) {
    %c0_i32 = arith.constant 0 : i32
    %c0_i32_0 = arith.constant 0 : i32
    %c0_i32_1 = arith.constant 0 : i32
    return %c0_i32, %c0_i32_0 : i32, i32
  }
  func.func @transform_5(%arg0: i32) -> (i32, i32) {
    %c0_i32 = arith.constant 0 : i32
    %c0_i32_0 = arith.constant 0 : i32
    %c0_i32_1 = arith.constant 0 : i32
    return %c0_i32, %c0_i32_0 : i32, i32
  }
  func.func @transform_6(%arg0: i32) -> (i32, i32) {
    %c0_i32 = arith.constant 0 : i32
    %c0_i32_0 = arith.constant 0 : i32
    %c0_i32_1 = arith.constant 0 : i32
    return %c0_i32, %c0_i32_0 : i32, i32
  }
  func.func @transform_7(%arg0: i32) -> (i32, i32, i32) {
    %c0_i32 = arith.constant 0 : i32
    %c0_i32_0 = arith.constant 0 : i32
    %c0_i32_1 = arith.constant 0 : i32
    return %arg0, %c0_i32, %c0_i32_0 : i32, i32, i32
  }
}

</mosaic_0001>

<bundles_post_ra>
// kernel: conv3_forward.1
= control target key start
LH: loop header
LB: loop body
LE: loop exit
PB: predicated region body
PF: predicated region fallthrough
CT: control target
= control target key end

     0   :  { %12 = vsyncpa [#allocation5], 0  ;;  %s7788_s0 = inlined_call_operand.vmem [shape: f32[2,4,80,128], index: 0, kind: input, shape index: {}]   ;;  %s7789_s1 = inlined_call_operand.vmem [shape: f32[9,128,128], index: 1, kind: input, shape index: {}]   ;;  %s7790_s2 = inlined_call_operand.vmem [shape: f32[9,128,128], index: 2, kind: input, shape index: {}]   ;;  %s7791_s3 = inlined_call_operand.vmem [shape: f32[9,128,128], index: 3, kind: input, shape index: {}]   ;;  %s7792_s4 = inlined_call_operand.vmem [shape: f32[1,128], index: 4, kind: input, shape index: {}]   ;;  %s7793_s5 = inlined_call_operand.vmem [shape: f32[1,128], index: 5, kind: input, shape index: {}]   ;;  %s7794_s6 = inlined_call_operand.vmem [shape: f32[1,128], index: 6, kind: input, shape index: {}]   ;;  %s7795_s7 = inlined_call_operand.hbm [shape: f32[2,1,128], index: 7, kind: output, shape index: {}]  }
   0x1   :  { %14 = vsyncpa [#allocation5 + $0x1], 0  ;;  %s5742_s24 = smov 0   ;;  %s5744_s25 = smov 0  }
   0x2   :  { %s5746_s26 = smov 0   ;;  %s5748_s27 = smov 0  }
   0x3 LB: > { %s5763_s28 = sadd.s32 4294967295, %s5697_s27   ;;  %s3469_s29 = sadd.s32 4294967294, %s5697_s27   ;;  %s5697_s27 = sphi %s5748_s27, %s7816_s27   ;;  %s5693_s26 = sphi %s5746_s26, %s7815_s26   ;;  %s5689_s25 = sphi %s5744_s25, %s7814_s25   ;;  %s5685_s24 = sphi %s5742_s24, %s7813_s24  }
   0x4   : > { %s5767_s30 = sadd.s32 1, %s5697_s27   ;;  %s179_s8 = sadd.s32 1, %s5693_s26 }
   0x5   : > { %s176_s9 = ssub.s32 %s5697_s27, %s5767_s30  ;;  %p189_p0 = scmp.ne.s32.totalorder %s5693_s26, %s5689_s25 }
   0x6   : > { %p177_p1 = scmp.eq.s32.totalorder %s176_s9, 0  ;;  %p190_p2 = scmp.eq.s32.totalorder %s5763_s28, 1 }
   0x7   : > { %p195_p3 = scmp.ne.s32.totalorder %s5689_s25, %s5685_s24  ;;  %p196_p4 = scmp.eq.s32.totalorder %s3469_s29, 1 }
   0x8   : > { %s5778_s10 = scalar_select %p177_p1, %s5693_s26, %s179_s8  }
   0x9   : > { %p5780_p5 = por %p190_p2, %p189_p0  ;;  %p5784_p6 = por %p196_p4, %p195_p3 }
   0xa   : > { %p3472_p7 = scmp.ge.s32.totalorder %s5697_s27, 1  ;;  %p240_p8 = scmp.lt.s32.totalorder %s5697_s27, 3 }
   0xc   : > { %p241_p9 = pnand %p3472_p7, %p240_p8 }
   0xe   : > { %244 = sbr.rel (%p241_p9) target bundleno = 1121 (0x461), region = 48 }
  0x13   : > { %v3497_v0 = vld [vmem:[%s7789_s1 + $0xf8] sm:$0xff]  ;;  %v3496_v2 = vld [vmem:[%s7789_s1 + $0xf0] sm:$0xff]  ;;  %v3495_v4 = vld [vmem:[%s7789_s1 + $0xe8] sm:$0xff]  ;;  %p271_p10 = scmp.lt.s32.totalorder %s5763_s28, 1  ;;  %vm5700_vm0 = vmmov 0   ;;  %s269_s20 = sand.u32 1, %s5689_s25  }
  0x14   : > { %v299_v1 = vld [vmem:[%s7789_s1 + $0x78] sm:$0xff]  ;;  %4461 = vmatprep.subr.mxu0 %v3497_v0  ;;  %v298_v3 = vld [vmem:[%s7789_s1 + $0x70] sm:$0xff]  ;;  %v297_v5 = vld [vmem:[%s7789_s1 + $0x68] sm:$0xff]  ;;  %s3900_s8 = sshll.u32 %s5763_s28, 4  ;;  %s270_s9 = scalar_lea.vmem [#allocation4], %s269_s20 }
  0x15   : > { %4505 = vmatprep.subr.mxu1 %v299_v1  ;;  %4462 = vmatpush3.msra.mxu0 %v3497_v0  ;;  %v3494_v6 = vld [vmem:[%s7789_s1 + $0xe0] sm:$0xff]  ;;  %v3493_v8 = vld [vmem:[%s7789_s1 + $0xd8] sm:$0xff]  ;;  %v3492_v10 = vld [vmem:[%s7789_s1 + $0xd0] sm:$0xff]  ;;  %s272_s15 = scalar_select %p271_p10, %s5763_s28, 1 }
  0x16   : > { %4506 = vmatpush3.msra.mxu1 %v299_v1  ;;  %4463 = vmatprep.subr.mxu0 %v3496_v2  ;;  %v296_v7 = vld [vmem:[%s7789_s1 + $0x60] sm:$0xff]  ;;  %v295_v9 = vld [vmem:[%s7789_s1 + $0x58] sm:$0xff]  ;;  %v294_v11 = vld [vmem:[%s7789_s1 + $0x50] sm:$0xff]  ;;  %s3412_s16 = scalar_lea.hbm %s7795_s7, %s3900_s8  ;;  %s3402_s17 = scalar_lea.sflag [#allocation5], %s269_s20 }
  0x17   : > { %4507 = vmatprep.subr.mxu1 %v298_v3  ;;  %4464 = vmatpush3.msra.mxu0 %v3496_v2  ;;  %v3491_v12 = vld [vmem:[%s7789_s1 + $0xc8] sm:$0xff]  ;;  %v3490_v14 = vld [vmem:[%s7789_s1 + $0xc0] sm:$0xff]  ;;  %v3489_v16 = vld [vmem:[%s7789_s1 + $0xb8] sm:$0xff]  ;;  %s5595_s29 = smul.u32 320, %s272_s15  ;;  %s5701_s18 = smov [#allocation4]  }
  0x18   : > { %4508 = vmatpush3.msra.mxu1 %v298_v3  ;;  %4465 = vmatprep.subr.mxu0 %v3495_v4  ;;  %v293_v13 = vld [vmem:[%s7789_s1 + $0x48] sm:$0xff]  ;;  %v292_v15 = vld [vmem:[%s7789_s1 + $0x40] sm:$0xff]  ;;  %v291_v17 = vld [vmem:[%s7789_s1 + $0x38] sm:$0xff] }
  0x19   : > { %4509 = vmatprep.subr.mxu1 %v297_v5  ;;  %4466 = vmatpush3.msra.mxu0 %v3495_v4  ;;  %v3488_v18 = vld [vmem:[%s7789_s1 + $0xb0] sm:$0xff]  ;;  %v3487_v20 = vld [vmem:[%s7789_s1 + $0xa8] sm:$0xff]  ;;  %v3486_v22 = vld [vmem:[%s7789_s1 + $0xa0] sm:$0xff]  ;;  %s5885_s21 = scalar_lea.vmem %s7788_s0, %s5595_s29  ;;  %s3414_s29 = sshll.u32 %s270_s9, 4  ;;  %s3415_s29 = int_to_ptr.vmem [resolvable:$true] %s3414_s29 }
  0x1a   : > { %4510 = vmatpush3.msra.mxu1 %v297_v5  ;;  %4467 = vmatprep.subr.mxu0 %v3494_v6  ;;  %v290_v19 = vld [vmem:[%s7789_s1 + $0x30] sm:$0xff]  ;;  %v289_v21 = vld [vmem:[%s7789_s1 + $0x28] sm:$0xff]  ;;  %v288_v23 = vld [vmem:[%s7789_s1 + $0x20] sm:$0xff]  ;;  %s5637_s15 = scalar_lea.vmem %s3415_s29, 16 }
  0x1b   : > { %4511 = vmatprep.subr.mxu1 %v296_v7  ;;  %4468 = vmatpush3.msra.mxu0 %v3494_v6  ;;  %v3485_v24 = vld [vmem:[%s7789_s1 + $0x98] sm:$0xff]  ;;  %v3484_v26 = vld [vmem:[%s7789_s1 + $0x90] sm:$0xff]  ;;  %v3483_v28 = vld [vmem:[%s7789_s1 + $0x88] sm:$0xff]  ;;  %p5638_p11 = scmp.ne.s32.totalorder %s3415_s29, %s5637_s15 }
  0x1c   : > { %4512 = vmatpush3.msra.mxu1 %v296_v7  ;;  %4469 = vmatprep.subr.mxu0 %v3493_v8  ;;  %v287_v25 = vld [vmem:[%s7789_s1 + $0x18] sm:$0xff]  ;;  %v286_v27 = vld [vmem:[%s7789_s1 + $0x10] sm:$0xff]  ;;  %v285_v29 = vld [vmem:[%s7789_s1 + $0x8] sm:$0xff] }
  0x1d   : > { %4513 = vmatprep.subr.mxu1 %v295_v9  ;;  %4470 = vmatpush3.msra.mxu0 %v3493_v8  ;;  %v3482_v30 = vld [vmem:[%s7789_s1 + $0x80] sm:$0xff]  ;;  %v3474_v32 = vld [vmem:[%s5885_s21 + $0x50] sm:$0xff]  ;;  %v5896_v34 = vld [vmem:[%s5885_s21 + $0x58] sm:$0xff]  ;;  %p5639_p12 = pnand %p5638_p11, %p5780_p5 }
  0x1e   : > { %4514 = vmatpush3.msra.mxu1 %v295_v9  ;;  %4471 = vmatprep.subr.mxu0 %v3492_v10  ;;  %v284_v31 = vld [vmem:[%s7789_s1] sm:$0xff]  ;;  %v5899_v35 = vld [vmem:[%s5885_s21 + $0x8] sm:$0xff]  ;;  %v3513_v36 = vld [vmem:[%s7789_s1 + $0x178] sm:$0xff] }
  0x1f   : > { %4515 = vmatprep.subr.mxu1 %v294_v11  ;;  %4472 = vmatpush3.msra.mxu0 %v3492_v10  ;;  %v276_v33 = vld [vmem:[%s5885_s21] sm:$0xff]  ;;  %v3537_v37 = vld [vmem:[%s7789_s1 + $0x1f8] sm:$0xff]  ;;  %v3512_v38 = vld [vmem:[%s7789_s1 + $0x170] sm:$0xff]  ;;  %p5640_p13 = pneg %p5639_p12 }
  0x20   : > { %4516 = vmatpush3.msra.mxu1 %v294_v11  ;;  %4473 = vmatprep.subr.mxu0 %v3491_v12  ;;  %v3536_v39 = vld [vmem:[%s7789_s1 + $0x1f0] sm:$0xff]  ;;  %v3511_v40 = vld [vmem:[%s7789_s1 + $0x168] sm:$0xff]  ;;  %v3510_v42 = vld [vmem:[%s7789_s1 + $0x160] sm:$0xff] }
  0x21   : > { %4517 = vmatprep.subr.mxu1 %v293_v13  ;;  %4474 = vmatpush3.msra.mxu0 %v3491_v12  ;;  %v3535_v41 = vld [vmem:[%s7789_s1 + $0x1e8] sm:$0xff]  ;;  %v3534_v43 = vld [vmem:[%s7789_s1 + $0x1e0] sm:$0xff]  ;;  %v3509_v44 = vld [vmem:[%s7789_s1 + $0x158] sm:$0xff] }
  0x22   : > { %4518 = vmatpush3.msra.mxu1 %v293_v13  ;;  %4475 = vmatprep.subr.mxu0 %v3490_v14  ;;  %v3533_v45 = vld [vmem:[%s7789_s1 + $0x1d8] sm:$0xff]  ;;  %v3508_v46 = vld [vmem:[%s7789_s1 + $0x150] sm:$0xff]  ;;  %v3507_v48 = vld [vmem:[%s7789_s1 + $0x148] sm:$0xff] }
  0x23   : > { %4519 = vmatprep.subr.mxu1 %v292_v15  ;;  %4476 = vmatpush3.msra.mxu0 %v3490_v14  ;;  %v3532_v47 = vld [vmem:[%s7789_s1 + $0x1d0] sm:$0xff]  ;;  %v3531_v49 = vld [vmem:[%s7789_s1 + $0x1c8] sm:$0xff]  ;;  %v3506_v50 = vld [vmem:[%s7789_s1 + $0x140] sm:$0xff] }
  0x24   : > { %4520 = vmatpush3.msra.mxu1 %v292_v15  ;;  %4477 = vmatprep.subr.mxu0 %v3489_v16  ;;  %v3530_v51 = vld [vmem:[%s7789_s1 + $0x1c0] sm:$0xff]  ;;  %v3505_v52 = vld [vmem:[%s7789_s1 + $0x138] sm:$0xff]  ;;  %v5958_v54 = vld [vmem:[%s5885_s21 + $0x10] sm:$0xff] }
  0x25   : > { %4521 = vmatprep.subr.mxu1 %v291_v17  ;;  %4478 = vmatpush3.msra.mxu0 %v3489_v16  ;;  %v5955_v53 = vld [vmem:[%s5885_s21 + $0x60] sm:$0xff]  ;;  %v3504_v55 = vld [vmem:[%s7789_s1 + $0x130] sm:$0xff]  ;;  %v3529_v56 = vld [vmem:[%s7789_s1 + $0x1b8] sm:$0xff] }
  0x26   : > { %4522 = vmatpush3.msra.mxu1 %v291_v17  ;;  %4479 = vmatprep.subr.mxu0 %v3488_v18  ;;  %v5968_v57 = vld [vmem:[%s5885_s21 + $0x68] sm:$0xff]  ;;  %v5971_v58 = vld [vmem:[%s5885_s21 + $0x18] sm:$0xff]  ;;  %v3528_v60 = vld [vmem:[%s7789_s1 + $0x1b0] sm:$0xff] }
  0x27   : > { %4523 = vmatprep.subr.mxu1 %v290_v19  ;;  %4480 = vmatpush3.msra.mxu0 %v3488_v18  ;;  %v3503_v59 = vld [vmem:[%s7789_s1 + $0x128] sm:$0xff]  ;;  %v5983_v61 = vld [vmem:[%s5885_s21 + $0x70] sm:$0xff]  ;;  %v5986_v62 = vld [vmem:[%s5885_s21 + $0x20] sm:$0xff] }
  0x28   : > { %4524 = vmatpush3.msra.mxu1 %v290_v19  ;;  %4481 = vmatprep.subr.mxu0 %v3487_v20  ;;  %v3502_v63 = vld [vmem:[%s7789_s1 + $0x120] sm:$0xff]  ;;  %v3527_v0 = vld [vmem:[%s7789_s1 + $0x1a8] sm:$0xff]  ;;  %v5995_v1 = vld [vmem:[%s5885_s21 + $0x78] sm:$0xff] }
  0x29   : > { %4525 = vmatprep.subr.mxu1 %v289_v21  ;;  %4482 = vmatpush3.msra.mxu0 %v3487_v20  ;;  %v5998_v2 = vld [vmem:[%s5885_s21 + $0x28] sm:$0xff]  ;;  %v3501_v3 = vld [vmem:[%s7789_s1 + $0x118] sm:$0xff]  ;;  %v3526_v4 = vld [vmem:[%s7789_s1 + $0x1a0] sm:$0xff] }
  0x2a   : > { %4526 = vmatpush3.msra.mxu1 %v289_v21  ;;  %4483 = vmatprep.subr.mxu0 %v3486_v22  ;;  %v6011_v5 = vld [vmem:[%s5885_s21 + $0x80] sm:$0xff]  ;;  %v6014_v6 = vld [vmem:[%s5885_s21 + $0x30] sm:$0xff]  ;;  %v3525_v8 = vld [vmem:[%s7789_s1 + $0x198] sm:$0xff] }
  0x2b   : > { %4527 = vmatprep.subr.mxu1 %v288_v23  ;;  %4484 = vmatpush3.msra.mxu0 %v3486_v22  ;;  %v3500_v7 = vld [vmem:[%s7789_s1 + $0x110] sm:$0xff]  ;;  %v6023_v9 = vld [vmem:[%s5885_s21 + $0x88] sm:$0xff]  ;;  %v6026_v10 = vld [vmem:[%s5885_s21 + $0x38] sm:$0xff] }
  0x2c   : > { %4528 = vmatpush3.msra.mxu1 %v288_v23  ;;  %4485 = vmatprep.subr.mxu0 %v3485_v24  ;;  %v3499_v11 = vld [vmem:[%s7789_s1 + $0x108] sm:$0xff]  ;;  %v3524_v12 = vld [vmem:[%s7789_s1 + $0x190] sm:$0xff]  ;;  %v3498_v13 = vld [vmem:[%s7789_s1 + $0x100] sm:$0xff] }
  0x2d   : > { %4529 = vmatprep.subr.mxu1 %v287_v25  ;;  %4486 = vmatpush3.msra.mxu0 %v3485_v24  ;;  %v3523_v14 = vld [vmem:[%s7789_s1 + $0x188] sm:$0xff]  ;;  %v3522_v17 = vld [vmem:[%s7789_s1 + $0x180] sm:$0xff]  ;;  %v3561_v18 = vld [vmem:[%s7789_s1 + $0x278] sm:$0xff] }
  0x2e   : > { %4530 = vmatpush3.msra.mxu1 %v287_v25  ;;  %4487 = vmatprep.subr.mxu0 %v3484_v26  ;;  %v536_v15 = vld [vmem:[%s5885_s21 + $0x1] sm:$0xff]  ;;  %v6046_v16 = vld [vmem:[%s5885_s21 + $0x9] sm:$0xff]  ;;  %v3585_v22 = vld [vmem:[%s7789_s1 + $0x2f8] sm:$0xff] }
  0x2f   : > { %4531 = vmatprep.subr.mxu1 %v286_v27  ;;  %4488 = vmatpush3.msra.mxu0 %v3484_v26  ;;  %v3514_v19 = vld [vmem:[%s5885_s21 + $0xa0] sm:$0xff]  ;;  %v3515_v20 = vld [vmem:[%s5885_s21 + $0xa8] sm:$0xff]  ;;  %v3560_v21 = vld [vmem:[%s7789_s1 + $0x270] sm:$0xff] }
  0x30   : > { %4532 = vmatpush3.msra.mxu1 %v286_v27  ;;  %4489 = vmatprep.subr.mxu0 %v3483_v28  ;;  %v6064_v23 = vld [vmem:[%s5885_s21 + $0x11] sm:$0xff]  ;;  %v6067_v24 = vld [vmem:[%s5885_s21 + $0x19] sm:$0xff]  ;;  %v3559_v25 = vld [vmem:[%s7789_s1 + $0x268] sm:$0xff] }
  0x31   : > { %4533 = vmatprep.subr.mxu1 %v285_v29  ;;  %4490 = vmatpush3.msra.mxu0 %v3483_v28  ;;  %v3584_v26 = vld [vmem:[%s7789_s1 + $0x2f0] sm:$0xff]  ;;  %v3558_v28 = vld [vmem:[%s7789_s1 + $0x260] sm:$0xff] }
  0x32   : > { %4534 = vmatpush3.msra.mxu1 %v285_v29  ;;  %4491 = vmatprep.subr.mxu0 %v3482_v30  ;;  %v3516_v27 = vld [vmem:[%s5885_s21 + $0xb0] sm:$0xff]  ;;  %v3517_v29 = vld [vmem:[%s5885_s21 + $0xb8] sm:$0xff] }
  0x33   : > { %4535 = vmatprep.subr.mxu1 %v284_v31  ;;  %4492 = vmatpush3.msra.mxu0 %v3482_v30  ;;  %v3583_v30 = vld [vmem:[%s7789_s1 + $0x2e8] sm:$0xff] }
  0x34   : > { %4493 = vmatprep.mubr.f32.mxu0 %v3474_v32  ;;  %4536 = vmatpush3.msra.mxu1 %v284_v31  ;;  %v6086_v31 = vld [vmem:[%s5885_s21 + $0x21] sm:$0xff]  ;;  %v6089_v32 = vld [vmem:[%s5885_s21 + $0x29] sm:$0xff] }
  0x35   : > { %4537 = vmatprep.mubr.f32.mxu1 %v276_v33  ;;  %4494 = vmatmul.mubr.f32.vlgmr.msra.gmra.mxu0 %v5896_v34  ;;  %v3557_v33 = vld [vmem:[%s7789_s1 + $0x258] sm:$0xff] }
  0x36   : > { %4538 = vmatmul.mubr.f32.vlgmr.msra.gmra.mxu1 %v5899_v35  ;;  %4549 = vmatprep.subr.mxu0 %v3513_v36 }
  0x37   : > { %4593 = vmatprep.subr.mxu1 %v3537_v37  ;;  %4550 = vmatpush3.msra.mxu0 %v3513_v36  ;;  %v3582_v36 = vld [vmem:[%s7789_s1 + $0x2e0] sm:$0xff] }
  0x38   : > { %4594 = vmatpush3.msra.mxu1 %v3537_v37  ;;  %4551 = vmatprep.subr.mxu0 %v3512_v38  ;;  %v3518_v37 = vld [vmem:[%s5885_s21 + $0xc0] sm:$0xff] }
  0x39   : > { %4595 = vmatprep.subr.mxu1 %v3536_v39  ;;  %4552 = vmatpush3.msra.mxu0 %v3512_v38  ;;  %v3556_v38 = vld [vmem:[%s7789_s1 + $0x250] sm:$0xff] }
  0x3a   : > { %4596 = vmatpush3.msra.mxu1 %v3536_v39  ;;  %4553 = vmatprep.subr.mxu0 %v3511_v40  ;;  %v3519_v39 = vld [vmem:[%s5885_s21 + $0xc8] sm:$0xff] }
  0x3b   : > { %4597 = vmatprep.subr.mxu1 %v3535_v41  ;;  %4554 = vmatpush3.msra.mxu0 %v3511_v40  ;;  %v3581_v40 = vld [vmem:[%s7789_s1 + $0x2d8] sm:$0xff] }
  0x3c   : > { %4598 = vmatpush3.msra.mxu1 %v3535_v41  ;;  %4555 = vmatprep.subr.mxu0 %v3510_v42  ;;  %v6108_v41 = vld [vmem:[%s5885_s21 + $0x31] sm:$0xff] }
  0x3d   : > { %4599 = vmatprep.subr.mxu1 %v3534_v43  ;;  %4556 = vmatpush3.msra.mxu0 %v3510_v42  ;;  %v6111_v42 = vld [vmem:[%s5885_s21 + $0x39] sm:$0xff] }
  0x3e   : > { %4600 = vmatpush3.msra.mxu1 %v3534_v43  ;;  %4557 = vmatprep.subr.mxu0 %v3509_v44  ;;  %v3555_v43 = vld [vmem:[%s7789_s1 + $0x248] sm:$0xff] }
  0x3f   : > { %4601 = vmatprep.subr.mxu1 %v3533_v45  ;;  %4558 = vmatpush3.msra.mxu0 %v3509_v44  ;;  %v3580_v44 = vld [vmem:[%s7789_s1 + $0x2d0] sm:$0xff] }
  0x40   : > { %4602 = vmatpush3.msra.mxu1 %v3533_v45  ;;  %4559 = vmatprep.subr.mxu0 %v3508_v46  ;;  %v3520_v45 = vld [vmem:[%s5885_s21 + $0xd0] sm:$0xff] }
  0x41   : > { %4603 = vmatprep.subr.mxu1 %v3532_v47  ;;  %4560 = vmatpush3.msra.mxu0 %v3508_v46  ;;  %v3554_v46 = vld [vmem:[%s7789_s1 + $0x240] sm:$0xff] }
  0x42   : > { %4604 = vmatpush3.msra.mxu1 %v3532_v47  ;;  %4561 = vmatprep.subr.mxu0 %v3507_v48  ;;  %v3521_v47 = vld [vmem:[%s5885_s21 + $0xd8] sm:$0xff] }
  0x43   : > { %4605 = vmatprep.subr.mxu1 %v3531_v49  ;;  %4562 = vmatpush3.msra.mxu0 %v3507_v48  ;;  %v3579_v48 = vld [vmem:[%s7789_s1 + $0x2c8] sm:$0xff] }
  0x44   : > { %4606 = vmatpush3.msra.mxu1 %v3531_v49  ;;  %4563 = vmatprep.subr.mxu0 %v3506_v50  ;;  %v3553_v49 = vld [vmem:[%s7789_s1 + $0x238] sm:$0xff] }
  0x45   : > { %4607 = vmatprep.subr.mxu1 %v3530_v51  ;;  %4564 = vmatpush3.msra.mxu0 %v3506_v50  ;;  %v3578_v50 = vld [vmem:[%s7789_s1 + $0x2c0] sm:$0xff] }
  0x46   : > { %4608 = vmatpush3.msra.mxu1 %v3530_v51  ;;  %4565 = vmatprep.subr.mxu0 %v3505_v52  ;;  %v3552_v51 = vld [vmem:[%s7789_s1 + $0x230] sm:$0xff] }
  0x47   : > { %4496 = vmatprep.mubr.f32.mxu0 %v5955_v53  ;;  %4566 = vmatpush3.msra.mxu0 %v3505_v52  ;;  %v3577_v52 = vld [vmem:[%s7789_s1 + $0x2b8] sm:$0xff] }
  0x48   : > { %4540 = vmatprep.mubr.f32.mxu1 %v5958_v54  ;;  %4567 = vmatprep.subr.mxu0 %v3504_v55 }
  0x49   : > { %4609 = vmatprep.subr.mxu1 %v3529_v56  ;;  %4497 = vmatmul.mubr.f32.gmra.mxu0 %v5968_v57 }
  0x4a   : > { %4541 = vmatmul.mubr.f32.gmra.mxu1 %v5971_v58  ;;  %4568 = vmatpush3.msra.mxu0 %v3504_v55  ;;  %v3551_v55 = vld [vmem:[%s7789_s1 + $0x228] sm:$0xff] }
  0x4b   : > { %4610 = vmatpush3.msra.mxu1 %v3529_v56  ;;  %4569 = vmatprep.subr.mxu0 %v3503_v59  ;;  %v3576_v56 = vld [vmem:[%s7789_s1 + $0x2b0] sm:$0xff] }
  0x4c   : > { %4611 = vmatprep.subr.mxu1 %v3528_v60  ;;  %4570 = vmatpush3.msra.mxu0 %v3503_v59  ;;  %v3550_v59 = vld [vmem:[%s7789_s1 + $0x220] sm:$0xff] }
  0x4d   : > { %4612 = vmatpush3.msra.mxu1 %v3528_v60  ;;  %4499 = vmatprep.mubr.f32.mxu0 %v5983_v61  ;;  %v3575_v60 = vld [vmem:[%s7789_s1 + $0x2a8] sm:$0xff] }
  0x4e   : > { %4543 = vmatprep.mubr.f32.mxu1 %v5986_v62  ;;  %4571 = vmatprep.subr.mxu0 %v3502_v63 }
  0x4f   : > { %4613 = vmatprep.subr.mxu1 %v3527_v0  ;;  %4500 = vmatmul.mubr.f32.gmra.mxu0 %v5995_v1 }
  0x50   : > { %4544 = vmatmul.mubr.f32.gmra.mxu1 %v5998_v2  ;;  %4572 = vmatpush3.msra.mxu0 %v3502_v63  ;;  %v3549_v63 = vld [vmem:[%s7789_s1 + $0x218] sm:$0xff] }
  0x51   : > { %4614 = vmatpush3.msra.mxu1 %v3527_v0  ;;  %4573 = vmatprep.subr.mxu0 %v3501_v3  ;;  %v3574_v0 = vld [vmem:[%s7789_s1 + $0x2a0] sm:$0xff] }
  0x52   : > { %4615 = vmatprep.subr.mxu1 %v3526_v4  ;;  %4574 = vmatpush3.msra.mxu0 %v3501_v3  ;;  %v3548_v3 = vld [vmem:[%s7789_s1 + $0x210] sm:$0xff] }
  0x53   : > { %4616 = vmatpush3.msra.mxu1 %v3526_v4  ;;  %4502 = vmatprep.mubr.f32.mxu0 %v6011_v5  ;;  %v3573_v4 = vld [vmem:[%s7789_s1 + $0x298] sm:$0xff] }
  0x54   : > { %4546 = vmatprep.mubr.f32.mxu1 %v6014_v6  ;;  %4575 = vmatprep.subr.mxu0 %v3500_v7 }
  0x55   : > { %4617 = vmatprep.subr.mxu1 %v3525_v8  ;;  %4503 = vmatmul.mubr.f32.gmra.mxu0 %v6023_v9 }
  0x56   : > { %4547 = vmatmul.mubr.f32.gmra.mxu1 %v6026_v10  ;;  %4576 = vmatpush3.msra.mxu0 %v3500_v7  ;;  %v3547_v7 = vld [vmem:[%s7789_s1 + $0x208] sm:$0xff] }
  0x57   : > { %4618 = vmatpush3.msra.mxu1 %v3525_v8  ;;  %4577 = vmatprep.subr.mxu0 %v3499_v11  ;;  %v3572_v8 = vld [vmem:[%s7789_s1 + $0x290] sm:$0xff] }
  0x58   : > { %4619 = vmatprep.subr.mxu1 %v3524_v12  ;;  %4578 = vmatpush3.msra.mxu0 %v3499_v11  ;;  %v3546_v11 = vld [vmem:[%s7789_s1 + $0x200] sm:$0xff] }
  0x59   : > { %4620 = vmatpush3.msra.mxu1 %v3524_v12  ;;  %4579 = vmatprep.subr.mxu0 %v3498_v13  ;;  %v3571_v12 = vld [vmem:[%s7789_s1 + $0x288] sm:$0xff] }
  0x5a   : > { %4621 = vmatprep.subr.mxu1 %v3523_v14  ;;  %4580 = vmatpush3.msra.mxu0 %v3498_v13  ;;  %v3538_v13 = vld [vmem:[%s5885_s21 + $0xf0] sm:$0xff] }
  0x5b   : > { %4581 = vmatprep.mubr.f32.mxu0 %v536_v15  ;;  %4622 = vmatpush3.msra.mxu1 %v3523_v14  ;;  %v3539_v14 = vld [vmem:[%s5885_s21 + $0xf8] sm:$0xff]  ;;  %v3570_v15 = vld [vmem:[%s7789_s1 + $0x280] sm:$0xff] }
  0x5c   : > { %4582 = vmatmul.mubr.f32.vlgmr.msra.gmra.mxu0 %v6046_v16  ;;  %4623 = vmatprep.subr.mxu1 %v3522_v17 }
  0x5d   : > { %4637 = vmatprep.subr.mxu0 %v3561_v18  ;;  %4624 = vmatpush3.msra.mxu1 %v3522_v17  ;;  %v3601_v17 = vld [vmem:[%s7789_s1 + $0x378] sm:$0xff] }
  0x5e   : > { %4625 = vmatprep.mubr.f32.mxu1 %v3514_v19  ;;  %4638 = vmatpush3.msra.mxu0 %v3561_v18  ;;  %v3562_v18 = vld [vmem:[%s5885_s21 + $0xa1] sm:$0xff]  ;;  %v3563_v19 = vld [vmem:[%s5885_s21 + $0xa9] sm:$0xff] }
  0x5f   : > { %4626 = vmatmul.mubr.f32.vlgmr.msra.gmra.mxu1 %v3515_v20  ;;  %4639 = vmatprep.subr.mxu0 %v3560_v21  ;;  %v3600_v20 = vld [vmem:[%s7789_s1 + $0x370] sm:$0xff] }
  0x60   : > { %4681 = vmatprep.subr.mxu1 %v3585_v22  ;;  %4584 = vmatprep.mubr.f32.mxu0 %v6064_v23 }
  0x61   : > { %4640 = vmatpush3.msra.mxu0 %v3560_v21  ;;  %4682 = vmatpush3.msra.mxu1 %v3585_v22  ;;  %v3625_v21 = vld [vmem:[%s7789_s1 + $0x3f8] sm:$0xff]  ;;  %v3540_v22 = vld [vmem:[%s5885_s21 + $0x100] sm:$0xff] }
  0x62   : > { %4585 = vmatmul.mubr.f32.gmra.mxu0 %v6067_v24  ;;  %4641 = vmatprep.subr.mxu0 %v3559_v25 }
  0x63   : > { %4683 = vmatprep.subr.mxu1 %v3584_v26  ;;  %4628 = vmatprep.mubr.f32.mxu1 %v3516_v27  ;;  %v3624_v27 = vld [vmem:[%s7789_s1 + $0x3f0] sm:$0xff] }
  0x64   : > { %4642 = vmatpush3.msra.mxu0 %v3559_v25  ;;  %4684 = vmatpush3.msra.mxu1 %v3584_v26  ;;  %v3541_v25 = vld [vmem:[%s5885_s21 + $0x108] sm:$0xff] }
  0x65   : > { %4643 = vmatprep.subr.mxu0 %v3558_v28  ;;  %4629 = vmatmul.mubr.f32.gmra.mxu1 %v3517_v29  ;;  %v3599_v26 = vld [vmem:[%s7789_s1 + $0x368] sm:$0xff]  ;;  %v3598_v29 = vld [vmem:[%s7789_s1 + $0x360] sm:$0xff] }
  0x66   : > { %4685 = vmatprep.subr.mxu1 %v3583_v30  ;;  %4587 = vmatprep.mubr.f32.mxu0 %v6086_v31 }
  0x67   : > { %4644 = vmatpush3.msra.mxu0 %v3558_v28  ;;  %4686 = vmatpush3.msra.mxu1 %v3583_v30  ;;  %v3564_v28 = vld [vmem:[%s5885_s21 + $0xb1] sm:$0xff]  ;;  %v3565_v30 = vld [vmem:[%s5885_s21 + $0xb9] sm:$0xff] }
  0x68   : > { %4588 = vmatmul.mubr.f32.gmra.mxu0 %v6089_v32  ;;  %4645 = vmatprep.subr.mxu0 %v3557_v33 }
  0x69   : > { %4687 = vmatprep.subr.mxu1 %v3582_v36  ;;  %4631 = vmatprep.mubr.f32.mxu1 %v3518_v37  ;;  %v3543_v37 = vld [vmem:[%s5885_s21 + $0x118] sm:$0xff] }
  0x6a   : > { %4646 = vmatpush3.msra.mxu0 %v3557_v33  ;;  %4688 = vmatpush3.msra.mxu1 %v3582_v36  ;;  %v3623_v33 = vld [vmem:[%s7789_s1 + $0x3e8] sm:$0xff]  ;;  %v3542_v36 = vld [vmem:[%s5885_s21 + $0x110] sm:$0xff] }
  0x6b   : > { %4647 = vmatprep.subr.mxu0 %v3556_v38  ;;  %4632 = vmatmul.mubr.f32.gmra.mxu1 %v3519_v39  ;;  %v3622_v39 = vld [vmem:[%s7789_s1 + $0x3e0] sm:$0xff] }
  0x6c   : > { %4689 = vmatprep.subr.mxu1 %v3581_v40  ;;  %4590 = vmatprep.mubr.f32.mxu0 %v6108_v41 }
  0x6d   : > { %4648 = vmatpush3.msra.mxu0 %v3556_v38  ;;  %4690 = vmatpush3.msra.mxu1 %v3581_v40  ;;  %v3597_v38 = vld [vmem:[%s7789_s1 + $0x358] sm:$0xff]  ;;  %v3566_v40 = vld [vmem:[%s5885_s21 + $0xc1] sm:$0xff] }
  0x6e   : > { %4591 = vmatmul.mubr.f32.gmra.mxu0 %v6111_v42  ;;  %4649 = vmatprep.subr.mxu0 %v3555_v43 }
  0x6f   : > { %4691 = vmatprep.subr.mxu1 %v3580_v44  ;;  %4634 = vmatprep.mubr.f32.mxu1 %v3520_v45  ;;  %v3621_v45 = vld [vmem:[%s7789_s1 + $0x3d8] sm:$0xff] }
  0x70   : > { %4650 = vmatpush3.msra.mxu0 %v3555_v43  ;;  %4692 = vmatpush3.msra.mxu1 %v3580_v44  ;;  %v3596_v43 = vld [vmem:[%s7789_s1 + $0x350] sm:$0xff] }
  0x71   : > { %4651 = vmatprep.subr.mxu0 %v3554_v46  ;;  %4635 = vmatmul.mubr.f32.gmra.mxu1 %v3521_v47  ;;  %v3567_v44 = vld [vmem:[%s5885_s21 + $0xc9] sm:$0xff] }
  0x72   : > { %4693 = vmatprep.subr.mxu1 %v3579_v48  ;;  %4652 = vmatpush3.msra.mxu0 %v3554_v46  ;;  %v3544_v46 = vld [vmem:[%s5885_s21 + $0x120] sm:$0xff]  ;;  %v3545_v47 = vld [vmem:[%s5885_s21 + $0x128] sm:$0xff] }
  0x73   : > { %4694 = vmatpush3.msra.mxu1 %v3579_v48  ;;  %4653 = vmatprep.subr.mxu0 %v3553_v49  ;;  %v3595_v48 = vld [vmem:[%s7789_s1 + $0x348] sm:$0xff] }
  0x74   : > { %4695 = vmatprep.subr.mxu1 %v3578_v50  ;;  %4654 = vmatpush3.msra.mxu0 %v3553_v49  ;;  %v3620_v49 = vld [vmem:[%s7789_s1 + $0x3d0] sm:$0xff] }
  0x75   : > { %4696 = vmatpush3.msra.mxu1 %v3578_v50  ;;  %4655 = vmatprep.subr.mxu0 %v3552_v51  ;;  %v3568_v50 = vld [vmem:[%s5885_s21 + $0xd1] sm:$0xff] }
  0x76   : > { %4697 = vmatprep.subr.mxu1 %v3577_v52  ;;  %4656 = vmatpush3.msra.mxu0 %v3552_v51  ;;  %v3594_v51 = vld [vmem:[%s7789_s1 + $0x340] sm:$0xff] }
  0x77   : > { %4698 = vmatpush3.msra.mxu1 %v3577_v52  ;;  %4657 = vmatprep.subr.mxu0 %v3551_v55  ;;  %v3569_v52 = vld [vmem:[%s5885_s21 + $0xd9] sm:$0xff] }
  0x78   : > { %4699 = vmatprep.subr.mxu1 %v3576_v56  ;;  %4658 = vmatpush3.msra.mxu0 %v3551_v55  ;;  %v3619_v55 = vld [vmem:[%s7789_s1 + $0x3c8] sm:$0xff] }
  0x79   : > { %4700 = vmatpush3.msra.mxu1 %v3576_v56  ;;  %4659 = vmatprep.subr.mxu0 %v3550_v59  ;;  %v3593_v56 = vld [vmem:[%s7789_s1 + $0x338] sm:$0xff] }
  0x7a   : > { %4701 = vmatprep.subr.mxu1 %v3575_v60  ;;  %4660 = vmatpush3.msra.mxu0 %v3550_v59  ;;  %v3618_v59 = vld [vmem:[%s7789_s1 + $0x3c0] sm:$0xff] }
  0x7b   : > { %4702 = vmatpush3.msra.mxu1 %v3575_v60  ;;  %4661 = vmatprep.subr.mxu0 %v3549_v63  ;;  %v3592_v60 = vld [vmem:[%s7789_s1 + $0x330] sm:$0xff] }
  0x7c   : > { %4703 = vmatprep.subr.mxu1 %v3574_v0  ;;  %4662 = vmatpush3.msra.mxu0 %v3549_v63  ;;  %v3617_v63 = vld [vmem:[%s7789_s1 + $0x3b8] sm:$0xff] }
  0x7d   : > { %4704 = vmatpush3.msra.mxu1 %v3574_v0  ;;  %4663 = vmatprep.subr.mxu0 %v3548_v3  ;;  %v3591_v0 = vld [vmem:[%s7789_s1 + $0x328] sm:$0xff] }
  0x7e   : > { %4705 = vmatprep.subr.mxu1 %v3573_v4  ;;  %4664 = vmatpush3.msra.mxu0 %v3548_v3  ;;  %v3616_v3 = vld [vmem:[%s7789_s1 + $0x3b0] sm:$0xff] }
  0x7f   : > { %4706 = vmatpush3.msra.mxu1 %v3573_v4  ;;  %4665 = vmatprep.subr.mxu0 %v3547_v7  ;;  %v3590_v4 = vld [vmem:[%s7789_s1 + $0x320] sm:$0xff] }
  0x80   : > { %4707 = vmatprep.subr.mxu1 %v3572_v8  ;;  %4666 = vmatpush3.msra.mxu0 %v3547_v7  ;;  %v3615_v7 = vld [vmem:[%s7789_s1 + $0x3a8] sm:$0xff] }
  0x81   : > { %4708 = vmatpush3.msra.mxu1 %v3572_v8  ;;  %4667 = vmatprep.subr.mxu0 %v3546_v11  ;;  %v3589_v8 = vld [vmem:[%s7789_s1 + $0x318] sm:$0xff] }
  0x82   : > { %4709 = vmatprep.subr.mxu1 %v3571_v12  ;;  %4668 = vmatpush3.msra.mxu0 %v3546_v11  ;;  %v3614_v11 = vld [vmem:[%s7789_s1 + $0x3a0] sm:$0xff] }
  0x83   : > { %4669 = vmatprep.mubr.f32.mxu0 %v3538_v13  ;;  %4710 = vmatpush3.msra.mxu1 %v3571_v12  ;;  %v3588_v12 = vld [vmem:[%s7789_s1 + $0x310] sm:$0xff]  ;;  %v3613_v13 = vld [vmem:[%s7789_s1 + $0x398] sm:$0xff] }
  0x84   : > { %4670 = vmatmul.mubr.f32.vlgmr.msra.gmra.mxu0 %v3539_v14  ;;  %4711 = vmatprep.subr.mxu1 %v3570_v15  ;;  %v3587_v14 = vld [vmem:[%s7789_s1 + $0x308] sm:$0xff] }
  0x85   : > { %4725 = vmatprep.subr.mxu0 %v3601_v17  ;;  %4712 = vmatpush3.msra.mxu1 %v3570_v15  ;;  %v3612_v15 = vld [vmem:[%s7789_s1 + $0x390] sm:$0xff] }
  0x86   : > { %4713 = vmatprep.mubr.f32.mxu1 %v3562_v18  ;;  %4726 = vmatpush3.msra.mxu0 %v3601_v17  ;;  %v3586_v17 = vld [vmem:[%s7789_s1 + $0x300] sm:$0xff]  ;;  %v3611_v18 = vld [vmem:[%s7789_s1 + $0x388] sm:$0xff] }
  0x87   : > { %4714 = vmatmul.mubr.f32.vlgmr.msra.gmra.mxu1 %v3563_v19  ;;  %4727 = vmatprep.subr.mxu0 %v3600_v20  ;;  %v3610_v19 = vld [vmem:[%s7789_s1 + $0x380] sm:$0xff] }
  0x88   : > { %4769 = vmatprep.subr.mxu1 %v3625_v21  ;;  %4672 = vmatprep.mubr.f32.mxu0 %v3540_v22  ;;  %v3639_v22 = vld [vmem:[%s7789_s1 + $0x468] sm:$0xff] }
  0x89   : > { %4728 = vmatpush3.msra.mxu0 %v3600_v20  ;;  %4770 = vmatpush3.msra.mxu1 %v3625_v21  ;;  %v3641_v20 = vld [vmem:[%s7789_s1 + $0x478] sm:$0xff]  ;;  %v3640_v21 = vld [vmem:[%s7789_s1 + $0x470] sm:$0xff] }
  0x8a   : > { %4673 = vmatmul.mubr.f32.gmra.mxu0 %v3541_v25  ;;  %4729 = vmatprep.subr.mxu0 %v3599_v26  ;;  %v1373_v25 = vld [vmem:[%s5885_s21 + $0x41] sm:$0xff] }
  0x8b   : > { %4771 = vmatprep.subr.mxu1 %v3624_v27  ;;  %4716 = vmatprep.mubr.f32.mxu1 %v3564_v28  ;;  %v3656_v28 = vld [vmem:[%s7790_s2 + $0xe8] sm:$0xff] }
  0x8c   : > { %4730 = vmatpush3.msra.mxu0 %v3599_v26  ;;  %4772 = vmatpush3.msra.mxu1 %v3624_v27  ;;  %v7796_v26 = vmov 0.0   ;;  %v3657_v27 = vld [vmem:[%s7790_s2 + $0xf0] sm:$0xff] }
  0x8d   : > { %4731 = vmatprep.subr.mxu0 %v3598_v29  ;;  %4717 = vmatmul.mubr.f32.gmra.mxu1 %v3565_v30  ;;  %v1549_v30 = vld [vmem:[%s7790_s2 + $0x48] sm:$0xff] }
  0x8e   : > { %4773 = vmatprep.subr.mxu1 %v3623_v33  ;;  %4675 = vmatprep.mubr.f32.mxu0 %v3542_v36  ;;  %v1548_v36 = vld [vmem:[%s7790_s2 + $0x40] sm:$0xff] }
  0x8f   : > { %4732 = vmatpush3.msra.mxu0 %v3598_v29  ;;  %4774 = vmatpush3.msra.mxu1 %v3623_v33  ;;  %v1550_v29 = vld [vmem:[%s7790_s2 + $0x50] sm:$0xff]  ;;  %v3655_v33 = vld [vmem:[%s7790_s2 + $0xe0] sm:$0xff] }
  0x90   : > { %4676 = vmatmul.mubr.f32.gmra.mxu0 %v3543_v37  ;;  %4733 = vmatprep.subr.mxu0 %v3597_v38  ;;  %v3654_v37 = vld [vmem:[%s7790_s2 + $0xd8] sm:$0xff] }
  0x91   : > { %4775 = vmatprep.subr.mxu1 %v3622_v39  ;;  %4719 = vmatprep.mubr.f32.mxu1 %v3566_v40  ;;  %v3652_v40 = vld [vmem:[%s7790_s2 + $0xc8] sm:$0xff] }
  0x92   : > { %4734 = vmatpush3.msra.mxu0 %v3597_v38  ;;  %4776 = vmatpush3.msra.mxu1 %v3622_v39  ;;  %v3653_v38 = vld [vmem:[%s7790_s2 + $0xd0] sm:$0xff]  ;;  %v1547_v39 = vld [vmem:[%s7790_s2 + $0x38] sm:$0xff] }
  0x93   : > { %4735 = vmatprep.subr.mxu0 %v3596_v43  ;;  %4720 = vmatmul.mubr.f32.gmra.mxu1 %v3567_v44  ;;  %v3651_v44 = vld [vmem:[%s7790_s2 + $0xc0] sm:$0xff] }
  0x94   : > { %4777 = vmatprep.subr.mxu1 %v3621_v45  ;;  %4678 = vmatprep.mubr.f32.mxu0 %v3544_v46  ;;  %v1544_v46 = vld [vmem:[%s7790_s2 + $0x20] sm:$0xff] }
  0x95   : > { %4736 = vmatpush3.msra.mxu0 %v3596_v43  ;;  %4778 = vmatpush3.msra.mxu1 %v3621_v45  ;;  %v1546_v43 = vld [vmem:[%s7790_s2 + $0x30] sm:$0xff]  ;;  %v1545_v45 = vld [vmem:[%s7790_s2 + $0x28] sm:$0xff] }
  0x96   : > { %4679 = vmatmul.mubr.f32.gmra.mxu0 %v3545_v47  ;;  %4737 = vmatprep.subr.mxu0 %v3595_v48  ;;  %v3650_v47 = vld [vmem:[%s7790_s2 + $0xb8] sm:$0xff] }
  0x97   : > { %4779 = vmatprep.subr.mxu1 %v3620_v49  ;;  %4722 = vmatprep.mubr.f32.mxu1 %v3568_v50  ;;  %v1542_v50 = vld [vmem:[%s7790_s2 + $0x10] sm:$0xff] }
  0x98   : > { %4738 = vmatpush3.msra.mxu0 %v3595_v48  ;;  %4780 = vmatpush3.msra.mxu1 %v3620_v49  ;;  %v1543_v48 = vld [vmem:[%s7790_s2 + $0x18] sm:$0xff]  ;;  %v3649_v49 = vld [vmem:[%s7790_s2 + $0xb0] sm:$0xff] }
  0x99   : > { %4739 = vmatprep.subr.mxu0 %v3594_v51  ;;  %4723 = vmatmul.mubr.f32.gmra.mxu1 %v3569_v52  ;;  %v1541_v52 = vld [vmem:[%s7790_s2 + $0x8] sm:$0xff] }
  0x9a   : > { %4781 = vmatprep.subr.mxu1 %v3619_v55  ;;  %4740 = vmatpush3.msra.mxu0 %v3594_v51  ;;  %v3648_v51 = vld [vmem:[%s7790_s2 + $0xa8] sm:$0xff] }
  0x9b   : > { %4782 = vmatpush3.msra.mxu1 %v3619_v55  ;;  %4741 = vmatprep.subr.mxu0 %v3593_v56  ;;  %v3647_v55 = vld [vmem:[%s7790_s2 + $0xa0] sm:$0xff] }
  0x9c   : > { %4783 = vmatprep.subr.mxu1 %v3618_v59  ;;  %4742 = vmatpush3.msra.mxu0 %v3593_v56  ;;  %v1540_v56 = vld [vmem:[%s7790_s2] sm:$0xff] }
  0x9d   : > { %4784 = vmatpush3.msra.mxu1 %v3618_v59  ;;  %4743 = vmatprep.subr.mxu0 %v3592_v60 }
  0x9e   : > { %4785 = vmatprep.subr.mxu1 %v3617_v63  ;;  %4744 = vmatpush3.msra.mxu0 %v3592_v60  ;;  %v3646_v60 = vld [vmem:[%s7790_s2 + $0x98] sm:$0xff] }
  0x9f   : > { %4786 = vmatpush3.msra.mxu1 %v3617_v63  ;;  %4745 = vmatprep.subr.mxu0 %v3591_v0  ;;  %v3645_v63 = vld [vmem:[%s7790_s2 + $0x90] sm:$0xff] }
  0xa0   : > { %4787 = vmatprep.subr.mxu1 %v3616_v3  ;;  %4746 = vmatpush3.msra.mxu0 %v3591_v0 }
  0xa1   : > { %4788 = vmatpush3.msra.mxu1 %v3616_v3  ;;  %4747 = vmatprep.subr.mxu0 %v3590_v4  ;;  %v3644_v3 = vld [vmem:[%s7790_s2 + $0x88] sm:$0xff] }
  0xa2   : > { %4789 = vmatprep.subr.mxu1 %v3615_v7  ;;  %4748 = vmatpush3.msra.mxu0 %v3590_v4 }
  0xa3   : > { %4790 = vmatpush3.msra.mxu1 %v3615_v7  ;;  %4749 = vmatprep.subr.mxu0 %v3589_v8  ;;  %v3643_v7 = vld [vmem:[%s7790_s2 + $0x80] sm:$0xff] }
  0xa4   : > { %4791 = vmatprep.subr.mxu1 %v3614_v11  ;;  %4750 = vmatpush3.msra.mxu0 %v3589_v8 }
  0xa5   : > { %4792 = vmatpush3.msra.mxu1 %v3614_v11  ;;  %4751 = vmatprep.subr.mxu0 %v3588_v12 }
  0xa6   : > { %4793 = vmatprep.subr.mxu1 %v3613_v13  ;;  %4752 = vmatpush3.msra.mxu0 %v3588_v12 }
  0xa7   : > { %4794 = vmatpush3.msra.mxu1 %v3613_v13  ;;  %4753 = vmatprep.subr.mxu0 %v3587_v14 }
  0xa8   : > { %4795 = vmatprep.subr.mxu1 %v3612_v15  ;;  %4754 = vmatpush3.msra.mxu0 %v3587_v14 }
  0xa9   : > { %4796 = vmatpush3.msra.mxu1 %v3612_v15  ;;  %4755 = vmatprep.subr.mxu0 %v3586_v17 }
  0xaa   : > { %4797 = vmatprep.subr.mxu1 %v3611_v18  ;;  %4756 = vmatpush3.msra.mxu0 %v3586_v17 }
  0xab   : > { %4757 = vmatprep.mubr.f32.mxu0 %v5899_v35  ;;  %4798 = vmatpush3.msra.mxu1 %v3611_v18  ;;  %v3638_v35 = vld [vmem:[%s7789_s1 + $0x460] sm:$0xff] }
  0xac   : > { %4758 = vmatmul.mubr.f32.vlgmr.msra.gmra.mxu0 %v5958_v54  ;;  %4799 = vmatprep.subr.mxu1 %v3610_v19  ;;  %v1097_v54 = vld [vmem:[%s5885_s21 + $0x40] sm:$0xff] }
  0xad   : > { %4813 = vmatprep.subr.mxu0 %v3641_v20  ;;  %4800 = vmatpush3.msra.mxu1 %v3610_v19 }
  0xae   : > { %4801 = vmatprep.mubr.f32.mxu1 %v5896_v34  ;;  %4814 = vmatpush3.msra.mxu0 %v3641_v20  ;;  %v3637_v34 = vld [vmem:[%s7789_s1 + $0x458] sm:$0xff] }
  0xaf   : > { %4802 = vmatmul.mubr.f32.vlgmr.msra.gmra.mxu1 %v5955_v53  ;;  %4815 = vmatprep.subr.mxu0 %v3640_v21  ;;  %v3636_v53 = vld [vmem:[%s7789_s1 + $0x450] sm:$0xff] }
  0xb0   : > { %4760 = vmatprep.mubr.f32.mxu0 %v5971_v58  ;;  %4816 = vmatpush3.msra.mxu0 %v3640_v21  ;;  %v3609_v58 = vld [vmem:[%s5885_s21 + $0x90] sm:$0xff]  ;;  %s5641_s21 = sshll.u32 %s5701_s18, 4  ;;  %s5642_s21 = int_to_ptr.vmem [resolvable:$false] %s5641_s21 }
  0xb1   : > { %4804 = vmatprep.mubr.f32.mxu1 %v5968_v57  ;;  %4761 = vmatmul.mubr.f32.gmra.mxu0 %v5986_v62  ;;  %v3635_v57 = vld [vmem:[%s7789_s1 + $0x448] sm:$0xff]  ;;  %v3633_v62 = vld [vmem:[%s7789_s1 + $0x438] sm:$0xff]  ;;  %s5643_s28 = scalar_lea.vmem %s5642_s21, 32  ;;  %p5644_p0 = scmp.lt.s32.totalorder %s3415_s29, %s5642_s21 }
  0xb2   : > { %4817 = vmatprep.subr.mxu0 %v3639_v22  ;;  %4763 = vmatprep.mubr.f32.mxu0 %v5998_v2  ;;  %v3631_v2 = vld [vmem:[%s7789_s1 + $0x428] sm:$0xff]  ;;  %p5645_p1 = scmp.lt.s32.totalorder %s5643_s28, %s5637_s15 }
  0xb3   : > { %4818 = vmatpush3.msra.mxu0 %v3639_v22  ;;  %4805 = vmatmul.mubr.f32.gmra.mxu1 %v5983_v61  ;;  %v3634_v61 = vld [vmem:[%s7789_s1 + $0x440] sm:$0xff] }
  0xb4   : > { %4819 = vmatprep.subr.mxu0 %v3638_v35  ;;  %4807 = vmatprep.mubr.f32.mxu1 %v5995_v1  ;;  %v3632_v1 = vld [vmem:[%s7789_s1 + $0x430] sm:$0xff]  ;;  %p5646_p2 = por %p5645_p1, %p5644_p0 }
  0xb5   : > { %4820 = vmatpush3.msra.mxu0 %v3638_v35  ;;  %4857 = vmatprep.subr.mxu1 %v7796_v26 }
  0xb6   : > { %4764 = vmatmul.mubr.f32.gmra.mxu0 %v6014_v6  ;;  %4821 = vmatprep.subr.mxu0 %v3637_v34  ;;  %v3629_v6 = vld [vmem:[%s7789_s1 + $0x418] sm:$0xff]  ;;  %p5647_p3 = pnand %p5646_p2, %p5640_p13 }
  0xb7   : > { %4822 = vmatpush3.msra.mxu0 %v3637_v34  ;;  %4808 = vmatmul.mubr.f32.gmra.mxu1 %v6011_v5  ;;  %v3630_v5 = vld [vmem:[%s7789_s1 + $0x420] sm:$0xff] }
  0xb8   : > { %4823 = vmatprep.subr.mxu0 %v3636_v53  ;;  %4766 = vmatprep.mubr.f32.mxu0 %v6026_v10  ;;  %v3627_v10 = vld [vmem:[%s7789_s1 + $0x408] sm:$0xff] }
  0xb9   : > { %4824 = vmatpush3.msra.mxu0 %v3636_v53  ;;  %4810 = vmatprep.mubr.f32.mxu1 %v6023_v9  ;;  %v3628_v9 = vld [vmem:[%s7789_s1 + $0x410] sm:$0xff] }
  0xba   : > { %4767 = vmatmul.mubr.f32.gmra.mxu0 %v1097_v54  ;;  %4825 = vmatprep.subr.mxu0 %v3635_v57 }
  0xbb   : > { %4826 = vmatpush3.msra.mxu0 %v3635_v57  ;;  %4811 = vmatmul.mubr.f32.gmra.mxu1 %v3609_v58 }
  0xbc   : > { %4827 = vmatprep.subr.mxu0 %v3634_v61  ;;  %4845 = vmatprep.mubr.f32.mxu0 %v6046_v16  ;;  %v3626_v16 = vld [vmem:[%s7789_s1 + $0x400] sm:$0xff] }
  0xbd   : > { %4828 = vmatpush3.msra.mxu0 %v3634_v61  ;;  %4889 = vmatprep.mubr.msk.f32.mxu1 %vm5700_vm0, %v7796_v26 }
  0xbe   : > { %4829 = vmatprep.subr.mxu0 %v3633_v62 }
  0xbf   : > { %4830 = vmatpush3.msra.mxu0 %v3633_v62 }
  0xc0   : > { %4831 = vmatprep.subr.mxu0 %v3632_v1 }
  0xc1   : > { %4832 = vmatpush3.msra.mxu0 %v3632_v1 }
  0xc2   : > { %4833 = vmatprep.subr.mxu0 %v3631_v2 }
  0xc3   : > { %4834 = vmatpush3.msra.mxu0 %v3631_v2 }
  0xc4   : > { %4835 = vmatprep.subr.mxu0 %v3630_v5 }
  0xc5   : > { %4836 = vmatpush3.msra.mxu0 %v3630_v5 }
  0xc6   : > { %4837 = vmatprep.subr.mxu0 %v3629_v6 }
  0xc7   : > { %4838 = vmatpush3.msra.mxu0 %v3629_v6 }
  0xc8   : > { %4839 = vmatprep.subr.mxu0 %v3628_v9 }
  0xc9   : > { %4840 = vmatpush3.msra.mxu0 %v3628_v9 }
  0xca   : > { %4841 = vmatprep.subr.mxu0 %v3627_v10 }
  0xcb   : > { %4842 = vmatpush3.msra.mxu0 %v3627_v10 }
  0xcc   : > { %4843 = vmatprep.subr.mxu0 %v3626_v16 }
  0xcd   : > { %4844 = vmatpush3.msra.mxu0 %v3626_v16 }
  0xce   : > { %4846 = vmatmul.mubr.f32.vlgmr.msra.gmra.mxu0 %v6064_v23  ;;  %4904 = vmatprep.subr.mxu0 %v7796_v26  ;;  %v1555_v23 = vld [vmem:[%s7790_s2 + $0x78] sm:$0xff] }
  0xcf   : > { %4848 = vmatprep.mubr.f32.mxu0 %v6067_v24  ;;  %4905 = vmatpush3.msra.mxu0 %v1555_v23  ;;  %v1554_v24 = vld [vmem:[%s7790_s2 + $0x70] sm:$0xff] }
  0xd0   : > { %4906 = vmatprep.subr.mxu0 %v7796_v26 }
  0xd1   : > { %4907 = vmatpush3.msra.mxu0 %v1554_v24 }
  0xd2   : > { %4849 = vmatmul.mubr.f32.gmra.mxu0 %v6086_v31  ;;  %4908 = vmatprep.subr.mxu0 %v7796_v26  ;;  %v1553_v31 = vld [vmem:[%s7790_s2 + $0x68] sm:$0xff] }
  0xd3   : > { %4851 = vmatprep.mubr.f32.mxu0 %v6089_v32  ;;  %4909 = vmatpush3.msra.mxu0 %v1553_v31  ;;  %v1552_v32 = vld [vmem:[%s7790_s2 + $0x60] sm:$0xff] }
  0xd4   : > { %4910 = vmatprep.subr.mxu0 %v7796_v26 }
  0xd5   : > { %4911 = vmatpush3.msra.mxu0 %v1552_v32 }
  0xd6   : > { %4852 = vmatmul.mubr.f32.gmra.mxu0 %v6108_v41  ;;  %v3658_v41 = vld [vmem:[%s7790_s2 + $0xf8] sm:$0xff]  ;;  %4912 = vmatprep.subr.mxu0 %v7796_v26 }
  0xd7   : > { %4854 = vmatprep.mubr.f32.mxu0 %v6111_v42  ;;  %v1551_v42 = vld [vmem:[%s7790_s2 + $0x58] sm:$0xff]  ;;  %4858 = vmatpush3.msra.mxu1 %v3658_v41 }
  0xd8   : > { %4913 = vmatpush3.msra.mxu0 %v1551_v42  ;;  %4859 = vmatprep.subr.mxu1 %v7796_v26 }
  0xd9   : > { %4914 = vmatprep.subr.mxu0 %v7796_v26  ;;  %4860 = vmatpush3.msra.mxu1 %v3657_v27 }
  0xda   : > { %4855 = vmatmul.mubr.f32.gmra.mxu0 %v1373_v25  ;;  %4861 = vmatprep.subr.mxu1 %v7796_v26 }
  0xdb   : > { %4915 = vmatpush3.msra.mxu0 %v1550_v29  ;;  %4862 = vmatpush3.msra.mxu1 %v3656_v28 }
  0xdc   : > { %4916 = vmatprep.subr.mxu0 %v7796_v26  ;;  %4863 = vmatprep.subr.mxu1 %v7796_v26 }
  0xdd   : > { %4917 = vmatpush3.msra.mxu0 %v1549_v30  ;;  %4864 = vmatpush3.msra.mxu1 %v3655_v33 }
  0xde   : > { %4918 = vmatprep.subr.mxu0 %v7796_v26  ;;  %4865 = vmatprep.subr.mxu1 %v7796_v26 }
  0xdf   : > { %4919 = vmatpush3.msra.mxu0 %v1548_v36  ;;  %4866 = vmatpush3.msra.mxu1 %v3654_v37 }
  0xe0   : > { %4920 = vmatprep.subr.mxu0 %v7796_v26  ;;  %4867 = vmatprep.subr.mxu1 %v7796_v26 }
  0xe1   : > { %4921 = vmatpush3.msra.mxu0 %v1547_v39  ;;  %4868 = vmatpush3.msra.mxu1 %v3653_v38 }
  0xe2   : > { %4922 = vmatprep.subr.mxu0 %v7796_v26  ;;  %4869 = vmatprep.subr.mxu1 %v7796_v26 }
  0xe3   : > { %4923 = vmatpush3.msra.mxu0 %v1546_v43  ;;  %4870 = vmatpush3.msra.mxu1 %v3652_v40 }
  0xe4   : > { %4924 = vmatprep.subr.mxu0 %v7796_v26  ;;  %4871 = vmatprep.subr.mxu1 %v7796_v26 }
  0xe5   : > { %4925 = vmatpush3.msra.mxu0 %v1545_v45  ;;  %4872 = vmatpush3.msra.mxu1 %v3651_v44 }
  0xe6   : > { %4926 = vmatprep.subr.mxu0 %v7796_v26  ;;  %4873 = vmatprep.subr.mxu1 %v7796_v26 }
  0xe7   : > { %4927 = vmatpush3.msra.mxu0 %v1544_v46  ;;  %4874 = vmatpush3.msra.mxu1 %v3650_v47 }
  0xe8   : > { %4928 = vmatprep.subr.mxu0 %v7796_v26  ;;  %4875 = vmatprep.subr.mxu1 %v7796_v26 }
  0xe9   : > { %4929 = vmatpush3.msra.mxu0 %v1543_v48  ;;  %4876 = vmatpush3.msra.mxu1 %v3649_v49 }
  0xea   : > { %4930 = vmatprep.subr.mxu0 %v7796_v26  ;;  %4877 = vmatprep.subr.mxu1 %v7796_v26 }
  0xeb   : > { %4931 = vmatpush3.msra.mxu0 %v1542_v50  ;;  %4878 = vmatpush3.msra.mxu1 %v3648_v51 }
  0xec   : > { %4932 = vmatprep.subr.mxu0 %v7796_v26  ;;  %4879 = vmatprep.subr.mxu1 %v7796_v26 }
  0xed   : > { %4933 = vmatpush3.msra.mxu0 %v1541_v52  ;;  %4880 = vmatpush3.msra.mxu1 %v3647_v55 }
  0xee   : > { %4934 = vmatprep.subr.mxu0 %v7796_v26  ;;  %4881 = vmatprep.subr.mxu1 %v7796_v26 }
  0xef   : > { %4935 = vmatpush3.msra.mxu0 %v1540_v56  ;;  %4882 = vmatpush3.msra.mxu1 %v3646_v60 }
  0xf0   : > { %4936 = vmatprep.mubr.msk.f32.mxu0 %vm5700_vm0, %v7796_v26  ;;  %4883 = vmatprep.subr.mxu1 %v7796_v26 }
  0xf1   : > { %4998 = vmatprep.subr.mxu0 %v7796_v26  ;;  %4884 = vmatpush3.msra.mxu1 %v3645_v63 }
  0xf2   : > { %4885 = vmatprep.subr.mxu1 %v7796_v26 }
  0xf3   : > { %4886 = vmatpush3.msra.mxu1 %v3644_v3 }
  0xf4   : > { %4887 = vmatprep.subr.mxu1 %v7796_v26 }
  0xf5   : > { %v6476_v59 = vpop.f32.mrf.mxu0  ;;  %4888 = vmatpush3.msra.mxu1 %v3643_v7 }
  0xf6   : > { %4951 = vmatprep.subr.mxu1 %v7796_v26  ;;  %v4539_v11 = vpop.f32.mrf.mxu1 }
  0xf7   : > { %v392_v0 = vpop.f32.mrf.mxu0  ;;  %v503_v47 = vadd.f32 %v4539_v11, %v6476_v59 }
  0xf8   : > { %v497_v13 = vpop.f32.mrf.mxu1 }
  0xf9   : > { %v498_v50 = vadd.f32 %v497_v13, %v392_v0 }
 0x109   : > { %v4498_v4 = vpop.f32.mrf.mxu0 }
 0x10a   : > { %v4542_v15 = vpop.f32.mrf.mxu1 }
 0x10b   : > { %v402_v8 = vpop.f32.mrf.mxu0  ;;  %v513_v52 = vadd.f32 %v4542_v15, %v4498_v4 }
 0x10c   : > { %v507_v18 = vpop.f32.mrf.mxu1 }
 0x10d   : > { %v508_v63 = vadd.f32 %v507_v18, %v402_v8 }
 0x10f   : > { %v4501_v12 = vpop.f32.mrf.mxu0 }
 0x110   : > { %v4545_v20 = vpop.f32.mrf.mxu1 }
 0x111   : > { %v412_v14 = vpop.f32.mrf.mxu0  ;;  %v523_v26 = vadd.f32 %v4545_v20, %v4501_v12 }
 0x112   : > { %v517_v22 = vpop.f32.mrf.mxu1 }
 0x115   : > { %v6500_v17 = vpop.f32.mrf.mxu0 }
 0x116   : > { %7800 = vst [vmem:[#allocation7_spill] sm:$0xff] %v6500_v17  ;;  %v4548_v34 = vpop.f32.mrf.mxu1 }
 0x117   : > { %v6502_v19 = vpop.f32.mrf.mxu0 }
 0x118   : > { %7801 = vst [vmem:[#allocation8_spill] sm:$0xff] %v6502_v19  ;;  %v527_v54 = vpop.f32.mrf.mxu1  ;;  %v518_v19 = vadd.f32 %v517_v22, %v412_v14 }
 0x11c   : > { %v4583_v21 = vpop.f32.mrf.mxu0 }
 0x11d   : > { %v667_v51 = vadd.f32 %v4583_v21, %v503_v47  ;;  %v7806_v13 = vld [vmem:[#allocation7_spill] sm:$0xff] }
 0x11e   : > { %v627_v35 = vpop.f32.mrf.mxu0  ;;  %v533_v21 = vadd.f32 %v4548_v34, %v7806_v13 }
 0x11f   : > { %v4627_v57 = vpop.f32.mrf.mxu1  ;;  %v666_v55 = vadd.f32 %v627_v35, %v498_v50  ;;  %v7807_v50 = vld [vmem:[#allocation8_spill] sm:$0xff] }
 0x120   : > { %v806_v3 = vadd.f32 %v4627_v57, %v667_v51  ;;  %v528_v8 = vadd.f32 %v527_v54, %v7807_v50 }
 0x121   : > { %v766_v61 = vpop.f32.mrf.mxu1 }
 0x122   : > { %v4586_v53 = vpop.f32.mrf.mxu0 }
 0x123   : > { %v669_v7 = vadd.f32 %v4586_v53, %v513_v52 }
 0x124   : > { %v637_v58 = vpop.f32.mrf.mxu0 }
 0x125   : > { %v4630_v1 = vpop.f32.mrf.mxu1 }
 0x126   : > { %v808_v59 = vadd.f32 %v4630_v1, %v669_v7 }
 0x127   : > { %v776_v5 = vpop.f32.mrf.mxu1 }
 0x128   : > { %v4589_v62 = vpop.f32.mrf.mxu0 }
 0x129   : > { %v671_v17 = vadd.f32 %v4589_v62, %v523_v26 }
 0x12a   : > { %v647_v2 = vpop.f32.mrf.mxu0 }
 0x12b   : > { %v4633_v9 = vpop.f32.mrf.mxu1  ;;  %v670_v47 = vadd.f32 %v647_v2, %v518_v19 }
 0x12c   : > { %v810_v18 = vadd.f32 %v4633_v9, %v671_v17 }
 0x12d   : > { %v786_v25 = vpop.f32.mrf.mxu1 }
 0x12e   : > { %v4592_v6 = vpop.f32.mrf.mxu0  ;;  %v809_v26 = vadd.f32 %v786_v25, %v670_v47  ;;  %v6519_v25 = vld [vmem:[%s7792_s4] ss:$0 sm:$0xff] }
 0x12f   : > { %v673_v53 = vadd.f32 %v4592_v6, %v533_v21 }
 0x130   : > { %v657_v10 = vpop.f32.mrf.mxu0 }
 0x131   : > { %v4636_v24 = vpop.f32.mrf.mxu1  ;;  %v672_v22 = vadd.f32 %v657_v10, %v528_v8 }
 0x133   : > { %v6504_v32 = vpop.f32.mrf.mxu1 }
 0x134   : > { %7802 = vst [vmem:[#allocation9_spill] sm:$0xff] %v6504_v32  ;;  %v668_v32 = vadd.f32 %v637_v58, %v508_v63 }
 0x136   : > { %v807_v4 = vadd.f32 %v776_v5, %v668_v32 }
 0x13b   : > { %v7808_v54 = vld [vmem:[#allocation9_spill] sm:$0xff] }
 0x13c   : > { %v811_v17 = vadd.f32 %v7808_v54, %v672_v22 }
 0x144   : > { %v4671_v16 = vpop.f32.mrf.mxu0 }
 0x146   : > { %v905_v23 = vpop.f32.mrf.mxu0 }
 0x147   : > { %v4715_v41 = vpop.f32.mrf.mxu1 }
 0x149   : > { %v1043_v27 = vpop.f32.mrf.mxu1 }
 0x14a   : > { %v4674_v31 = vpop.f32.mrf.mxu0 }
 0x14b   : > { %v947_v35 = vadd.f32 %v4674_v31, %v808_v59 }
 0x14c   : > { %v915_v42 = vpop.f32.mrf.mxu0 }
 0x14d   : > { %v4718_v29 = vpop.f32.mrf.mxu1  ;;  %v946_v58 = vadd.f32 %v915_v42, %v807_v4 }
 0x14e   : > { %v1085_v62 = vadd.f32 %v4718_v29, %v947_v35  ;;  %v3689_v35 = vld [vmem:[%s7790_s2 + $0x1f0] sm:$0xff] }
 0x14f   : > { %v1053_v33 = vpop.f32.mrf.mxu1 }
 0x150   : > { %v4677_v28 = vpop.f32.mrf.mxu0  ;;  %v1084_v5 = vadd.f32 %v1053_v33, %v946_v58  ;;  %v3688_v58 = vld [vmem:[%s7790_s2 + $0x1e8] sm:$0xff] }
 0x152   : > { %v925_v30 = vpop.f32.mrf.mxu0 }
 0x153   : > { %v4721_v37 = vpop.f32.mrf.mxu1  ;;  %v948_v34 = vadd.f32 %v925_v30, %v809_v26 }
 0x155   : > { %v1063_v40 = vpop.f32.mrf.mxu1 }
 0x156   : > { %v4680_v36 = vpop.f32.mrf.mxu0 }
 0x158   : > { %v6506_v38 = vpop.f32.mrf.mxu0 }
 0x159   : > { %7803 = vst [vmem:[#allocation10_spill] sm:$0xff] %v6506_v38  ;;  %v6508_v44 = vpop.f32.mrf.mxu1  ;;  %v805_v38 = vadd.f32 %v766_v61, %v666_v55  ;;  %v949_v61 = vadd.f32 %v4677_v28, %v810_v18  ;;  %v7812_v18 = vmov 0.0  }
 0x15a   : > { %7804 = vst [vmem:[#allocation11_spill] sm:$0xff] %v6508_v44  ;;  %v945_v44 = vadd.f32 %v4671_v16, %v806_v3  ;;  %v812_v16 = vadd.f32 %v4636_v24, %v673_v53  ;;  %v1086_v24 = vadd.f32 %v1063_v40, %v948_v34 }
 0x15b   : > { %v6510_v46 = vpop.f32.mrf.mxu1  ;;  %v944_v0 = vadd.f32 %v905_v23, %v805_v38  ;;  %v1087_v6 = vadd.f32 %v4721_v37, %v949_v61 }
 0x15c   : > { %7805 = vst [vmem:[#allocation12_spill] sm:$0xff] %v6510_v46  ;;  %v1083_v15 = vadd.f32 %v4715_v41, %v945_v44  ;;  %v951_v9 = vadd.f32 %v4680_v36, %v812_v16 }
 0x15d   : > { %v1082_v57 = vadd.f32 %v1043_v27, %v944_v0 }
 0x160   : > { %v7809_v27 = vld [vmem:[#allocation10_spill] sm:$0xff] }
 0x161   : > { %v950_v28 = vadd.f32 %v7809_v27, %v811_v17  ;;  %v7810_v36 = vld [vmem:[#allocation11_spill] sm:$0xff] }
 0x162   : > { %v3673_v17 = vld [vmem:[%s7790_s2 + $0x170] sm:$0xff] }
 0x163   : > { %v7811_v40 = vld [vmem:[#allocation12_spill] sm:$0xff] }
 0x164   : > { %v1088_v55 = vadd.f32 %v7811_v40, %v950_v28  ;;  %v3669_v27 = vld [vmem:[%s7790_s2 + $0x150] sm:$0xff]  ;;  %v3668_v28 = vld [vmem:[%s7790_s2 + $0x148] sm:$0xff]  ;;  %v3662_v40 = vld [vmem:[%s7790_s2 + $0x118] sm:$0xff] }
 0x16c   : > { %v4759_v39 = vpop.f32.mrf.mxu0 }
 0x16d   : > { %v1221_v14 = vadd.f32 %v4759_v39, %v1083_v15 }
 0x16e   : > { %v1181_v43 = vpop.f32.mrf.mxu0 }
 0x16f   : > { %v4803_v48 = vpop.f32.mrf.mxu1  ;;  %v1220_v1 = vadd.f32 %v1181_v43, %v1082_v57  ;;  %v1089_v43 = vadd.f32 %v7810_v36, %v951_v9  ;;  %v3682_v36 = vld [vmem:[%s7790_s2 + $0x1b8] sm:$0xff] }
 0x170   : > { %v1359_v23 = vadd.f32 %v4803_v48, %v1221_v14 }
 0x171   : > { %v4762_v45 = vpop.f32.mrf.mxu0  ;;  %v1319_v56 = vpop.f32.mrf.mxu1 }
 0x172   : > { %v1223_v31 = vadd.f32 %v4762_v45, %v1085_v62  ;;  %v1358_v10 = vadd.f32 %v1319_v56, %v1220_v1  ;;  %v3687_v1 = vld [vmem:[%s7790_s2 + $0x1e0] sm:$0xff] }
 0x173   : > { %v1191_v49 = vpop.f32.mrf.mxu0  ;;  %v4806_v46 = vpop.f32.mrf.mxu1 }
 0x174   : > { %v1222_v41 = vadd.f32 %v1191_v49, %v1084_v5  ;;  %v1361_v38 = vadd.f32 %v4806_v46, %v1223_v31  ;;  %v3674_v5 = vld [vmem:[%s7790_s2 + $0x178] sm:$0xff] }
 0x175   : > { %v1329_v12 = vpop.f32.mrf.mxu1 }
 0x176   : > { %v4765_v60 = vpop.f32.mrf.mxu0  ;;  %v1360_v48 = vadd.f32 %v1329_v12, %v1222_v41  ;;  %v3685_v41 = vld [vmem:[%s7790_s2 + $0x1d0] sm:$0xff] }
 0x177   : > { %v4809_v19 = vpop.f32.mrf.mxu1  ;;  %v1225_v29 = vadd.f32 %v4765_v60, %v1087_v6  ;;  %v3686_v6 = vld [vmem:[%s7790_s2 + $0x1d8] sm:$0xff] }
 0x178   : > { %v1201_v11 = vpop.f32.mrf.mxu0 }
 0x179   : > { %v1339_v30 = vpop.f32.mrf.mxu1  ;;  %v1224_v44 = vadd.f32 %v1201_v11, %v1086_v24  ;;  %v1363_v56 = vadd.f32 %v4809_v19, %v1225_v29  ;;  %v3690_v11 = vld [vmem:[%s7790_s2 + $0x1f8] sm:$0xff] }
 0x17a   : > { %v4768_v20 = vpop.f32.mrf.mxu0 }
 0x17b   : > { %v4812_v60 = vpop.f32.mrf.mxu1  ;;  %v1227_v3 = vadd.f32 %v4768_v20, %v1089_v43  ;;  %v1362_v0 = vadd.f32 %v1339_v30, %v1224_v44  ;;  %v3684_v30 = vld [vmem:[%s7790_s2 + $0x1c8] sm:$0xff]  ;;  %v3665_v43 = vld [vmem:[%s7790_s2 + $0x130] sm:$0xff] }
 0x17c   : > { %v1211_v2 = vpop.f32.mrf.mxu0  ;;  %v3681_v44 = vld [vmem:[%s7790_s2 + $0x1b0] sm:$0xff] }
 0x17d   : > { %v1226_v21 = vadd.f32 %v1211_v2, %v1088_v55  ;;  %v1349_v50 = vpop.f32.mrf.mxu1  ;;  %v1365_v53 = vadd.f32 %v4812_v60, %v1227_v3  ;;  %v3678_v55 = vld [vmem:[%s7790_s2 + $0x198] sm:$0xff]  ;;  %v3677_v60 = vld [vmem:[%s7790_s2 + $0x190] sm:$0xff]  ;;  %v3676_v3 = vld [vmem:[%s7790_s2 + $0x188] sm:$0xff] }
 0x17f   : > { %v1364_v26 = vadd.f32 %v1349_v50, %v1226_v21  ;;  %v3721_v21 = vld [vmem:[%s7790_s2 + $0x2f0] sm:$0xff]  ;;  %v3719_v50 = vld [vmem:[%s7790_s2 + $0x2e0] sm:$0xff] }
 0x18e   : > { %v4847_v32 = vpop.f32.mrf.mxu0 }
 0x18f   : > { %v1497_v42 = vadd.f32 %v4847_v32, %v1359_v23  ;;  %v3672_v32 = vld [vmem:[%s7790_s2 + $0x168] sm:$0xff] }
 0x190   : > { %v1457_v33 = vpop.f32.mrf.mxu0 }
 0x191   : > { %v1512_v39 = vadd.f32 %v6519_v25, %v1497_v42  ;;  %v1496_v37 = vadd.f32 %v1457_v33, %v1358_v10  ;;  %v3671_v10 = vld [vmem:[%s7790_s2 + $0x160] sm:$0xff]  ;;  %v3670_v42 = vld [vmem:[%s7790_s2 + $0x158] sm:$0xff] }
 0x192   : > { %v4850_v45 = vpop.f32.mrf.mxu0  ;;  %v3667_v33 = vld [vmem:[%s7790_s2 + $0x140] sm:$0xff] }
 0x193   : > { %v6524_v51 = vmax.f32 %v1512_v39, 0.0  ;;  %v1511_v49 = vadd.f32 %v6519_v25, %v1496_v37  ;;  %v1499_v52 = vadd.f32 %v4850_v45, %v1361_v38  ;;  %v3683_v38 = vld [vmem:[%s7790_s2 + $0x1c0] sm:$0xff]  ;;  %v3666_v39 = vld [vmem:[%s7790_s2 + $0x138] sm:$0xff]  ;;  %v3664_v45 = vld [vmem:[%s7790_s2 + $0x128] sm:$0xff] }
 0x194   : > { %v1467_v63 = vpop.f32.mrf.mxu0 }
 0x195   : > { %1528 = vst [vmem:[#allocation2 + $0x8] sm:$0xff] %v6524_v51  ;;  %v1519_v46 = vmax.f32 %v1511_v49, 0.0  ;;  %v1514_v7 = vadd.f32 %v6519_v25, %v1499_v52  ;;  %v1498_v59 = vadd.f32 %v1467_v63, %v1360_v48  ;;  %v3680_v48 = vld [vmem:[%s7790_s2 + $0x1a8] sm:$0xff]  ;;  %v3663_v49 = vld [vmem:[%s7790_s2 + $0x120] sm:$0xff] }
 0x196   : > { %v4853_v13 = vpop.f32.mrf.mxu0  ;;  %v3679_v52 = vld [vmem:[%s7790_s2 + $0x1a0] sm:$0xff]  ;;  %v3660_v63 = vld [vmem:[%s7790_s2 + $0x108] sm:$0xff] }
 0x197   : > { %1527 = vst [vmem:[#allocation2] sm:$0xff] %v1519_v46  ;;  %v6533_v47 = vmax.f32 %v1514_v7, 0.0  ;;  %v1513_v4 = vadd.f32 %v6519_v25, %v1498_v59  ;;  %v1501_v15 = vadd.f32 %v4853_v13, %v1363_v56  ;;  %4937 = vmatmul.mubr.f32.vlgmr.msra.gmra.mxu0 %v1519_v46  ;;  %v3661_v56 = vld [vmem:[%s7790_s2 + $0x110] sm:$0xff]  ;;  %v3659_v46 = vld [vmem:[%s7790_s2 + $0x100] sm:$0xff] }
 0x198   : > { %v1477_v8 = vpop.f32.mrf.mxu0  ;;  %4999 = vmatpush3.msra.mxu0 %v3690_v11  ;;  %4939 = vmatprep.mubr.msk.f32.mxu0 %vm5700_vm0, %v7812_v18  ;;  %v3675_v7 = vld [vmem:[%s7790_s2 + $0x180] sm:$0xff]  ;;  %v3706_v11 = vld [vmem:[%s7790_s2 + $0x278] sm:$0xff]  ;;  %v3705_v13 = vld [vmem:[%s7790_s2 + $0x270] sm:$0xff] }
 0x199   : > { %1530 = vst [vmem:[#allocation2 + $0x18] sm:$0xff] %v6533_v47  ;;  %v6542_v12 = vmax.f32 %v1513_v4, 0.0  ;;  %v1516_v20 = vadd.f32 %v6519_v25, %v1501_v15  ;;  %v1500_v57 = vadd.f32 %v1477_v8, %v1362_v0  ;;  %5000 = vmatprep.subr.mxu0 %v7812_v18  ;;  %v3722_v0 = vld [vmem:[%s7790_s2 + $0x2f8] sm:$0xff]  ;;  %v3704_v4 = vld [vmem:[%s7790_s2 + $0x268] sm:$0xff] }
 0x19a   : > { %v4856_v14 = vpop.f32.mrf.mxu0  ;;  %5001 = vmatpush3.msra.mxu0 %v3689_v35  ;;  %v3720_v15 = vld [vmem:[%s7790_s2 + $0x2e8] sm:$0xff]  ;;  %v3703_v35 = vld [vmem:[%s7790_s2 + $0x260] sm:$0xff] }
 0x19b   : > { %1529 = vst [vmem:[#allocation2 + $0x10] sm:$0xff] %v6542_v12  ;;  %v6550_v22 = vmax.f32 %v1516_v20, 0.0  ;;  %v1515_v61 = vadd.f32 %v6519_v25, %v1500_v57  ;;  %v1503_v62 = vadd.f32 %v4856_v14, %v1365_v53  ;;  %5002 = vmatprep.subr.mxu0 %v7812_v18  ;;  %4940 = vmatmul.mubr.f32.gmra.mxu0 %v6524_v51  ;;  %v3702_v53 = vld [vmem:[%s7790_s2 + $0x258] sm:$0xff]  ;;  %v3701_v57 = vld [vmem:[%s7790_s2 + $0x250] sm:$0xff] }
 0x19c   : > { %v1487_v16 = vpop.f32.mrf.mxu0  ;;  %5003 = vmatpush3.msra.mxu0 %v3688_v58  ;;  %4942 = vmatprep.mubr.msk.f32.mxu0 %vm5700_vm0, %v7812_v18  ;;  %v3718_v20 = vld [vmem:[%s7790_s2 + $0x2d8] sm:$0xff]  ;;  %v3717_v58 = vld [vmem:[%s7790_s2 + $0x2d0] sm:$0xff] }
 0x19d   : > { %1532 = vst [vmem:[#allocation2 + $0x28] sm:$0xff] %v6550_v22  ;;  %v6561_v34 = vmax.f32 %v1515_v61, 0.0  ;;  %v1518_v19 = vadd.f32 %v6519_v25, %v1503_v62  ;;  %v1502_v2 = vadd.f32 %v1487_v16, %v1364_v26  ;;  %5004 = vmatprep.subr.mxu0 %v7812_v18  ;;  %v3700_v26 = vld [vmem:[%s7790_s2 + $0x248] sm:$0xff]  ;;  %v3699_v62 = vld [vmem:[%s7790_s2 + $0x240] sm:$0xff] }
 0x19e   : > { %v1556_v23 = vld [vmem:[#allocation2 + $0x1] sm:$0xff]  ;;  %5005 = vmatpush3.msra.mxu0 %v3687_v1 }
 0x19f   : > { %1531 = vst [vmem:[#allocation2 + $0x20] sm:$0xff] %v6561_v34  ;;  %v1526_v31 = vmax.f32 %v1518_v19, 0.0  ;;  %v6570_v54 = vadd.f32 %v6519_v25, %v1502_v2  ;;  %4890 = vmatmul.mubr.f32.vlgmr.msra.gmra.mxu1 %v1556_v23  ;;  %5006 = vmatprep.subr.mxu0 %v7812_v18  ;;  %v1758_v59 = vld [vmem:[#allocation2 + $0x2] sm:$0xff]  ;;  %v3698_v19 = vld [vmem:[%s7790_s2 + $0x238] sm:$0xff]  ;;  %v3713_v23 = vld [vmem:[%s7790_s2 + $0x2b0] sm:$0xff] }
 0x1a0   : > { %4952 = vmatpush3.msra.mxu1 %v3674_v5  ;;  %4892 = vmatprep.mubr.msk.f32.mxu1 %vm5700_vm0, %v7812_v18  ;;  %v3716_v61 = vld [vmem:[%s7790_s2 + $0x2c8] sm:$0xff]  ;;  %v3715_v1 = vld [vmem:[%s7790_s2 + $0x2c0] sm:$0xff]  ;;  %v3714_v2 = vld [vmem:[%s7790_s2 + $0x2b8] sm:$0xff] }
 0x1a1   : > { %1534 = vst [vmem:[#allocation2 + $0x38] sm:$0xff] %v1526_v31  ;;  %v1525_v9 = vmax.f32 %v6570_v54, 0.0  ;;  %4953 = vmatprep.subr.mxu1 %v7812_v18  ;;  %4943 = vmatmul.mubr.f32.gmra.mxu0 %v6542_v12  ;;  %v3697_v5 = vld [vmem:[%s7790_s2 + $0x230] sm:$0xff]  ;;  %v3696_v31 = vld [vmem:[%s7790_s2 + $0x228] sm:$0xff]  ;;  %v3759_v54 = vld [vmem:[%s7790_s2 + $0x420] sm:$0xff] }
 0x1a2   : > { %4954 = vmatpush3.msra.mxu1 %v3673_v17  ;;  %v6587_v25 = vld [vmem:[#allocation2 + $0x9] sm:$0xff]  ;;  %5007 = vmatpush3.msra.mxu0 %v3686_v6  ;;  %v6606_v24 = vld [vmem:[#allocation2 + $0x11] sm:$0xff]  ;;  %v3695_v6 = vld [vmem:[%s7790_s2 + $0x220] sm:$0xff] }
 0x1a3   : > { %1533 = vst [vmem:[#allocation2 + $0x30] sm:$0xff] %v1525_v9  ;;  %4955 = vmatprep.subr.mxu1 %v7812_v18  ;;  %4893 = vmatmul.mubr.f32.gmra.mxu1 %v6587_v25  ;;  %v6759_v8 = vld [vmem:[#allocation2 + $0x12] sm:$0xff]  ;;  %v3712_v17 = vld [vmem:[%s7790_s2 + $0x2a8] sm:$0xff] }
 0x1a4   : > { %4956 = vmatpush3.msra.mxu1 %v3672_v32  ;;  %4895 = vmatprep.mubr.msk.f32.mxu1 %vm5700_vm0, %v7812_v18  ;;  %v3711_v32 = vld [vmem:[%s7790_s2 + $0x2a0] sm:$0xff] }
 0x1a5   : > { %4957 = vmatprep.subr.mxu1 %v7812_v18  ;;  %5008 = vmatprep.subr.mxu0 %v7812_v18 }
 0x1a6   : > { %4958 = vmatpush3.msra.mxu1 %v3671_v10  ;;  %5009 = vmatpush3.msra.mxu0 %v3685_v41  ;;  %v6622_v29 = vld [vmem:[#allocation2 + $0x19] sm:$0xff]  ;;  %v6646_v37 = vld [vmem:[#allocation2 + $0x21] sm:$0xff] }
 0x1a7   : > { %4959 = vmatprep.subr.mxu1 %v7812_v18  ;;  %4896 = vmatmul.mubr.f32.gmra.mxu1 %v6606_v24  ;;  %v6783_v14 = vld [vmem:[#allocation2 + $0x1a] sm:$0xff]  ;;  %v6807_v16 = vld [vmem:[#allocation2 + $0x22] sm:$0xff] }
 0x1a8   : > { %4960 = vmatpush3.msra.mxu1 %v3670_v42  ;;  %4898 = vmatprep.mubr.msk.f32.mxu1 %vm5700_vm0, %v7812_v18  ;;  %v3694_v10 = vld [vmem:[%s7790_s2 + $0x218] sm:$0xff]  ;;  %v3693_v42 = vld [vmem:[%s7790_s2 + $0x210] sm:$0xff] }
 0x1a9   : > { %4961 = vmatprep.subr.mxu1 %v7812_v18  ;;  %4945 = vmatprep.mubr.msk.f32.mxu0 %vm5700_vm0, %v7812_v18  ;;  %v3710_v41 = vld [vmem:[%s7790_s2 + $0x298] sm:$0xff] }
 0x1aa   : > { %4962 = vmatpush3.msra.mxu1 %v3669_v27  ;;  %5010 = vmatprep.subr.mxu0 %v7812_v18  ;;  %v3709_v27 = vld [vmem:[%s7790_s2 + $0x290] sm:$0xff] }
 0x1ab   : > { %4963 = vmatprep.subr.mxu1 %v7812_v18  ;;  %4899 = vmatmul.mubr.f32.gmra.mxu1 %v6622_v29 }
 0x1ac   : > { %4946 = vmatmul.mubr.f32.gmra.mxu0 %v6533_v47  ;;  %4964 = vmatpush3.msra.mxu1 %v3668_v28  ;;  %v3692_v28 = vld [vmem:[%s7790_s2 + $0x208] sm:$0xff] }
 0x1ad   : > { %5011 = vmatpush3.msra.mxu0 %v3684_v30  ;;  %4965 = vmatprep.subr.mxu1 %v7812_v18  ;;  %v3708_v30 = vld [vmem:[%s7790_s2 + $0x288] sm:$0xff] }
 0x1ae   : > { %5012 = vmatprep.subr.mxu0 %v7812_v18  ;;  %4966 = vmatpush3.msra.mxu1 %v3667_v33  ;;  %v3691_v33 = vld [vmem:[%s7790_s2 + $0x200] sm:$0xff] }
 0x1af   : > { %5013 = vmatpush3.msra.mxu0 %v3683_v38  ;;  %4901 = vmatprep.mubr.msk.f32.mxu1 %vm5700_vm0, %v7812_v18  ;;  %v3707_v38 = vld [vmem:[%s7790_s2 + $0x280] sm:$0xff] }
 0x1b0   : > { %4948 = vmatprep.mubr.msk.f32.mxu0 %vm5700_vm0, %v7812_v18  ;;  %4967 = vmatprep.subr.mxu1 %v7812_v18 }
 0x1b1   : > { %5014 = vmatprep.subr.mxu0 %v7812_v18  ;;  %4902 = vmatmul.mubr.f32.gmra.mxu1 %v6646_v37 }
 0x1b2   : > { %4949 = vmatmul.mubr.f32.gmra.mxu0 %v6561_v34  ;;  %4968 = vmatpush3.msra.mxu1 %v3666_v39  ;;  %v3738_v39 = vld [vmem:[%s7790_s2 + $0x378] sm:$0xff] }
 0x1b3   : > { %5015 = vmatpush3.msra.mxu0 %v3682_v36  ;;  %4969 = vmatprep.subr.mxu1 %v7812_v18  ;;  %v3754_v36 = vld [vmem:[%s7790_s2 + $0x3f8] sm:$0xff] }
 0x1b4   : > { %5016 = vmatprep.subr.mxu0 %v7812_v18  ;;  %4970 = vmatpush3.msra.mxu1 %v3665_v43  ;;  %v3737_v43 = vld [vmem:[%s7790_s2 + $0x370] sm:$0xff] }
 0x1b5   : > { %5017 = vmatpush3.msra.mxu0 %v3681_v44  ;;  %4971 = vmatprep.subr.mxu1 %v7812_v18  ;;  %v3736_v44 = vld [vmem:[%s7790_s2 + $0x368] sm:$0xff] }
 0x1b6   : > { %5018 = vmatprep.subr.mxu0 %v7812_v18  ;;  %4972 = vmatpush3.msra.mxu1 %v3664_v45  ;;  %v3752_v45 = vld [vmem:[%s7790_s2 + $0x3e8] sm:$0xff] }
 0x1b7   : > { %5019 = vmatpush3.msra.mxu0 %v3680_v48  ;;  %4973 = vmatprep.subr.mxu1 %v7812_v18  ;;  %v3735_v48 = vld [vmem:[%s7790_s2 + $0x360] sm:$0xff] }
 0x1b8   : > { %5020 = vmatprep.subr.mxu0 %v7812_v18  ;;  %4974 = vmatpush3.msra.mxu1 %v3663_v49  ;;  %v3751_v49 = vld [vmem:[%s7790_s2 + $0x3e0] sm:$0xff] }
 0x1b9   : > { %5021 = vmatpush3.msra.mxu0 %v3679_v52  ;;  %4975 = vmatprep.subr.mxu1 %v7812_v18  ;;  %v3734_v52 = vld [vmem:[%s7790_s2 + $0x358] sm:$0xff] }
 0x1ba   : > { %5022 = vmatprep.subr.mxu0 %v7812_v18  ;;  %4976 = vmatpush3.msra.mxu1 %v3662_v40  ;;  %v3750_v40 = vld [vmem:[%s7790_s2 + $0x3d8] sm:$0xff] }
 0x1bb   : > { %5023 = vmatpush3.msra.mxu0 %v3678_v55  ;;  %4977 = vmatprep.subr.mxu1 %v7812_v18  ;;  %v3733_v55 = vld [vmem:[%s7790_s2 + $0x350] sm:$0xff] }
 0x1bc   : > { %5024 = vmatprep.subr.mxu0 %v7812_v18  ;;  %4978 = vmatpush3.msra.mxu1 %v3661_v56  ;;  %v3749_v56 = vld [vmem:[%s7790_s2 + $0x3d0] sm:$0xff] }
 0x1bd   : > { %5025 = vmatpush3.msra.mxu0 %v3677_v60  ;;  %4979 = vmatprep.subr.mxu1 %v7812_v18  ;;  %v3732_v60 = vld [vmem:[%s7790_s2 + $0x348] sm:$0xff] }
 0x1be   : > { %5026 = vmatprep.subr.mxu0 %v7812_v18  ;;  %4980 = vmatpush3.msra.mxu1 %v3660_v63  ;;  %v3748_v63 = vld [vmem:[%s7790_s2 + $0x3c8] sm:$0xff] }
 0x1bf   : > { %5027 = vmatpush3.msra.mxu0 %v3676_v3  ;;  %4981 = vmatprep.subr.mxu1 %v7812_v18  ;;  %v3731_v3 = vld [vmem:[%s7790_s2 + $0x340] sm:$0xff] }
 0x1c0   : > { %5028 = vmatprep.subr.mxu0 %v7812_v18  ;;  %4982 = vmatpush3.msra.mxu1 %v3659_v46  ;;  %v3747_v46 = vld [vmem:[%s7790_s2 + $0x3c0] sm:$0xff] }
 0x1c1   : > { %4983 = vmatprep.mubr.msk.f32.mxu1 %vm5700_vm0, %v7812_v18  ;;  %5029 = vmatpush3.msra.mxu0 %v3675_v7  ;;  %v6967_v7 = vld [vmem:[#allocation2 + $0x29] sm:$0xff] }
 0x1c2   : > { %5030 = vmatprep.mubr.msk.f32.mxu0 %vm5700_vm0, %v7812_v18  ;;  %4984 = vmatmul.mubr.f32.vlgmr.msra.gmra.mxu1 %v1758_v59  ;;  %v3730_v59 = vld [vmem:[%s7790_s2 + $0x338] sm:$0xff] }
 0x1c3   : > { %5031 = vmatmul.mubr.f32.vlgmr.msra.gmra.mxu0 %v6524_v51  ;;  %5045 = vmatprep.subr.mxu1 %v7812_v18  ;;  %v6735_v51 = vld [vmem:[#allocation2 + $0xa] sm:$0xff] }
 0x1c4   : > { %5092 = vmatprep.subr.mxu0 %v7812_v18  ;;  %5046 = vmatpush3.msra.mxu1 %v3706_v11  ;;  %v6973_v11 = vld [vmem:[#allocation2 + $0x2a] sm:$0xff] }
 0x1c5   : > { %5093 = vmatpush3.msra.mxu0 %v3722_v0  ;;  %5047 = vmatprep.subr.mxu1 %v7812_v18  ;;  %v3746_v0 = vld [vmem:[%s7790_s2 + $0x3b8] sm:$0xff] }
 0x1c6   : > { %5094 = vmatprep.subr.mxu0 %v7812_v18  ;;  %4986 = vmatprep.mubr.msk.f32.mxu1 %vm5700_vm0, %v7812_v18 }
 0x1c7   : > { %5033 = vmatprep.mubr.msk.f32.mxu0 %vm5700_vm0, %v7812_v18  ;;  %5048 = vmatpush3.msra.mxu1 %v3705_v13  ;;  %v3729_v13 = vld [vmem:[%s7790_s2 + $0x330] sm:$0xff] }
 0x1c8   : > { %5095 = vmatpush3.msra.mxu0 %v3721_v21  ;;  %4987 = vmatmul.mubr.f32.gmra.mxu1 %v6735_v51  ;;  %v3745_v21 = vld [vmem:[%s7790_s2 + $0x3b0] sm:$0xff] }
 0x1c9   : > { %5034 = vmatmul.mubr.f32.gmra.mxu0 %v6542_v12  ;;  %5049 = vmatprep.subr.mxu1 %v7812_v18 }
 0x1ca   : > { %5096 = vmatprep.subr.mxu0 %v7812_v18  ;;  %5050 = vmatpush3.msra.mxu1 %v3704_v4  ;;  %v3744_v4 = vld [vmem:[%s7790_s2 + $0x3a8] sm:$0xff] }
 0x1cb   : > { %5097 = vmatpush3.msra.mxu0 %v3720_v15  ;;  %5051 = vmatprep.subr.mxu1 %v7812_v18  ;;  %v3727_v15 = vld [vmem:[%s7790_s2 + $0x320] sm:$0xff] }
 0x1cc   : > { %5098 = vmatprep.subr.mxu0 %v7812_v18  ;;  %4989 = vmatprep.mubr.msk.f32.mxu1 %vm5700_vm0, %v7812_v18 }
 0x1cd   : > { %5036 = vmatprep.mubr.msk.f32.mxu0 %vm5700_vm0, %v7812_v18  ;;  %5052 = vmatpush3.msra.mxu1 %v3703_v35  ;;  %v3743_v35 = vld [vmem:[%s7790_s2 + $0x3a0] sm:$0xff] }
 0x1ce   : > { %5099 = vmatpush3.msra.mxu0 %v3719_v50  ;;  %4990 = vmatmul.mubr.f32.gmra.mxu1 %v6759_v8  ;;  %v3726_v50 = vld [vmem:[%s7790_s2 + $0x318] sm:$0xff] }
 0x1cf   : > { %5037 = vmatmul.mubr.f32.gmra.mxu0 %v6533_v47  ;;  %5053 = vmatprep.subr.mxu1 %v7812_v18 }
 0x1d0   : > { %5100 = vmatprep.subr.mxu0 %v7812_v18  ;;  %5054 = vmatpush3.msra.mxu1 %v3702_v53  ;;  %v3742_v53 = vld [vmem:[%s7790_s2 + $0x398] sm:$0xff] }
 0x1d1   : > { %5101 = vmatpush3.msra.mxu0 %v3718_v20  ;;  %5055 = vmatprep.subr.mxu1 %v7812_v18  ;;  %v3725_v20 = vld [vmem:[%s7790_s2 + $0x310] sm:$0xff] }
 0x1d2   : > { %5102 = vmatprep.subr.mxu0 %v7812_v18  ;;  %4992 = vmatprep.mubr.msk.f32.mxu1 %vm5700_vm0, %v7812_v18 }
 0x1d3   : > { %5039 = vmatprep.mubr.msk.f32.mxu0 %vm5700_vm0, %v7812_v18  ;;  %5056 = vmatpush3.msra.mxu1 %v3701_v57  ;;  %v3741_v57 = vld [vmem:[%s7790_s2 + $0x390] sm:$0xff] }
 0x1d4   : > { %5103 = vmatpush3.msra.mxu0 %v3717_v58  ;;  %4993 = vmatmul.mubr.f32.gmra.mxu1 %v6783_v14  ;;  %v3724_v58 = vld [vmem:[%s7790_s2 + $0x308] sm:$0xff] }
 0x1d5   : > { %5040 = vmatmul.mubr.f32.gmra.mxu0 %v6561_v34  ;;  %5057 = vmatprep.subr.mxu1 %v7812_v18 }
 0x1d6   : > { %5104 = vmatprep.subr.mxu0 %v7812_v18  ;;  %5058 = vmatpush3.msra.mxu1 %v3700_v26  ;;  %v3740_v26 = vld [vmem:[%s7790_s2 + $0x388] sm:$0xff] }
 0x1d7   : > { %5105 = vmatpush3.msra.mxu0 %v3716_v61  ;;  %5059 = vmatprep.subr.mxu1 %v7812_v18  ;;  %v3723_v61 = vld [vmem:[%s7790_s2 + $0x300] sm:$0xff] }
 0x1d8   : > { %5106 = vmatprep.subr.mxu0 %v7812_v18  ;;  %4995 = vmatprep.mubr.msk.f32.mxu1 %vm5700_vm0, %v7812_v18 }
 0x1d9   : > { %5042 = vmatprep.mubr.msk.f32.mxu0 %vm5700_vm0, %v7812_v18  ;;  %5060 = vmatpush3.msra.mxu1 %v3699_v62  ;;  %v3739_v62 = vld [vmem:[%s7790_s2 + $0x380] sm:$0xff] }
 0x1da   : > { %5107 = vmatpush3.msra.mxu0 %v3715_v1  ;;  %4996 = vmatmul.mubr.f32.gmra.mxu1 %v6807_v16  ;;  %v3770_v1 = vld [vmem:[%s7790_s2 + $0x478] sm:$0xff] }
 0x1db   : > { %5043 = vmatmul.mubr.f32.gmra.mxu0 %v6550_v22  ;;  %5061 = vmatprep.subr.mxu1 %v7812_v18 }
 0x1dc   : > { %5108 = vmatprep.subr.mxu0 %v7812_v18  ;;  %5062 = vmatpush3.msra.mxu1 %v3698_v19  ;;  %v3769_v19 = vld [vmem:[%s7790_s2 + $0x470] sm:$0xff] }
 0x1dd   : > { %5109 = vmatpush3.msra.mxu0 %v3714_v2  ;;  %5063 = vmatprep.subr.mxu1 %v7812_v18  ;;  %v2347_v2 = vld [vmem:[#allocation2 + $0x31] sm:$0xff] }
 0x1de   : > { %5110 = vmatprep.subr.mxu0 %v7812_v18  ;;  %5064 = vmatpush3.msra.mxu1 %v3697_v5  ;;  %v3761_v5 = vld [vmem:[%s7790_s2 + $0x430] sm:$0xff] }
 0x1df   : > { %5111 = vmatpush3.msra.mxu0 %v3713_v23  ;;  %5065 = vmatprep.subr.mxu1 %v7812_v18  ;;  %v3760_v23 = vld [vmem:[%s7790_s2 + $0x428] sm:$0xff] }
 0x1e0   : > { %5112 = vmatprep.subr.mxu0 %v7812_v18  ;;  %5066 = vmatpush3.msra.mxu1 %v3696_v31  ;;  %v3757_v31 = vld [vmem:[%s7790_s2 + $0x410] sm:$0xff] }
 0x1e1   : > { %5113 = vmatpush3.msra.mxu0 %v3712_v17  ;;  %5067 = vmatprep.subr.mxu1 %v7812_v18  ;;  %v3756_v17 = vld [vmem:[%s7790_s2 + $0x408] sm:$0xff] }
 0x1e2   : > { %5114 = vmatprep.subr.mxu0 %v7812_v18  ;;  %5068 = vmatpush3.msra.mxu1 %v3695_v6  ;;  %v3755_v6 = vld [vmem:[%s7790_s2 + $0x400] sm:$0xff] }
 0x1e3   : > { %5115 = vmatpush3.msra.mxu0 %v3711_v32  ;;  %5069 = vmatprep.subr.mxu1 %v7812_v18 }
 0x1e4   : > { %5116 = vmatprep.subr.mxu0 %v7812_v18  ;;  %5070 = vmatpush3.msra.mxu1 %v3694_v10 }
 0x1e5   : > { %5117 = vmatpush3.msra.mxu0 %v3710_v41  ;;  %5071 = vmatprep.subr.mxu1 %v7812_v18 }
 0x1e6   : > { %5118 = vmatprep.subr.mxu0 %v7812_v18  ;;  %5072 = vmatpush3.msra.mxu1 %v3693_v42 }
 0x1e7   : > { %5119 = vmatpush3.msra.mxu0 %v3709_v27  ;;  %5073 = vmatprep.subr.mxu1 %v7812_v18 }
 0x1e8   : > { %5120 = vmatprep.subr.mxu0 %v7812_v18  ;;  %5074 = vmatpush3.msra.mxu1 %v3692_v28 }
 0x1e9   : > { %5121 = vmatpush3.msra.mxu0 %v3708_v30  ;;  %5075 = vmatprep.subr.mxu1 %v7812_v18 }
 0x1ea   : > { %5122 = vmatprep.subr.mxu0 %v7812_v18  ;;  %5076 = vmatpush3.msra.mxu1 %v3691_v33 }
 0x1eb   : > { %5077 = vmatprep.mubr.msk.f32.mxu1 %vm5700_vm0, %v7812_v18  ;;  %5123 = vmatpush3.msra.mxu0 %v3707_v38 }
 0x1ec   : > { %5124 = vmatprep.mubr.msk.f32.mxu0 %vm5700_vm0, %v7812_v18  ;;  %5078 = vmatmul.mubr.f32.vlgmr.msra.gmra.mxu1 %v6587_v25  ;;  %v3753_v25 = vld [vmem:[%s7790_s2 + $0x3f0] sm:$0xff] }
 0x1ed   : > { %5125 = vmatmul.mubr.f32.vlgmr.msra.gmra.mxu0 %v6735_v51  ;;  %5139 = vmatprep.subr.mxu1 %v7812_v18  ;;  %v3728_v51 = vld [vmem:[%s7790_s2 + $0x328] sm:$0xff] }
 0x1ee   : > { %5186 = vmatprep.subr.mxu0 %v7812_v18  ;;  %5140 = vmatpush3.msra.mxu1 %v3738_v39 }
 0x1ef   : > { %5187 = vmatpush3.msra.mxu0 %v3754_v36  ;;  %5141 = vmatprep.subr.mxu1 %v7812_v18  ;;  %v3787_v36 = vld [vmem:[%s7791_s3 + $0xf8] sm:$0xff] }
 0x1f0   : > { %5188 = vmatprep.subr.mxu0 %v7812_v18  ;;  %5080 = vmatprep.mubr.msk.f32.mxu1 %vm5700_vm0, %v7812_v18 }
 0x1f1   : > { %5127 = vmatprep.mubr.msk.f32.mxu0 %vm5700_vm0, %v7812_v18  ;;  %5142 = vmatpush3.msra.mxu1 %v3737_v43  ;;  %v2615_v43 = vld [vmem:[%s7791_s3 + $0x78] sm:$0xff] }
 0x1f2   : > { %5189 = vmatpush3.msra.mxu0 %v3753_v25  ;;  %5081 = vmatmul.mubr.f32.gmra.mxu1 %v6606_v24 }
 0x1f3   : > { %5128 = vmatmul.mubr.f32.gmra.mxu0 %v6759_v8  ;;  %5143 = vmatprep.subr.mxu1 %v7812_v18 }
 0x1f4   : > { %5190 = vmatprep.subr.mxu0 %v7812_v18  ;;  %5144 = vmatpush3.msra.mxu1 %v3736_v44 }
 0x1f5   : > { %5191 = vmatpush3.msra.mxu0 %v3752_v45  ;;  %5145 = vmatprep.subr.mxu1 %v7812_v18 }
 0x1f6   : > { %5192 = vmatprep.subr.mxu0 %v7812_v18  ;;  %5083 = vmatprep.mubr.msk.f32.mxu1 %vm5700_vm0, %v7812_v18 }
 0x1f7   : > { %5130 = vmatprep.mubr.msk.f32.mxu0 %vm5700_vm0, %v7812_v18  ;;  %5146 = vmatpush3.msra.mxu1 %v3735_v48  ;;  %v3786_v48 = vld [vmem:[%s7791_s3 + $0xf0] sm:$0xff] }
 0x1f8   : > { %5193 = vmatpush3.msra.mxu0 %v3751_v49  ;;  %5084 = vmatmul.mubr.f32.gmra.mxu1 %v6622_v29  ;;  %v2614_v49 = vld [vmem:[%s7791_s3 + $0x70] sm:$0xff] }
 0x1f9   : > { %5131 = vmatmul.mubr.f32.gmra.mxu0 %v6783_v14  ;;  %5147 = vmatprep.subr.mxu1 %v7812_v18 }
 0x1fa   : > { %5194 = vmatprep.subr.mxu0 %v7812_v18  ;;  %5148 = vmatpush3.msra.mxu1 %v3734_v52  ;;  %v3785_v52 = vld [vmem:[%s7791_s3 + $0xe8] sm:$0xff] }
 0x1fb   : > { %5195 = vmatpush3.msra.mxu0 %v3750_v40  ;;  %5149 = vmatprep.subr.mxu1 %v7812_v18 }
 0x1fc   : > { %5196 = vmatprep.subr.mxu0 %v7812_v18  ;;  %5086 = vmatprep.mubr.msk.f32.mxu1 %vm5700_vm0, %v7812_v18 }
 0x1fd   : > { %5133 = vmatprep.mubr.msk.f32.mxu0 %vm5700_vm0, %v7812_v18  ;;  %5150 = vmatpush3.msra.mxu1 %v3733_v55  ;;  %v2613_v55 = vld [vmem:[%s7791_s3 + $0x68] sm:$0xff] }
 0x1fe   : > { %5197 = vmatpush3.msra.mxu0 %v3749_v56  ;;  %5087 = vmatmul.mubr.f32.gmra.mxu1 %v6646_v37 }
 0x1ff   : > { %5134 = vmatmul.mubr.f32.gmra.mxu0 %v6807_v16  ;;  %5151 = vmatprep.subr.mxu1 %v7812_v18 }
 0x200   : > { %5198 = vmatprep.subr.mxu0 %v7812_v18  ;;  %5152 = vmatpush3.msra.mxu1 %v3732_v60  ;;  %v3784_v60 = vld [vmem:[%s7791_s3 + $0xe0] sm:$0xff] }
 0x201   : > { %5199 = vmatpush3.msra.mxu0 %v3748_v63  ;;  %5153 = vmatprep.subr.mxu1 %v7812_v18  ;;  %v2612_v63 = vld [vmem:[%s7791_s3 + $0x60] sm:$0xff] }
 0x202   : > { %5200 = vmatprep.subr.mxu0 %v7812_v18  ;;  %5089 = vmatprep.mubr.msk.f32.mxu1 %vm5700_vm0, %v7812_v18 }
 0x203   : > { %5136 = vmatprep.mubr.msk.f32.mxu0 %vm5700_vm0, %v7812_v18  ;;  %5154 = vmatpush3.msra.mxu1 %v3731_v3 }
 0x204   : > { %5201 = vmatpush3.msra.mxu0 %v3747_v46  ;;  %5090 = vmatmul.mubr.f32.gmra.mxu1 %v6967_v7  ;;  %v3783_v46 = vld [vmem:[%s7791_s3 + $0xd8] sm:$0xff] }
 0x205   : > { %5137 = vmatmul.mubr.f32.gmra.mxu0 %v6973_v11  ;;  %5155 = vmatprep.subr.mxu1 %v7812_v18 }
 0x206   : > { %5202 = vmatprep.subr.mxu0 %v7812_v18  ;;  %5156 = vmatpush3.msra.mxu1 %v3730_v59 }
 0x207   : > { %5203 = vmatpush3.msra.mxu0 %v3746_v0  ;;  %5157 = vmatprep.subr.mxu1 %v7812_v18  ;;  %v2610_v0 = vld [vmem:[%s7791_s3 + $0x50] sm:$0xff] }
 0x208   : > { %5204 = vmatprep.subr.mxu0 %v7812_v18  ;;  %5158 = vmatpush3.msra.mxu1 %v3729_v13 }
 0x209   : > { %5205 = vmatpush3.msra.mxu0 %v3745_v21  ;;  %5159 = vmatprep.subr.mxu1 %v7812_v18 }
 0x20a   : > { %5206 = vmatprep.subr.mxu0 %v7812_v18  ;;  %5160 = vmatpush3.msra.mxu1 %v3728_v51 }
 0x20b   : > { %5207 = vmatpush3.msra.mxu0 %v3744_v4  ;;  %5161 = vmatprep.subr.mxu1 %v7812_v18  ;;  %v3781_v4 = vld [vmem:[%s7791_s3 + $0xc8] sm:$0xff] }
 0x20c   : > { %5208 = vmatprep.subr.mxu0 %v7812_v18  ;;  %5162 = vmatpush3.msra.mxu1 %v3727_v15  ;;  %v2609_v15 = vld [vmem:[%s7791_s3 + $0x48] sm:$0xff] }
 0x20d   : > { %5209 = vmatpush3.msra.mxu0 %v3743_v35  ;;  %5163 = vmatprep.subr.mxu1 %v7812_v18 }
 0x20e   : > { %5210 = vmatprep.subr.mxu0 %v7812_v18  ;;  %5164 = vmatpush3.msra.mxu1 %v3726_v50  ;;  %v3780_v50 = vld [vmem:[%s7791_s3 + $0xc0] sm:$0xff] }
 0x20f   : > { %5211 = vmatpush3.msra.mxu0 %v3742_v53  ;;  %5165 = vmatprep.subr.mxu1 %v7812_v18  ;;  %v2608_v53 = vld [vmem:[%s7791_s3 + $0x40] sm:$0xff] }
 0x210   : > { %5212 = vmatprep.subr.mxu0 %v7812_v18  ;;  %5166 = vmatpush3.msra.mxu1 %v3725_v20  ;;  %v3779_v20 = vld [vmem:[%s7791_s3 + $0xb8] sm:$0xff] }
 0x211   : > { %5213 = vmatpush3.msra.mxu0 %v3741_v57  ;;  %5167 = vmatprep.subr.mxu1 %v7812_v18  ;;  %v2607_v57 = vld [vmem:[%s7791_s3 + $0x38] sm:$0xff] }
 0x212   : > { %5214 = vmatprep.subr.mxu0 %v7812_v18  ;;  %5168 = vmatpush3.msra.mxu1 %v3724_v58  ;;  %v3778_v58 = vld [vmem:[%s7791_s3 + $0xb0] sm:$0xff] }
 0x213   : > { %5215 = vmatpush3.msra.mxu0 %v3740_v26  ;;  %5169 = vmatprep.subr.mxu1 %v7812_v18  ;;  %v2606_v26 = vld [vmem:[%s7791_s3 + $0x30] sm:$0xff] }
 0x214   : > { %5216 = vmatprep.subr.mxu0 %v7812_v18  ;;  %5170 = vmatpush3.msra.mxu1 %v3723_v61  ;;  %v3777_v61 = vld [vmem:[%s7791_s3 + $0xa8] sm:$0xff] }
 0x215   : > { %5171 = vmatprep.mubr.msk.f32.mxu1 %vm5700_vm0, %v7812_v18  ;;  %5217 = vmatpush3.msra.mxu0 %v3739_v62  ;;  %v2605_v62 = vld [vmem:[%s7791_s3 + $0x28] sm:$0xff] }
 0x216   : > { %5218 = vmatprep.mubr.msk.f32.mxu0 %vm5700_vm0, %v7812_v18  ;;  %5172 = vmatmul.mubr.f32.vlgmr.msra.gmra.mxu1 %v6542_v12  ;;  %v3768_v12 = vld [vmem:[%s7790_s2 + $0x468] sm:$0xff] }
 0x217   : > { %5219 = vmatmul.mubr.f32.vlgmr.msra.gmra.mxu0 %v6606_v24  ;;  %5233 = vmatprep.subr.mxu1 %v7812_v18  ;;  %v3767_v24 = vld [vmem:[%s7790_s2 + $0x460] sm:$0xff] }
 0x218   : > { %5234 = vmatpush3.msra.mxu1 %v3770_v1  ;;  %5174 = vmatprep.mubr.msk.f32.mxu1 %vm5700_vm0, %v7812_v18 }
 0x219   : > { %5235 = vmatprep.subr.mxu1 %v7812_v18  ;;  %5221 = vmatprep.mubr.msk.f32.mxu0 %vm5700_vm0, %v7812_v18 }
 0x21a   : > { %5236 = vmatpush3.msra.mxu1 %v3769_v19  ;;  %5280 = vmatprep.subr.mxu0 %v7812_v18 }
 0x21b   : > { %5175 = vmatmul.mubr.f32.gmra.mxu1 %v6533_v47  ;;  %5222 = vmatmul.mubr.f32.gmra.mxu0 %v6622_v29  ;;  %v3766_v47 = vld [vmem:[%s7790_s2 + $0x458] sm:$0xff]  ;;  %v3765_v29 = vld [vmem:[%s7790_s2 + $0x450] sm:$0xff] }
 0x21c   : > { %5237 = vmatprep.subr.mxu1 %v7812_v18  ;;  %5177 = vmatprep.mubr.msk.f32.mxu1 %vm5700_vm0, %v7812_v18 }
 0x21d   : > { %5238 = vmatpush3.msra.mxu1 %v3768_v12  ;;  %5224 = vmatprep.mubr.msk.f32.mxu0 %vm5700_vm0, %v7812_v18 }
 0x21e   : > { %5239 = vmatprep.subr.mxu1 %v7812_v18  ;;  %5281 = vmatpush3.msra.mxu0 %v3787_v36 }
 0x21f   : > { %5240 = vmatpush3.msra.mxu1 %v3767_v24  ;;  %5225 = vmatmul.mubr.f32.gmra.mxu0 %v6646_v37  ;;  %v3764_v37 = vld [vmem:[%s7790_s2 + $0x448] sm:$0xff]  ;;  %v3776_v24 = vld [vmem:[%s7791_s3 + $0xa0] sm:$0xff] }
 0x220   : > { %5178 = vmatmul.mubr.f32.gmra.mxu1 %v6561_v34  ;;  %5241 = vmatprep.subr.mxu1 %v7812_v18  ;;  %v3763_v34 = vld [vmem:[%s7790_s2 + $0x440] sm:$0xff] }
 0x221   : > { %5242 = vmatpush3.msra.mxu1 %v3766_v47  ;;  %5180 = vmatprep.mubr.msk.f32.mxu1 %vm5700_vm0, %v7812_v18  ;;  %v2604_v47 = vld [vmem:[%s7791_s3 + $0x20] sm:$0xff] }
 0x222   : > { %5243 = vmatprep.subr.mxu1 %v7812_v18  ;;  %5227 = vmatprep.mubr.msk.f32.mxu0 %vm5700_vm0, %v7812_v18 }
 0x223   : > { %5244 = vmatpush3.msra.mxu1 %v3765_v29  ;;  %5228 = vmatmul.mubr.f32.gmra.mxu0 %v6967_v7  ;;  %v2611_v7 = vld [vmem:[%s7791_s3 + $0x58] sm:$0xff] }
 0x224   : > { %5181 = vmatmul.mubr.f32.gmra.mxu1 %v6550_v22  ;;  %5245 = vmatprep.subr.mxu1 %v7812_v18  ;;  %v3762_v22 = vld [vmem:[%s7790_s2 + $0x438] sm:$0xff] }
 0x225   : > { %5246 = vmatpush3.msra.mxu1 %v3764_v37  ;;  %5183 = vmatprep.mubr.msk.f32.mxu1 %vm5700_vm0, %v7812_v18  ;;  %v3775_v29 = vld [vmem:[%s7791_s3 + $0x98] sm:$0xff] }
 0x226   : > { %5247 = vmatprep.subr.mxu1 %v7812_v18  ;;  %5230 = vmatprep.mubr.msk.f32.mxu0 %vm5700_vm0, %v7812_v18 }
 0x227   : > { %5248 = vmatpush3.msra.mxu1 %v3763_v34  ;;  %5231 = vmatmul.mubr.f32.gmra.mxu0 %v2347_v2  ;;  %v2603_v34 = vld [vmem:[%s7791_s3 + $0x18] sm:$0xff] }
 0x228   : > { %5184 = vmatmul.mubr.f32.gmra.mxu1 %v1525_v9  ;;  %5249 = vmatprep.subr.mxu1 %v7812_v18  ;;  %v3758_v9 = vld [vmem:[%s7790_s2 + $0x418] sm:$0xff] }
 0x229   : > { %5250 = vmatpush3.msra.mxu1 %v3762_v22  ;;  %5265 = vmatprep.mubr.msk.f32.mxu1 %vm5700_vm0, %v7812_v18 }
 0x22a   : > { %5251 = vmatprep.subr.mxu1 %v7812_v18  ;;  %5312 = vmatprep.mubr.msk.f32.mxu0 %vm5700_vm0, %v7812_v18 }
 0x22b   : > { %5252 = vmatpush3.msra.mxu1 %v3761_v5  ;;  %5282 = vmatprep.subr.mxu0 %v7812_v18  ;;  %v3774_v5 = vld [vmem:[%s7791_s3 + $0x90] sm:$0xff] }
 0x22c   : > { %5253 = vmatprep.subr.mxu1 %v7812_v18  ;;  %5283 = vmatpush3.msra.mxu0 %v3786_v48 }
 0x22d   : > { %5254 = vmatpush3.msra.mxu1 %v3760_v23  ;;  %5284 = vmatprep.subr.mxu0 %v7812_v18  ;;  %v2602_v23 = vld [vmem:[%s7791_s3 + $0x10] sm:$0xff] }
 0x22e   : > { %5255 = vmatprep.subr.mxu1 %v7812_v18  ;;  %5285 = vmatpush3.msra.mxu0 %v3785_v52 }
 0x22f   : > { %5256 = vmatpush3.msra.mxu1 %v3759_v54  ;;  %5286 = vmatprep.subr.mxu0 %v7812_v18  ;;  %v3773_v54 = vld [vmem:[%s7791_s3 + $0x88] sm:$0xff] }
 0x230   : > { %5257 = vmatprep.subr.mxu1 %v7812_v18  ;;  %5287 = vmatpush3.msra.mxu0 %v3784_v60 }
 0x231   : > { %5258 = vmatpush3.msra.mxu1 %v3758_v9  ;;  %5288 = vmatprep.subr.mxu0 %v7812_v18 }
 0x232   : > { %5259 = vmatprep.subr.mxu1 %v7812_v18  ;;  %5289 = vmatpush3.msra.mxu0 %v3783_v46 }
 0x233   : > { %5260 = vmatpush3.msra.mxu1 %v3757_v31  ;;  %5290 = vmatprep.subr.mxu0 %v7812_v18  ;;  %v2601_v31 = vld [vmem:[%s7791_s3 + $0x8] sm:$0xff] }
 0x234   : > { %5261 = vmatprep.subr.mxu1 %v7812_v18 }
 0x235   : > { %5262 = vmatpush3.msra.mxu1 %v3756_v17 }
 0x236   : > { %5263 = vmatprep.subr.mxu1 %v7812_v18 }
 0x237   : > { %5264 = vmatpush3.msra.mxu1 %v3755_v6 }
 0x238   : > { %5266 = vmatmul.mubr.f32.vlgmr.msra.gmra.mxu1 %v6759_v8  ;;  %5315 = vmatprep.subr.mxu1 %v7812_v18  ;;  %v2464_v8 = vld [vmem:[#allocation2 + $0x32] sm:$0xff] }
 0x239   : > { %5268 = vmatprep.mubr.msk.f32.mxu1 %vm5700_vm0, %v7812_v18  ;;  %5316 = vmatpush3.msra.mxu1 %v2615_v43 }
 0x23a   : > { %5317 = vmatprep.subr.mxu1 %v7812_v18 }
 0x23b   : > { %5318 = vmatpush3.msra.mxu1 %v2614_v49 }
 0x23c   : > { %5269 = vmatmul.mubr.f32.gmra.mxu1 %v6783_v14  ;;  %5319 = vmatprep.subr.mxu1 %v7812_v18 }
 0x23d   : > { %5271 = vmatprep.mubr.msk.f32.mxu1 %vm5700_vm0, %v7812_v18  ;;  %5320 = vmatpush3.msra.mxu1 %v2613_v55 }
 0x23e   : > { %5321 = vmatprep.subr.mxu1 %v7812_v18 }
 0x23f   : > { %5322 = vmatpush3.msra.mxu1 %v2612_v63 }
 0x240   : > { %5272 = vmatmul.mubr.f32.gmra.mxu1 %v6807_v16  ;;  %5323 = vmatprep.subr.mxu1 %v7812_v18 }
 0x241   : > { %5274 = vmatprep.mubr.msk.f32.mxu1 %vm5700_vm0, %v7812_v18  ;;  %5324 = vmatpush3.msra.mxu1 %v2611_v7 }
 0x242   : > { %5325 = vmatprep.subr.mxu1 %v7812_v18 }
 0x243   : > { %5326 = vmatpush3.msra.mxu1 %v2610_v0 }
 0x244   : > { %5275 = vmatmul.mubr.f32.gmra.mxu1 %v6973_v11  ;;  %v3782_v11 = vld [vmem:[%s7791_s3 + $0xd0] sm:$0xff]  ;;  %5327 = vmatprep.subr.mxu1 %v7812_v18 }
 0x245   : > { %5277 = vmatprep.mubr.msk.f32.mxu1 %vm5700_vm0, %v7812_v18  ;;  %5291 = vmatpush3.msra.mxu0 %v3782_v11 }
 0x246   : > { %5292 = vmatprep.subr.mxu0 %v7812_v18  ;;  %5328 = vmatpush3.msra.mxu1 %v2609_v15 }
 0x247   : > { %5293 = vmatpush3.msra.mxu0 %v3781_v4  ;;  %5329 = vmatprep.subr.mxu1 %v7812_v18 }
 0x248   : > { %5278 = vmatmul.mubr.f32.gmra.mxu1 %v2464_v8  ;;  %5294 = vmatprep.subr.mxu0 %v7812_v18 }
 0x249   : > { %5347 = vmatprep.mubr.msk.f32.mxu1 %vm5700_vm0, %v7812_v18  ;;  %5295 = vmatpush3.msra.mxu0 %v3780_v50 }
 0x24a   : > { %5330 = vmatpush3.msra.mxu1 %v2608_v53  ;;  %5296 = vmatprep.subr.mxu0 %v7812_v18 }
 0x24b   : > { %5331 = vmatprep.subr.mxu1 %v7812_v18  ;;  %5297 = vmatpush3.msra.mxu0 %v3779_v20 }
 0x24c   : > { %5332 = vmatpush3.msra.mxu1 %v2607_v57  ;;  %5298 = vmatprep.subr.mxu0 %v7812_v18 }
 0x24d   : > { %5333 = vmatprep.subr.mxu1 %v7812_v18  ;;  %5299 = vmatpush3.msra.mxu0 %v3778_v58 }
 0x24e   : > { %5334 = vmatpush3.msra.mxu1 %v2606_v26  ;;  %5300 = vmatprep.subr.mxu0 %v7812_v18 }
 0x24f   : > { %5335 = vmatprep.subr.mxu1 %v7812_v18  ;;  %5301 = vmatpush3.msra.mxu0 %v3777_v61 }
 0x250   : > { %5336 = vmatpush3.msra.mxu1 %v2605_v62  ;;  %5302 = vmatprep.subr.mxu0 %v7812_v18 }
 0x251   : > { %5337 = vmatprep.subr.mxu1 %v7812_v18  ;;  %5303 = vmatpush3.msra.mxu0 %v3776_v24 }
 0x252   : > { %5338 = vmatpush3.msra.mxu1 %v2604_v47  ;;  %5304 = vmatprep.subr.mxu0 %v7812_v18 }
 0x253   : > { %5339 = vmatprep.subr.mxu1 %v7812_v18  ;;  %5305 = vmatpush3.msra.mxu0 %v3775_v29 }
 0x254   : > { %5340 = vmatpush3.msra.mxu1 %v2603_v34  ;;  %5306 = vmatprep.subr.mxu0 %v7812_v18 }
 0x255   : > { %5341 = vmatprep.subr.mxu1 %v7812_v18  ;;  %5307 = vmatpush3.msra.mxu0 %v3774_v5 }
 0x256   : > { %5342 = vmatpush3.msra.mxu1 %v2602_v23  ;;  %5308 = vmatprep.subr.mxu0 %v7812_v18 }
 0x257   : > { %v1734_v32 = vpop.f32.mrf.mxu0  ;;  %5343 = vmatprep.subr.mxu1 %v7812_v18  ;;  %5309 = vmatpush3.msra.mxu0 %v3773_v54 }
 0x258   : > { %5344 = vmatpush3.msra.mxu1 %v2601_v31  ;;  %5310 = vmatprep.subr.mxu0 %v7812_v18 }
 0x259   : > { %v4938_v14 = vpop.f32.mrf.mxu0  ;;  %5345 = vmatprep.subr.mxu1 %v7812_v18 }
 0x25a   : > { %v2600_v14 = vld [vmem:[%s7791_s3] sm:$0xff] }
 0x25b   : > { %v1739_v10 = vpop.f32.mrf.mxu0  ;;  %5346 = vmatpush3.msra.mxu1 %v2600_v14 }
 0x25c   : > { %5385 = vmatprep.subr.mxu1 %v7812_v18 }
 0x25d   : > { %v4941_v41 = vpop.f32.mrf.mxu0 }
 0x25f   : > { %v1644_v42 = vpop.f32.mrf.mxu1 }
 0x260   : > { %v7151_v27 = vadd.f32 %v1734_v32, %v1644_v42  ;;  %v3772_v32 = vld [vmem:[%s7791_s3 + $0x80] sm:$0xff] }
 0x261   : > { %v4891_v16 = vpop.f32.mrf.mxu1  ;;  %v1744_v28 = vpop.f32.mrf.mxu0  ;;  %5311 = vmatpush3.msra.mxu0 %v3772_v32 }
 0x262   : > { %5350 = vmatprep.subr.mxu0 %v7812_v18 }
 0x263   : > { %v1649_v30 = vpop.f32.mrf.mxu1  ;;  %v4944_v33 = vpop.f32.mrf.mxu0 }
 0x265   : > { %v4894_v38 = vpop.f32.mrf.mxu1 }
 0x267   : > { %v1654_v39 = vpop.f32.mrf.mxu1 }
 0x268   : > { %v7159_v25 = vadd.f32 %v1744_v28, %v1654_v39 }
 0x269   : > { %v4897_v44 = vpop.f32.mrf.mxu1 }
 0x26b   : > { %v1659_v45 = vpop.f32.mrf.mxu1 }
 0x26c   : > { %v1749_v40 = vpop.f32.mrf.mxu0 }
 0x26d   : > { %v4900_v56 = vpop.f32.mrf.mxu1 }
 0x26e   : > { %v4947_v3 = vpop.f32.mrf.mxu0 }
 0x271   : > { %v1664_v59 = vpop.f32.mrf.mxu1 }
 0x272   : > { %v1754_v13 = vpop.f32.mrf.mxu0 }
 0x273   : > { %v7199_v21 = vadd.f32 %v1754_v13, %v1664_v59  ;;  %v4903_v51 = vpop.f32.mrf.mxu1 }
 0x274   : > { %v4950_v35 = vpop.f32.mrf.mxu0 }
 0x282   : > { %v1846_v1 = vpop.f32.mrf.mxu1 }
 0x283   : > { %v1870_v19 = vadd.f32 %v1846_v1, %v7151_v27  ;;  %v1963_v12 = vpop.f32.mrf.mxu0 }
 0x284   : > { %v4985_v37 = vpop.f32.mrf.mxu1 }
 0x285   : > { %v1987_v2 = vadd.f32 %v1963_v12, %v1870_v19  ;;  %v5032_v22 = vpop.f32.mrf.mxu0 }
 0x288   : > { %v1851_v9 = vpop.f32.mrf.mxu1 }
 0x289   : > { %v1968_v17 = vpop.f32.mrf.mxu0 }
 0x28a   : > { %v4988_v6 = vpop.f32.mrf.mxu1 }
 0x28b   : > { %v5035_v8 = vpop.f32.mrf.mxu0 }
 0x28e   : > { %v1856_v10 = vpop.f32.mrf.mxu1 }
 0x28f   : > { %v1872_v41 = vadd.f32 %v1856_v10, %v7159_v25  ;;  %v1973_v42 = vpop.f32.mrf.mxu0  ;;  %v3771_v10 = vld [vmem:[%s7793_s5] ss:$0 sm:$0xff] }
 0x290   : > { %v4991_v27 = vpop.f32.mrf.mxu1 }
 0x291   : > { %v1989_v16 = vadd.f32 %v1973_v42, %v1872_v41  ;;  %v5038_v28 = vpop.f32.mrf.mxu0 }
 0x294   : > { %v1861_v30 = vpop.f32.mrf.mxu1 }
 0x295   : > { %v1978_v33 = vpop.f32.mrf.mxu0 }
 0x296   : > { %v4994_v38 = vpop.f32.mrf.mxu1 }
 0x297   : > { %v5041_v39 = vpop.f32.mrf.mxu0 }
 0x29a   : > { %v1866_v36 = vpop.f32.mrf.mxu1 }
 0x29b   : > { %v1874_v43 = vadd.f32 %v1866_v36, %v7199_v21  ;;  %v1983_v44 = vpop.f32.mrf.mxu0 }
 0x29c   : > { %v4997_v45 = vpop.f32.mrf.mxu1 }
 0x29d   : > { %v1991_v48 = vadd.f32 %v1983_v44, %v1874_v43  ;;  %v5044_v49 = vpop.f32.mrf.mxu0 }
 0x2ac   : > { %v2080_v52 = vpop.f32.mrf.mxu1 }
 0x2ad   : > { %v2104_v40 = vadd.f32 %v2080_v52, %v1987_v2  ;;  %v2197_v55 = vpop.f32.mrf.mxu0 }
 0x2ae   : > { %v5079_v56 = vpop.f32.mrf.mxu1 }
 0x2af   : > { %v2221_v25 = vadd.f32 %v2197_v55, %v2104_v40  ;;  %v5126_v60 = vpop.f32.mrf.mxu0  ;;  %v3803_v56 = vld [vmem:[%s7791_s3 + $0x178] sm:$0xff] }
 0x2b2   : > { %v2085_v63 = vpop.f32.mrf.mxu1 }
 0x2b3   : > { %v2202_v3 = vpop.f32.mrf.mxu0 }
 0x2b4   : > { %v5082_v46 = vpop.f32.mrf.mxu1 }
 0x2b5   : > { %v5129_v7 = vpop.f32.mrf.mxu0  ;;  %v3802_v46 = vld [vmem:[%s7791_s3 + $0x170] sm:$0xff] }
 0x2b6   : > { %v3818_v7 = vld [vmem:[%s7791_s3 + $0x1f0] sm:$0xff] }
 0x2b8   : > { %v2090_v59 = vpop.f32.mrf.mxu1 }
 0x2b9   : > { %v2106_v11 = vadd.f32 %v2090_v59, %v1989_v16  ;;  %v2207_v0 = vpop.f32.mrf.mxu0 }
 0x2ba   : > { %v5085_v13 = vpop.f32.mrf.mxu1 }
 0x2bb   : > { %v2223_v51 = vadd.f32 %v2207_v0, %v2106_v11  ;;  %v5132_v21 = vpop.f32.mrf.mxu0  ;;  %v3801_v0 = vld [vmem:[%s7791_s3 + $0x168] sm:$0xff] }
 0x2bc   : > { %v3817_v13 = vld [vmem:[%s7791_s3 + $0x1e8] sm:$0xff] }
 0x2be   : > { %v2095_v4 = vpop.f32.mrf.mxu1 }
 0x2bf   : > { %v2212_v15 = vpop.f32.mrf.mxu0  ;;  %v3800_v4 = vld [vmem:[%s7791_s3 + $0x160] sm:$0xff] }
 0x2c0   : > { %v5088_v35 = vpop.f32.mrf.mxu1  ;;  %v3816_v15 = vld [vmem:[%s7791_s3 + $0x1e0] sm:$0xff] }
 0x2c1   : > { %v5135_v50 = vpop.f32.mrf.mxu0 }
 0x2c2   : > { %v3799_v50 = vld [vmem:[%s7791_s3 + $0x158] sm:$0xff] }
 0x2c4   : > { %v2100_v53 = vpop.f32.mrf.mxu1 }
 0x2c5   : > { %v2217_v20 = vpop.f32.mrf.mxu0  ;;  %v2108_v30 = vadd.f32 %v2100_v53, %v1991_v48  ;;  %v3819_v48 = vld [vmem:[%s7791_s3 + $0x1f8] sm:$0xff] }
 0x2c6   : > { %v5091_v57 = vpop.f32.mrf.mxu1  ;;  %v3815_v53 = vld [vmem:[%s7791_s3 + $0x1d8] sm:$0xff] }
 0x2c7   : > { %v5138_v58 = vpop.f32.mrf.mxu0  ;;  %v2225_v43 = vadd.f32 %v2217_v20, %v2108_v30  ;;  %v3798_v20 = vld [vmem:[%s7791_s3 + $0x150] sm:$0xff]  ;;  %v3831_v30 = vld [vmem:[%s7791_s3 + $0x258] sm:$0xff] }
 0x2c8   : > { %v3814_v57 = vld [vmem:[%s7791_s3 + $0x1d0] sm:$0xff]  ;;  %v3797_v58 = vld [vmem:[%s7791_s3 + $0x148] sm:$0xff] }
 0x2d6   : > { %v2314_v26 = vpop.f32.mrf.mxu1 }
 0x2d7   : > { %v2431_v61 = vpop.f32.mrf.mxu0  ;;  %v2338_v8 = vadd.f32 %v2314_v26, %v2221_v25  ;;  %v3813_v26 = vld [vmem:[%s7791_s3 + $0x1c8] sm:$0xff] }
 0x2d8   : > { %v5173_v62 = vpop.f32.mrf.mxu1 }
 0x2d9   : > { %v5220_v1 = vpop.f32.mrf.mxu0  ;;  %v2455_v32 = vadd.f32 %v2431_v61, %v2338_v8  ;;  %v3796_v61 = vld [vmem:[%s7791_s3 + $0x140] sm:$0xff] }
 0x2da   : > { %v3812_v62 = vld [vmem:[%s7791_s3 + $0x1c0] sm:$0xff]  ;;  %v3795_v1 = vld [vmem:[%s7791_s3 + $0x138] sm:$0xff] }
 0x2db   : > { %v2319_v19 = vpop.f32.mrf.mxu1  ;;  %v2436_v12 = vpop.f32.mrf.mxu0 }
 0x2dc   : > { %v3811_v19 = vld [vmem:[%s7791_s3 + $0x1b8] sm:$0xff]  ;;  %v3794_v12 = vld [vmem:[%s7791_s3 + $0x130] sm:$0xff] }
 0x2dd   : > { %v5176_v24 = vpop.f32.mrf.mxu1  ;;  %v5223_v47 = vpop.f32.mrf.mxu0 }
 0x2de   : > { %v3810_v24 = vld [vmem:[%s7791_s3 + $0x1b0] sm:$0xff]  ;;  %v3793_v47 = vld [vmem:[%s7791_s3 + $0x128] sm:$0xff] }
 0x2df   : > { %v2441_v29 = vpop.f32.mrf.mxu0 }
 0x2e0   : > { %v2324_v37 = vpop.f32.mrf.mxu1 }
 0x2e1   : > { %v5226_v34 = vpop.f32.mrf.mxu0  ;;  %v2340_v27 = vadd.f32 %v2324_v37, %v2223_v51  ;;  %v3792_v37 = vld [vmem:[%s7791_s3 + $0x120] sm:$0xff] }
 0x2e2   : > { %v5179_v2 = vpop.f32.mrf.mxu1  ;;  %v3808_v34 = vld [vmem:[%s7791_s3 + $0x1a0] sm:$0xff] }
 0x2e3   : > { %v2446_v22 = vpop.f32.mrf.mxu0  ;;  %v2457_v39 = vadd.f32 %v2441_v29, %v2340_v27  ;;  %v3809_v29 = vld [vmem:[%s7791_s3 + $0x1a8] sm:$0xff]  ;;  %v3791_v2 = vld [vmem:[%s7791_s3 + $0x118] sm:$0xff] }
 0x2e4   : > { %v2329_v5 = vpop.f32.mrf.mxu1  ;;  %v3807_v22 = vld [vmem:[%s7791_s3 + $0x198] sm:$0xff]  ;;  %v3849_v27 = vld [vmem:[%s7791_s3 + $0x2e8] sm:$0xff] }
 0x2e5   : > { %v5229_v23 = vpop.f32.mrf.mxu0  ;;  %v3790_v5 = vld [vmem:[%s7791_s3 + $0x110] sm:$0xff] }
 0x2e6   : > { %v5182_v54 = vpop.f32.mrf.mxu1  ;;  %v3806_v23 = vld [vmem:[%s7791_s3 + $0x190] sm:$0xff] }
 0x2e7   : > { %v2451_v9 = vpop.f32.mrf.mxu0  ;;  %v3789_v54 = vld [vmem:[%s7791_s3 + $0x108] sm:$0xff] }
 0x2e8   : > { %v2334_v31 = vpop.f32.mrf.mxu1 }
 0x2e9   : > { %v5232_v17 = vpop.f32.mrf.mxu0  ;;  %v2342_v49 = vadd.f32 %v2334_v31, %v2225_v43  ;;  %v3788_v31 = vld [vmem:[%s7791_s3 + $0x100] sm:$0xff]  ;;  %v3845_v43 = vld [vmem:[%s7791_s3 + $0x2c8] sm:$0xff] }
 0x2ea   : > { %v5185_v6 = vpop.f32.mrf.mxu1  ;;  %v3804_v17 = vld [vmem:[%s7791_s3 + $0x180] sm:$0xff] }
 0x2eb   : > { %v2459_v3 = vadd.f32 %v2451_v9, %v2342_v49  ;;  %v3805_v9 = vld [vmem:[%s7791_s3 + $0x188] sm:$0xff]  ;;  %v3835_v6 = vld [vmem:[%s7791_s3 + $0x278] sm:$0xff] }
 0x2ec   : > { %v3827_v49 = vld [vmem:[%s7791_s3 + $0x238] sm:$0xff] }
 0x2f8   : > { %v2548_v14 = vpop.f32.mrf.mxu1 }
 0x2f9   : > { %v2572_v41 = vadd.f32 %v2548_v14, %v2455_v32  ;;  %v3851_v14 = vld [vmem:[%s7791_s3 + $0x2f8] sm:$0xff] }
 0x2fa   : > { %v5267_v42 = vpop.f32.mrf.mxu1 }
 0x2fb   : > { %v2584_v16 = vadd.f32 %v3771_v10, %v2572_v41  ;;  %v3850_v41 = vld [vmem:[%s7791_s3 + $0x2f0] sm:$0xff]  ;;  %v3833_v42 = vld [vmem:[%s7791_s3 + $0x268] sm:$0xff] }
 0x2fc   : > { %v2553_v28 = vpop.f32.mrf.mxu1 }
 0x2fd   : > { %v2589_v33 = vmax.f32 %v2584_v16, 0.0  ;;  %v3832_v16 = vld [vmem:[%s7791_s3 + $0x260] sm:$0xff] }
 0x2fe   : > { %v5270_v38 = vpop.f32.mrf.mxu1  ;;  %v3848_v28 = vld [vmem:[%s7791_s3 + $0x2e0] sm:$0xff] }
 0x2ff   : > { %2594 = vst [vmem:[#allocation3] sm:$0xff] %v2589_v33  ;;  %v3847_v33 = vld [vmem:[%s7791_s3 + $0x2d8] sm:$0xff]  ;;  %v3830_v38 = vld [vmem:[%s7791_s3 + $0x250] sm:$0xff] }
 0x300   : > { %v2558_v36 = vpop.f32.mrf.mxu1 }
 0x301   : > { %v2574_v44 = vadd.f32 %v2558_v36, %v2457_v39  ;;  %v3846_v39 = vld [vmem:[%s7791_s3 + $0x2d0] sm:$0xff]  ;;  %v3829_v36 = vld [vmem:[%s7791_s3 + $0x248] sm:$0xff] }
 0x302   : > { %v5273_v45 = vpop.f32.mrf.mxu1 }
 0x303   : > { %v2586_v52 = vadd.f32 %v3771_v10, %v2574_v44  ;;  %v3828_v44 = vld [vmem:[%s7791_s3 + $0x240] sm:$0xff] }
 0x304   : > { %v2563_v40 = vpop.f32.mrf.mxu1  ;;  %v3844_v45 = vld [vmem:[%s7791_s3 + $0x2c0] sm:$0xff] }
 0x305   : > { %v2591_v55 = vmax.f32 %v2586_v52, 0.0  ;;  %v3843_v52 = vld [vmem:[%s7791_s3 + $0x2b8] sm:$0xff]  ;;  %v3826_v40 = vld [vmem:[%s7791_s3 + $0x230] sm:$0xff] }
 0x306   : > { %v5276_v25 = vpop.f32.mrf.mxu1  ;;  %v2616_v60 = vld [vmem:[#allocation3 + $0x2] sm:$0x1]  ;;  %v2599_v63 = vld [vmem:[#allocation3] sm:$0x1]  ;;  %v2774_v8 = vld [vmem:[#allocation3 + $0x4] sm:$0x1] }
 0x307   : > { %2596 = vst [vmem:[#allocation3 + $0x10] sm:$0xff] %v2591_v55  ;;  %5313 = vmatmul.mubr.f32.vlgmr.msra.gmra.mxu0 %v2616_v60  ;;  %5348 = vmatmul.mubr.f32.vlgmr.msra.gmra.mxu1 %v2599_v63  ;;  %v3842_v55 = vld [vmem:[%s7791_s3 + $0x2b0] sm:$0xff]  ;;  %v3824_v25 = vld [vmem:[%s7791_s3 + $0x220] sm:$0xff]  ;;  %v3823_v63 = vld [vmem:[%s7791_s3 + $0x218] sm:$0xff] }
 0x308   : > { %5351 = vmatpush3.msra.mxu0 %v3803_v56  ;;  %5386 = vmatpush3.msra.mxu1 %v3819_v48  ;;  %v2568_v59 = vpop.f32.mrf.mxu1  ;;  %v3825_v56 = vld [vmem:[%s7791_s3 + $0x228] sm:$0xff]  ;;  %v3840_v60 = vld [vmem:[%s7791_s3 + $0x2a0] sm:$0xff] }
 0x309   : > { %v2576_v11 = vadd.f32 %v2568_v59, %v2459_v3  ;;  %5352 = vmatprep.subr.mxu0 %v7812_v18  ;;  %5387 = vmatprep.subr.mxu1 %v7812_v18  ;;  %v3841_v48 = vld [vmem:[%s7791_s3 + $0x2a8] sm:$0xff]  ;;  %v3839_v3 = vld [vmem:[%s7791_s3 + $0x298] sm:$0xff] }
 0x30a   : > { %5353 = vmatpush3.msra.mxu0 %v3802_v46  ;;  %5388 = vmatpush3.msra.mxu1 %v3818_v7  ;;  %v5279_v51 = vpop.f32.mrf.mxu1  ;;  %v3822_v46 = vld [vmem:[%s7791_s3 + $0x210] sm:$0xff]  ;;  %v3821_v59 = vld [vmem:[%s7791_s3 + $0x208] sm:$0xff] }
 0x30b   : > { %v2588_v21 = vadd.f32 %v3771_v10, %v2576_v11  ;;  %5354 = vmatprep.subr.mxu0 %v7812_v18  ;;  %5389 = vmatprep.subr.mxu1 %v7812_v18  ;;  %v3834_v10 = vld [vmem:[%s7791_s3 + $0x270] sm:$0xff]  ;;  %v3837_v11 = vld [vmem:[%s7791_s3 + $0x288] sm:$0xff]  ;;  %v3867_v51 = vld [vmem:[%s7791_s3 + $0x378] sm:$0xff] }
 0x30c   : > { %5355 = vmatpush3.msra.mxu0 %v3801_v0  ;;  %5390 = vmatpush3.msra.mxu1 %v3817_v13  ;;  %v3838_v7 = vld [vmem:[%s7791_s3 + $0x290] sm:$0xff]  ;;  %v3820_v0 = vld [vmem:[%s7791_s3 + $0x200] sm:$0xff] }
 0x30d   : > { %v2593_v35 = vmax.f32 %v2588_v21, 0.0  ;;  %5356 = vmatprep.subr.mxu0 %v7812_v18  ;;  %5391 = vmatprep.subr.mxu1 %v7812_v18  ;;  %v3836_v13 = vld [vmem:[%s7791_s3 + $0x280] sm:$0xff] }
 0x30e   : > { %5357 = vmatpush3.msra.mxu0 %v3800_v4  ;;  %5392 = vmatpush3.msra.mxu1 %v3816_v15  ;;  %v2863_v32 = vld [vmem:[#allocation3 + $0x10] sm:$0x1]  ;;  %v2952_v21 = vld [vmem:[#allocation3 + $0x12] sm:$0x1]  ;;  %v3041_v4 = vld [vmem:[#allocation3 + $0x14] sm:$0x1] }
 0x30f   : > { %2598 = vst [vmem:[#allocation3 + $0x20] sm:$0xff] %v2593_v35  ;;  %5358 = vmatprep.subr.mxu0 %v7812_v18  ;;  %5393 = vmatprep.subr.mxu1 %v7812_v18  ;;  %v3883_v15 = vld [vmem:[%s7791_s3 + $0x3f8] sm:$0xff]  ;;  %v3866_v35 = vld [vmem:[%s7791_s3 + $0x370] sm:$0xff] }
 0x310   : > { %5359 = vmatpush3.msra.mxu0 %v3799_v50  ;;  %5394 = vmatpush3.msra.mxu1 %v3815_v53  ;;  %v3882_v50 = vld [vmem:[%s7791_s3 + $0x3f0] sm:$0xff]  ;;  %v3865_v53 = vld [vmem:[%s7791_s3 + $0x368] sm:$0xff] }
 0x311   : > { %5360 = vmatprep.subr.mxu0 %v7812_v18  ;;  %5395 = vmatprep.subr.mxu1 %v7812_v18 }
 0x312   : > { %5361 = vmatpush3.msra.mxu0 %v3798_v20  ;;  %5396 = vmatpush3.msra.mxu1 %v3814_v57  ;;  %v3881_v20 = vld [vmem:[%s7791_s3 + $0x3e8] sm:$0xff]  ;;  %v3864_v57 = vld [vmem:[%s7791_s3 + $0x360] sm:$0xff] }
 0x313   : > { %5362 = vmatprep.subr.mxu0 %v7812_v18  ;;  %5397 = vmatprep.subr.mxu1 %v7812_v18 }
 0x314   : > { %5363 = vmatpush3.msra.mxu0 %v3797_v58  ;;  %5398 = vmatpush3.msra.mxu1 %v3813_v26  ;;  %v3880_v58 = vld [vmem:[%s7791_s3 + $0x3e0] sm:$0xff]  ;;  %v3863_v26 = vld [vmem:[%s7791_s3 + $0x358] sm:$0xff] }
 0x315   : > { %5364 = vmatprep.subr.mxu0 %v7812_v18  ;;  %5399 = vmatprep.subr.mxu1 %v7812_v18 }
 0x316   : > { %5365 = vmatpush3.msra.mxu0 %v3796_v61  ;;  %5400 = vmatpush3.msra.mxu1 %v3812_v62  ;;  %v3879_v61 = vld [vmem:[%s7791_s3 + $0x3d8] sm:$0xff]  ;;  %v3862_v62 = vld [vmem:[%s7791_s3 + $0x350] sm:$0xff] }
 0x317   : > { %5366 = vmatprep.subr.mxu0 %v7812_v18  ;;  %5401 = vmatprep.subr.mxu1 %v7812_v18 }
 0x318   : > { %5367 = vmatpush3.msra.mxu0 %v3795_v1  ;;  %5402 = vmatpush3.msra.mxu1 %v3811_v19  ;;  %v3878_v1 = vld [vmem:[%s7791_s3 + $0x3d0] sm:$0xff]  ;;  %v3861_v19 = vld [vmem:[%s7791_s3 + $0x348] sm:$0xff] }
 0x319   : > { %5368 = vmatprep.subr.mxu0 %v7812_v18  ;;  %5403 = vmatprep.subr.mxu1 %v7812_v18 }
 0x31a   : > { %5369 = vmatpush3.msra.mxu0 %v3794_v12  ;;  %5404 = vmatpush3.msra.mxu1 %v3810_v24  ;;  %v3877_v12 = vld [vmem:[%s7791_s3 + $0x3c8] sm:$0xff]  ;;  %v3860_v24 = vld [vmem:[%s7791_s3 + $0x340] sm:$0xff] }
 0x31b   : > { %5370 = vmatprep.subr.mxu0 %v7812_v18  ;;  %5405 = vmatprep.subr.mxu1 %v7812_v18 }
 0x31c   : > { %5371 = vmatpush3.msra.mxu0 %v3793_v47  ;;  %5406 = vmatpush3.msra.mxu1 %v3809_v29  ;;  %v3876_v47 = vld [vmem:[%s7791_s3 + $0x3c0] sm:$0xff]  ;;  %v3859_v29 = vld [vmem:[%s7791_s3 + $0x338] sm:$0xff] }
 0x31d   : > { %5372 = vmatprep.subr.mxu0 %v7812_v18  ;;  %5407 = vmatprep.subr.mxu1 %v7812_v18 }
 0x31e   : > { %5373 = vmatpush3.msra.mxu0 %v3792_v37  ;;  %5408 = vmatpush3.msra.mxu1 %v3808_v34  ;;  %v3875_v37 = vld [vmem:[%s7791_s3 + $0x3b8] sm:$0xff]  ;;  %v3858_v34 = vld [vmem:[%s7791_s3 + $0x330] sm:$0xff] }
 0x31f   : > { %5374 = vmatprep.subr.mxu0 %v7812_v18  ;;  %5409 = vmatprep.subr.mxu1 %v7812_v18 }
 0x320   : > { %5375 = vmatpush3.msra.mxu0 %v3791_v2  ;;  %5410 = vmatpush3.msra.mxu1 %v3807_v22  ;;  %v3874_v2 = vld [vmem:[%s7791_s3 + $0x3b0] sm:$0xff]  ;;  %v3857_v22 = vld [vmem:[%s7791_s3 + $0x328] sm:$0xff] }
 0x321   : > { %5376 = vmatprep.subr.mxu0 %v7812_v18  ;;  %5411 = vmatprep.subr.mxu1 %v7812_v18 }
 0x322   : > { %5377 = vmatpush3.msra.mxu0 %v3790_v5  ;;  %5412 = vmatpush3.msra.mxu1 %v3806_v23  ;;  %v3873_v5 = vld [vmem:[%s7791_s3 + $0x3a8] sm:$0xff]  ;;  %v3856_v23 = vld [vmem:[%s7791_s3 + $0x320] sm:$0xff] }
 0x323   : > { %5378 = vmatprep.subr.mxu0 %v7812_v18  ;;  %5413 = vmatprep.subr.mxu1 %v7812_v18 }
 0x324   : > { %5379 = vmatpush3.msra.mxu0 %v3789_v54  ;;  %5414 = vmatpush3.msra.mxu1 %v3805_v9  ;;  %v3872_v54 = vld [vmem:[%s7791_s3 + $0x3a0] sm:$0xff]  ;;  %v3855_v9 = vld [vmem:[%s7791_s3 + $0x318] sm:$0xff] }
 0x325   : > { %5380 = vmatprep.subr.mxu0 %v7812_v18  ;;  %5415 = vmatprep.subr.mxu1 %v7812_v18 }
 0x326   : > { %5381 = vmatpush3.msra.mxu0 %v3788_v31  ;;  %5382 = vmatprep.mubr.msk.f32.mxu0 %vm5700_vm0, %v7812_v18  ;;  %v3871_v31 = vld [vmem:[%s7791_s3 + $0x398] sm:$0xff] }
 0x327   : > { %5416 = vmatpush3.msra.mxu1 %v3804_v17  ;;  %5417 = vmatprep.mubr.msk.f32.mxu1 %vm5700_vm0, %v7812_v18  ;;  %v3854_v17 = vld [vmem:[%s7791_s3 + $0x310] sm:$0xff] }
 0x328   : > { %5383 = vmatmul.mubr.f32.vlgmr.msra.gmra.mxu0 %v2774_v8  ;;  %5418 = vmatmul.mubr.f32.vlgmr.msra.gmra.mxu1 %v2863_v32  ;;  %v3853_v8 = vld [vmem:[%s7791_s3 + $0x308] sm:$0xff] }
 0x329   : > { %5420 = vmatprep.subr.mxu0 %v7812_v18  ;;  %5455 = vmatprep.subr.mxu1 %v7812_v18  ;;  %v3869_v32 = vld [vmem:[%s7791_s3 + $0x388] sm:$0xff] }
 0x32a   : > { %5421 = vmatpush3.msra.mxu0 %v3835_v6  ;;  %5456 = vmatpush3.msra.mxu1 %v3851_v14  ;;  %v3870_v6 = vld [vmem:[%s7791_s3 + $0x390] sm:$0xff]  ;;  %v3852_v14 = vld [vmem:[%s7791_s3 + $0x300] sm:$0xff] }
 0x32b   : > { %5422 = vmatprep.subr.mxu0 %v7812_v18  ;;  %5457 = vmatprep.subr.mxu1 %v7812_v18 }
 0x32c   : > { %5423 = vmatpush3.msra.mxu0 %v3834_v10  ;;  %5458 = vmatpush3.msra.mxu1 %v3850_v41  ;;  %v3868_v10 = vld [vmem:[%s7791_s3 + $0x380] sm:$0xff] }
 0x32d   : > { %5424 = vmatprep.subr.mxu0 %v7812_v18  ;;  %5459 = vmatprep.subr.mxu1 %v7812_v18  ;;  %v3130_v41 = vld [vmem:[#allocation3 + $0x20] sm:$0x1] }
 0x32e   : > { %5425 = vmatpush3.msra.mxu0 %v3833_v42  ;;  %5460 = vmatpush3.msra.mxu1 %v3849_v27  ;;  %v3219_v42 = vld [vmem:[#allocation3 + $0x22] sm:$0x1]  ;;  %v3899_v27 = vld [vmem:[%s7791_s3 + $0x478] sm:$0xff] }
 0x32f   : > { %5426 = vmatprep.subr.mxu0 %v7812_v18  ;;  %5461 = vmatprep.subr.mxu1 %v7812_v18 }
 0x330   : > { %5427 = vmatpush3.msra.mxu0 %v3832_v16  ;;  %5462 = vmatpush3.msra.mxu1 %v3848_v28  ;;  %v3898_v16 = vld [vmem:[%s7791_s3 + $0x470] sm:$0xff]  ;;  %v3897_v28 = vld [vmem:[%s7791_s3 + $0x468] sm:$0xff] }
 0x331   : > { %5428 = vmatprep.subr.mxu0 %v7812_v18  ;;  %5463 = vmatprep.subr.mxu1 %v7812_v18 }
 0x332   : > { %5429 = vmatpush3.msra.mxu0 %v3831_v30  ;;  %5464 = vmatpush3.msra.mxu1 %v3847_v33  ;;  %v3896_v30 = vld [vmem:[%s7791_s3 + $0x460] sm:$0xff]  ;;  %v3895_v33 = vld [vmem:[%s7791_s3 + $0x458] sm:$0xff] }
 0x333   : > { %5430 = vmatprep.subr.mxu0 %v7812_v18  ;;  %5465 = vmatprep.subr.mxu1 %v7812_v18 }
 0x334   : > { %5431 = vmatpush3.msra.mxu0 %v3830_v38  ;;  %5466 = vmatpush3.msra.mxu1 %v3846_v39  ;;  %v3894_v38 = vld [vmem:[%s7791_s3 + $0x450] sm:$0xff]  ;;  %v3893_v39 = vld [vmem:[%s7791_s3 + $0x448] sm:$0xff] }
 0x335   : > { %5432 = vmatprep.subr.mxu0 %v7812_v18  ;;  %5467 = vmatprep.subr.mxu1 %v7812_v18 }
 0x336   : > { %5433 = vmatpush3.msra.mxu0 %v3829_v36  ;;  %5468 = vmatpush3.msra.mxu1 %v3845_v43  ;;  %v3892_v36 = vld [vmem:[%s7791_s3 + $0x440] sm:$0xff]  ;;  %v3891_v43 = vld [vmem:[%s7791_s3 + $0x438] sm:$0xff] }
 0x337   : > { %5434 = vmatprep.subr.mxu0 %v7812_v18  ;;  %5469 = vmatprep.subr.mxu1 %v7812_v18 }
 0x338   : > { %5435 = vmatpush3.msra.mxu0 %v3828_v44  ;;  %5470 = vmatpush3.msra.mxu1 %v3844_v45  ;;  %v3890_v44 = vld [vmem:[%s7791_s3 + $0x430] sm:$0xff]  ;;  %v3889_v45 = vld [vmem:[%s7791_s3 + $0x428] sm:$0xff] }
 0x339   : > { %5436 = vmatprep.subr.mxu0 %v7812_v18  ;;  %5471 = vmatprep.subr.mxu1 %v7812_v18 }
 0x33a   : > { %5437 = vmatpush3.msra.mxu0 %v3827_v49  ;;  %5472 = vmatpush3.msra.mxu1 %v3843_v52  ;;  %v3888_v49 = vld [vmem:[%s7791_s3 + $0x420] sm:$0xff]  ;;  %v3887_v52 = vld [vmem:[%s7791_s3 + $0x418] sm:$0xff] }
 0x33b   : > { %5438 = vmatprep.subr.mxu0 %v7812_v18  ;;  %5473 = vmatprep.subr.mxu1 %v7812_v18 }
 0x33c   : > { %5439 = vmatpush3.msra.mxu0 %v3826_v40  ;;  %5474 = vmatpush3.msra.mxu1 %v3842_v55  ;;  %v3886_v40 = vld [vmem:[%s7791_s3 + $0x410] sm:$0xff]  ;;  %v3885_v55 = vld [vmem:[%s7791_s3 + $0x408] sm:$0xff] }
 0x33d   : > { %5440 = vmatprep.subr.mxu0 %v7812_v18  ;;  %5475 = vmatprep.subr.mxu1 %v7812_v18 }
 0x33e   : > { %5441 = vmatpush3.msra.mxu0 %v3825_v56  ;;  %5476 = vmatpush3.msra.mxu1 %v3841_v48  ;;  %v3884_v56 = vld [vmem:[%s7791_s3 + $0x400] sm:$0xff] }
 0x33f   : > { %5442 = vmatprep.subr.mxu0 %v7812_v18  ;;  %5477 = vmatprep.subr.mxu1 %v7812_v18  ;;  %v3308_v48 = vld [vmem:[#allocation3 + $0x24] sm:$0x1] }
 0x340   : > { %5443 = vmatpush3.msra.mxu0 %v3824_v25  ;;  %5478 = vmatpush3.msra.mxu1 %v3840_v60 }
 0x341   : > { %5444 = vmatprep.subr.mxu0 %v7812_v18  ;;  %5479 = vmatprep.subr.mxu1 %v7812_v18 }
 0x342   : > { %5445 = vmatpush3.msra.mxu0 %v3823_v63  ;;  %5480 = vmatpush3.msra.mxu1 %v3839_v3 }
 0x343   : > { %5446 = vmatprep.subr.mxu0 %v7812_v18  ;;  %5481 = vmatprep.subr.mxu1 %v7812_v18 }
 0x344   : > { %5447 = vmatpush3.msra.mxu0 %v3822_v46  ;;  %5482 = vmatpush3.msra.mxu1 %v3838_v7 }
 0x345   : > { %5448 = vmatprep.subr.mxu0 %v7812_v18  ;;  %5483 = vmatprep.subr.mxu1 %v7812_v18 }
 0x346   : > { %5449 = vmatpush3.msra.mxu0 %v3821_v59  ;;  %5484 = vmatpush3.msra.mxu1 %v3837_v11 }
 0x347   : > { %5450 = vmatprep.subr.mxu0 %v7812_v18  ;;  %5485 = vmatprep.subr.mxu1 %v7812_v18 }
 0x348   : > { %5451 = vmatpush3.msra.mxu0 %v3820_v0  ;;  %5452 = vmatprep.mubr.msk.f32.mxu0 %vm5700_vm0, %v7812_v18 }
 0x349   : > { %5486 = vmatpush3.msra.mxu1 %v3836_v13  ;;  %5487 = vmatprep.mubr.msk.f32.mxu1 %vm5700_vm0, %v7812_v18 }
 0x34a   : > { %5453 = vmatmul.mubr.f32.vlgmr.msra.gmra.mxu0 %v2952_v21  ;;  %5488 = vmatmul.mubr.f32.vlgmr.msra.gmra.mxu1 %v3041_v4 }
 0x34b   : > { %5490 = vmatprep.subr.mxu0 %v7812_v18  ;;  %5525 = vmatprep.subr.mxu1 %v7812_v18 }
 0x34c   : > { %5491 = vmatpush3.msra.mxu0 %v3867_v51  ;;  %5526 = vmatpush3.msra.mxu1 %v3883_v15 }
 0x34d   : > { %5492 = vmatprep.subr.mxu0 %v7812_v18  ;;  %5527 = vmatprep.subr.mxu1 %v7812_v18 }
 0x34e   : > { %5493 = vmatpush3.msra.mxu0 %v3866_v35  ;;  %5528 = vmatpush3.msra.mxu1 %v3882_v50 }
 0x34f   : > { %5494 = vmatprep.subr.mxu0 %v7812_v18  ;;  %5529 = vmatprep.subr.mxu1 %v7812_v18 }
 0x350   : > { %5495 = vmatpush3.msra.mxu0 %v3865_v53  ;;  %5530 = vmatpush3.msra.mxu1 %v3881_v20 }
 0x351   : > { %5496 = vmatprep.subr.mxu0 %v7812_v18  ;;  %5531 = vmatprep.subr.mxu1 %v7812_v18 }
 0x352   : > { %5497 = vmatpush3.msra.mxu0 %v3864_v57  ;;  %5532 = vmatpush3.msra.mxu1 %v3880_v58 }
 0x353   : > { %5498 = vmatprep.subr.mxu0 %v7812_v18  ;;  %5533 = vmatprep.subr.mxu1 %v7812_v18 }
 0x354   : > { %5499 = vmatpush3.msra.mxu0 %v3863_v26  ;;  %5534 = vmatpush3.msra.mxu1 %v3879_v61 }
 0x355   : > { %5500 = vmatprep.subr.mxu0 %v7812_v18  ;;  %5535 = vmatprep.subr.mxu1 %v7812_v18 }
 0x356   : > { %5501 = vmatpush3.msra.mxu0 %v3862_v62  ;;  %5536 = vmatpush3.msra.mxu1 %v3878_v1  ;;  %v3397_v1 = vld [vmem:[%s7794_s6] sm:$0x1] }
 0x357   : > { %5502 = vmatprep.subr.mxu0 %v7812_v18  ;;  %5537 = vmatprep.subr.mxu1 %v7812_v18 }
 0x358   : > { %5503 = vmatpush3.msra.mxu0 %v3861_v19  ;;  %5538 = vmatpush3.msra.mxu1 %v3877_v12 }
 0x359   : > { %5504 = vmatprep.subr.mxu0 %v7812_v18  ;;  %5539 = vmatprep.subr.mxu1 %v7812_v18 }
 0x35a   : > { %5505 = vmatpush3.msra.mxu0 %v3860_v24  ;;  %5540 = vmatpush3.msra.mxu1 %v3876_v47 }
 0x35b   : > { %5506 = vmatprep.subr.mxu0 %v7812_v18  ;;  %5541 = vmatprep.subr.mxu1 %v7812_v18 }
 0x35c   : > { %5507 = vmatpush3.msra.mxu0 %v3859_v29  ;;  %5542 = vmatpush3.msra.mxu1 %v3875_v37 }
 0x35d   : > { %5508 = vmatprep.subr.mxu0 %v7812_v18  ;;  %5543 = vmatprep.subr.mxu1 %v7812_v18 }
 0x35e   : > { %5509 = vmatpush3.msra.mxu0 %v3858_v34  ;;  %5544 = vmatpush3.msra.mxu1 %v3874_v2 }
 0x35f   : > { %5510 = vmatprep.subr.mxu0 %v7812_v18  ;;  %5545 = vmatprep.subr.mxu1 %v7812_v18 }
 0x360   : > { %5511 = vmatpush3.msra.mxu0 %v3857_v22  ;;  %5546 = vmatpush3.msra.mxu1 %v3873_v5 }
 0x361   : > { %5512 = vmatprep.subr.mxu0 %v7812_v18  ;;  %5547 = vmatprep.subr.mxu1 %v7812_v18 }
 0x362   : > { %5513 = vmatpush3.msra.mxu0 %v3856_v23  ;;  %5548 = vmatpush3.msra.mxu1 %v3872_v54 }
 0x363   : > { %5514 = vmatprep.subr.mxu0 %v7812_v18  ;;  %5549 = vmatprep.subr.mxu1 %v7812_v18 }
 0x364   : > { %5515 = vmatpush3.msra.mxu0 %v3855_v9  ;;  %5550 = vmatpush3.msra.mxu1 %v3871_v31 }
 0x365   : > { %5516 = vmatprep.subr.mxu0 %v7812_v18  ;;  %5551 = vmatprep.subr.mxu1 %v7812_v18 }
 0x366   : > { %5517 = vmatpush3.msra.mxu0 %v3854_v17  ;;  %5552 = vmatpush3.msra.mxu1 %v3870_v6 }
 0x367   : > { %5518 = vmatprep.subr.mxu0 %v7812_v18  ;;  %5553 = vmatprep.subr.mxu1 %v7812_v18 }
 0x368   : > { %5519 = vmatpush3.msra.mxu0 %v3853_v8  ;;  %5554 = vmatpush3.msra.mxu1 %v3869_v32 }
 0x369   : > { %5520 = vmatprep.subr.mxu0 %v7812_v18  ;;  %5555 = vmatprep.subr.mxu1 %v7812_v18 }
 0x36a   : > { %5521 = vmatpush3.msra.mxu0 %v3852_v14  ;;  %5522 = vmatprep.mubr.msk.f32.mxu0 %vm5700_vm0, %v7812_v18 }
 0x36b   : > { %5556 = vmatpush3.msra.mxu1 %v3868_v10  ;;  %5557 = vmatprep.mubr.msk.f32.mxu1 %vm5700_vm0, %v7812_v18 }
 0x36c   : > { %5523 = vmatmul.mubr.f32.vlgmr.msra.gmra.mxu0 %v3130_v41  ;;  %5558 = vmatmul.mubr.f32.vlgmr.msra.gmra.mxu1 %v3219_v42 }
 0x36d   : > { %5560 = vmatprep.subr.mxu0 %v7812_v18  ;;  %5592 = vmatprep.mubr.msk.f32.mxu0 %vm5700_vm0, %v7812_v18 }
 0x36e   : > { %5561 = vmatpush3.msra.mxu0 %v3899_v27 }
 0x36f   : > { %5562 = vmatprep.subr.mxu0 %v7812_v18 }
 0x370   : > { %5563 = vmatpush3.msra.mxu0 %v3898_v16 }
 0x371   : > { %5564 = vmatprep.subr.mxu0 %v7812_v18 }
 0x372   : > { %5565 = vmatpush3.msra.mxu0 %v3897_v28 }
 0x373   : > { %5566 = vmatprep.subr.mxu0 %v7812_v18 }
 0x374   : > { %5567 = vmatpush3.msra.mxu0 %v3896_v30 }
 0x375   : > { %5568 = vmatprep.subr.mxu0 %v7812_v18 }
 0x376   : > { %5569 = vmatpush3.msra.mxu0 %v3895_v33 }
 0x377   : > { %5570 = vmatprep.subr.mxu0 %v7812_v18 }
 0x378   : > { %5571 = vmatpush3.msra.mxu0 %v3894_v38 }
 0x379   : > { %5572 = vmatprep.subr.mxu0 %v7812_v18 }
 0x37a   : > { %5573 = vmatpush3.msra.mxu0 %v3893_v39 }
 0x37b   : > { %5574 = vmatprep.subr.mxu0 %v7812_v18 }
 0x37c   : > { %5575 = vmatpush3.msra.mxu0 %v3892_v36 }
 0x37d   : > { %5576 = vmatprep.subr.mxu0 %v7812_v18 }
 0x37e   : > { %5577 = vmatpush3.msra.mxu0 %v3891_v43 }
 0x37f   : > { %5578 = vmatprep.subr.mxu0 %v7812_v18 }
 0x380   : > { %5579 = vmatpush3.msra.mxu0 %v3890_v44 }
 0x381   : > { %5580 = vmatprep.subr.mxu0 %v7812_v18 }
 0x382   : > { %5581 = vmatpush3.msra.mxu0 %v3889_v45 }
 0x383   : > { %5582 = vmatprep.subr.mxu0 %v7812_v18 }
 0x384   : > { %5583 = vmatpush3.msra.mxu0 %v3888_v49 }
 0x385   : > { %5584 = vmatprep.subr.mxu0 %v7812_v18 }
 0x386   : > { %5585 = vmatpush3.msra.mxu0 %v3887_v52 }
 0x387   : > { %5586 = vmatprep.subr.mxu0 %v7812_v18 }
 0x388   : > { %5587 = vmatpush3.msra.mxu0 %v3886_v40 }
 0x389   : > { %5588 = vmatprep.subr.mxu0 %v7812_v18 }
 0x38a   : > { %5589 = vmatpush3.msra.mxu0 %v3885_v55 }
 0x38b   : > { %5590 = vmatprep.subr.mxu0 %v7812_v18 }
 0x38c   : > { %5591 = vmatpush3.msra.mxu0 %v3884_v56 }
 0x38d   : > { %5593 = vmatmul.mubr.f32.vlgmr.msra.gmra.mxu0 %v3308_v48 }
 0x3c7   : > { %v2700_v25 = vpop.f32.mrf.mxu0  ;;  %v2770_v60 = vpop.f32.mrf.mxu1 }
 0x3c8   : > { %v2771_v63 = vadd.f32 %v2770_v60, %v2700_v25 }
 0x3c9   : > { %v5314_v3 = vpop.f32.mrf.mxu0  ;;  %v5349_v46 = vpop.f32.mrf.mxu1 }
 0x3e8   : > { %v2858_v7 = vpop.f32.mrf.mxu0  ;;  %v2947_v59 = vpop.f32.mrf.mxu1 }
 0x3e9   : > { %v2862_v11 = vadd.f32 %v2858_v7, %v2771_v63 }
 0x3ea   : > { %v5384_v0 = vpop.f32.mrf.mxu0  ;;  %v5419_v13 = vpop.f32.mrf.mxu1 }
 0x3eb   : > { %v2951_v51 = vadd.f32 %v2947_v59, %v2862_v11 }
 0x40a   : > { %v3036_v21 = vpop.f32.mrf.mxu0  ;;  %v3125_v4 = vpop.f32.mrf.mxu1 }
 0x40b   : > { %v3040_v57 = vadd.f32 %v3036_v21, %v2951_v51 }
 0x40c   : > { %v5454_v15 = vpop.f32.mrf.mxu0  ;;  %v5489_v18 = vpop.f32.mrf.mxu1 }
 0x40d   : > { %v3129_v58 = vadd.f32 %v3125_v4, %v3040_v57 }
 0x42c   : > { %v3214_v35 = vpop.f32.mrf.mxu0  ;;  %v3303_v50 = vpop.f32.mrf.mxu1 }
 0x42d   : > { %v3218_v26 = vadd.f32 %v3214_v35, %v3129_v58 }
 0x42e   : > { %v5524_v53 = vpop.f32.mrf.mxu0  ;;  %v5559_v20 = vpop.f32.mrf.mxu1 }
 0x42f   : > { %v3307_v61 = vadd.f32 %v3303_v50, %v3218_v26 }
 0x44d   : > { %v3392_v62 = vpop.f32.mrf.mxu0 }
 0x44e   : > { %v3396_v19 = vadd.f32 %v3392_v62, %v3307_v61 }
 0x44f   : > { %v5594_v12 = vpop.f32.mrf.mxu0 }
 0x450   : > { %v3398_v24 = vadd.f32 %v3397_v1, %v3396_v19 }
 0x452   : > { %v3399_v47 = vmax.f32 %v3398_v24, 0.0 }
 0x454   : > { %3400 = vst [vmem:[%s270_s9] sm:$0x1] %v3399_v47 }
 0x455   : > { %5650 = shalt.err (!%p5647_p3)
}
 0x456   : > { %s5651_s19 = scalar_lea.hbm %s3412_s16, 16  ;;  %s5655_s23 = scalar_lea.hbm %s7795_s7, 32 }
 0x457   : > { %p5652_p4 = scmp.ne.s32.totalorder %s3412_s16, %s5651_s19  ;;  %p5656_p9 = scmp.lt.s32.totalorder %s3412_s16, %s7795_s7 }
 0x458   : > { %p5657_p10 = scmp.lt.s32.totalorder %s5655_s23, %s5651_s19 }
 0x459   : > { %p5653_p7 = pnand %p5652_p4, %p5780_p5 }
 0x45a   : > { %p5658_p11 = por %p5657_p10, %p5656_p9 }
 0x45b   : > { %p5654_p8 = pneg %p5653_p7 }
 0x45d   : > { %p5659_p12 = pnand %p5658_p11, %p5654_p8 }
 0x45f   : > { %5662 = shalt.err (!%p5659_p12)
}
 0x460   : > { %5596 = dma.vmem_to_hbm [thread:$0]  (%p5780_p5), %s3415_s29, 16, %s3412_s16, %s3402_s17  }
 0x461 PF: > { %p5602_p13 = scmp.ge.s32.totalorder %s5697_s27, 2  ;;  %s3426_s13 = sand.u32 1, %s5685_s24  }
 0x462   : > { %s3427_s14 = scalar_lea.sflag [#allocation5], %s3426_s13 }
 0x463   : > { %p5599_p0 = pnand %p5602_p13, %p5784_p6 }
 0x465   : > { %p5600_p1 = pneg %p5599_p0 }
 0x467   : > { %5680 = dma.done.wait (%p5600_p1), %s3427_s14, 16  }
 0x468   : > { %5682 = vsyncadd (%p5600_p1), %s3427_s14, 4294967280  ;;  %p17_p2 = scmp.ge.s32.totalorder %s5767_s30, 4   ;;  %s7813_s24 = smov %s5689_s25 }
 0x469   : > { %s7814_s25 = smov %s5693_s26  ;;  %s7815_s26 = smov %s5778_s10 }
 0x46a   : > { %s7816_s27 = smov %s5767_s30  ;;  %19 = sbr.rel (!%p17_p2) target bundleno = 3 (0x3), region = 110 }
 0x46f   :  { %3431 = vsyncpa [#allocation5], 1 }
 0x470   :  { %3433 = vsyncpa [#allocation5 + $0x1], 1 }

</bundles_post_ra>
